<compile_context>
chip_gen: v7x
topology: tpu7x:2x2x1
jax: 0.10.0
libtpu: 0.0.40
codegen_flags: <defaults>
</compile_context>

<pallas_src>
import math

import jax
import jax.numpy as jnp
from jax.experimental import pallas as pl
from jax.experimental.pallas import tpu as pltpu  # noqa: F401

# ----------------------------- model config ---------------------------------
IMAGE_SIZE = 16
PATCH = 4
CHANNELS = 4
DIM = 32
DEPTH = 2
HEADS = 4
DIM_HEAD = 8
INNER_DIM = HEADS * DIM_HEAD               # 32
MLP_DIM = 64
NUM_CLASSES = 10
NUM_PATCHES = (IMAGE_SIZE // PATCH) ** 2   # 16
PATCH_DIM = CHANNELS * PATCH * PATCH       # 64
N_TOK = NUM_PATCHES + 1                    # 17
EPS = 1e-5                                 # PyTorch nn.LayerNorm default
ATTN_SCALE = DIM_HEAD ** (-0.5)
INV_SQRT2 = 1.0 / math.sqrt(2.0)
NEG_BIG = -1e30                            # cross-image attention mask value


# ------------------------------ in-kernel math -------------------------------
def _layernorm(x, g, b):
    mu = jnp.mean(x, axis=-1, keepdims=True)
    d = x - mu
    var = jnp.mean(d * d, axis=-1, keepdims=True)
    return d * jax.lax.rsqrt(var + EPS) * g + b


def _gelu(x):
    # exact (erf) GELU, matching nn.GELU default
    return 0.5 * x * (1.0 + jax.lax.erf(x * INV_SQRT2))


# ------------------------------- fused kernel --------------------------------
def vit_kernel(
    xp_ref,                    # (BN, PATCH_DIM)  — cls rows are zero padding
    keep_ref,                  # (BN, DIM)  1.0 for patch rows, 0.0 for cls rows
    add_ref,                   # (BN, DIM)  pos emb (patch rows) / cls+pos0 (cls rows)
    bias_ref,                  # (BN, BN)   0 same-image, -1e30 cross-image
    sel_ref,                   # (B, BN)    one-hot selector of each image's cls row
    pln1_g_ref, pln1_b_ref,    # (1, PATCH_DIM)
    pw_ref, pb_ref,            # (PATCH_DIM, DIM), (1, DIM)
    pln2_g_ref, pln2_b_ref,    # (1, DIM)
    aln_g_ref, aln_b_ref,      # (DEPTH, 1, DIM)
    wqkv_ref,                  # (DEPTH, DIM, 3*INNER_DIM)
    wout_ref, bout_ref,        # (DEPTH, INNER_DIM, DIM), (DEPTH, 1, DIM)
    fln_g_ref, fln_b_ref,      # (DEPTH, 1, DIM)
    w1_ref, b1_ref,            # (DEPTH, DIM, MLP_DIM), (DEPTH, 1, MLP_DIM)
    w2_ref, b2_ref,            # (DEPTH, MLP_DIM, DIM), (DEPTH, 1, DIM)
    hln_g_ref, hln_b_ref,      # (1, DIM)
    hw_ref, hb_ref,            # (DIM, NUM_CLASSES), (1, NUM_CLASSES)
    o_ref,                     # (B, NUM_CLASSES)
):
    f32 = jnp.float32

    # ---- patch embedding: LayerNorm -> Linear -> LayerNorm (all rows at once) ----
    xp = xp_ref[...].astype(f32)                                        # (BN, PATCH_DIM)
    xp = _layernorm(xp, pln1_g_ref[...], pln1_b_ref[...])
    xe = jnp.dot(xp, pw_ref[...], preferred_element_type=f32) + pb_ref[...]
    xe = _layernorm(xe, pln2_g_ref[...], pln2_b_ref[...])               # (BN, DIM)

    # ---- cls token + positional embedding as a mask blend (pure VPU) ----
    # patch rows: xe + pos ; cls rows: cls_token + pos[0] (xe there is garbage, killed by keep=0)
    x = xe * keep_ref[...] + add_ref[...]                               # (BN, DIM)

    bias = bias_ref[...]                                                # (BN, BN)

    # ---- transformer (depth & heads statically unrolled) ----
    for l in range(DEPTH):
        # PreNorm -> fused QKV -> per-head block-diagonal attention -> out proj -> residual
        xn = _layernorm(x, aln_g_ref[l], aln_b_ref[l])
        qkv = jnp.dot(xn, wqkv_ref[l], preferred_element_type=f32)      # (BN, 3*INNER)
        wout = wout_ref[l]                                              # (INNER_DIM, DIM)
        proj = None
        for h in range(HEADS):            # heads packed on the lane axis, static slices
            lo = h * DIM_HEAD
            qh = qkv[:, lo:lo + DIM_HEAD]
            kh = qkv[:, INNER_DIM + lo:INNER_DIM + lo + DIM_HEAD]
            vh = qkv[:, 2 * INNER_DIM + lo:2 * INNER_DIM + lo + DIM_HEAD]
            dots = jax.lax.dot_general(
                qh, kh, (((1,), (1,)), ((), ())),
                preferred_element_type=f32) * ATTN_SCALE + bias         # (BN, BN)
            dots = dots - jnp.max(dots, axis=-1, keepdims=True)
            e = jnp.exp(dots)                                           # cross-image -> 0
            p = e * pl.reciprocal(jnp.sum(e, axis=-1, keepdims=True), approx=True)
            oh = jnp.dot(p, vh, preferred_element_type=f32)             # (BN, DIM_HEAD)
            # project this head straight into the lane-dense DIM-wide output
            c = jnp.dot(oh, wout[lo:lo + DIM_HEAD, :],
                        preferred_element_type=f32)                     # (BN, DIM)
            proj = c if proj is None else proj + c
        x = x + proj + bout_ref[l]                                      # fused residual

        # PreNorm -> Linear -> GELU -> Linear -> residual (fused MLP)
        xn = _layernorm(x, fln_g_ref[l], fln_b_ref[l])
        h1 = jnp.dot(xn, w1_ref[l], preferred_element_type=f32) + b1_ref[l]
        h1 = _gelu(h1)
        x = x + jnp.dot(h1, w2_ref[l], preferred_element_type=f32) + b2_ref[l]

    # ---- cls pooling via one-hot selection matmul, final LN + head ----
    cls_rows = jnp.dot(sel_ref[...], x, preferred_element_type=f32)     # (B, DIM)
    xc = _layernorm(cls_rows, hln_g_ref[...], hln_b_ref[...])
    logits = jnp.dot(xc, hw_ref[...], preferred_element_type=f32) + hb_ref[...]
    o_ref[...] = logits.astype(o_ref.dtype)


# ------------------------------ parameters -----------------------------------
def init_params(key):
    keys = iter(jax.random.split(key, 32))

    def nrm(shape, scale=0.02):
        return (scale * jax.random.normal(next(keys), shape)).astype(jnp.float32)

    params = {
        "patch_ln1_g": jnp.ones((PATCH_DIM,), jnp.float32),
        "patch_ln1_b": jnp.zeros((PATCH_DIM,), jnp.float32),
        "patch_w": nrm((PATCH_DIM, DIM)),
        "patch_b": jnp.zeros((DIM,), jnp.float32),
        "patch_ln2_g": jnp.ones((DIM,), jnp.float32),
        "patch_ln2_b": jnp.zeros((DIM,), jnp.float32),
        "pos_embedding": nrm((1, NUM_PATCHES + 1, DIM), 1.0),
        "cls_token": nrm((1, 1, DIM), 1.0),
        "head_ln_g": jnp.ones((DIM,), jnp.float32),
        "head_ln_b": jnp.zeros((DIM,), jnp.float32),
        "head_w": nrm((DIM, NUM_CLASSES)),
        "head_b": jnp.zeros((NUM_CLASSES,), jnp.float32),
        "layers": [],
    }
    for _ in range(DEPTH):
        params["layers"].append(
            {
                "attn_ln_g": jnp.ones((DIM,), jnp.float32),
                "attn_ln_b": jnp.zeros((DIM,), jnp.float32),
                "w_qkv": nrm((DIM, 3 * INNER_DIM)),           # to_qkv has no bias
                "attn_out_w": nrm((INNER_DIM, DIM)),
                "attn_out_b": jnp.zeros((DIM,), jnp.float32),
                "ff_ln_g": jnp.ones((DIM,), jnp.float32),
                "ff_ln_b": jnp.zeros((DIM,), jnp.float32),
                "ff_w1": nrm((DIM, MLP_DIM)),
                "ff_b1": jnp.zeros((MLP_DIM,), jnp.float32),
                "ff_w2": nrm((MLP_DIM, DIM)),
                "ff_b2": jnp.zeros((DIM,), jnp.float32),
            }
        )
    return params


# ------------------------------- forward --------------------------------------
@jax.jit
def vit_forward(img, params):
    B, C, H, W = img.shape
    Hn, Wn = H // PATCH, W // PATCH
    N = Hn * Wn
    BN = B * N_TOK
    f32 = jnp.float32

    # einops 'b c (h p1) (w p2) -> b (h w) (p1 p2 c)'  — pure layout glue.
    x = img.reshape(B, C, Hn, PATCH, Wn, PATCH)
    x = jnp.transpose(x, (0, 2, 4, 3, 5, 1))          # (B, Hn, Wn, p1, p2, C)
    x = x.reshape(B, N, PATCH * PATCH * C).astype(f32)
    # Prepend a dummy zero row per image (cls slot) and flatten batch into tokens.
    x = jnp.pad(x, ((0, 0), (1, 0), (0, 0)))          # (B, N_TOK, PATCH_DIM)
    x = x.reshape(BN, PATCH_DIM)

    # --- precomputed (compile-time constant) assembly tensors ---
    pos = params["pos_embedding"][0, :N_TOK, :]                         # (N_TOK, DIM)
    cls = params["cls_token"].reshape(1, DIM)
    emb_row = jnp.concatenate([cls + pos[0:1], pos[1:]], axis=0)        # (N_TOK, DIM)
    add = jnp.tile(emb_row, (B, 1))                                     # (BN, DIM)
    keep_row = jnp.concatenate(
        [jnp.zeros((1, DIM), f32), jnp.ones((N_TOK - 1, DIM), f32)], axis=0)
    keep = jnp.tile(keep_row, (B, 1))                                   # (BN, DIM)
    bid = jnp.arange(BN) // N_TOK
    attn_bias = jnp.where(bid[:, None] == bid[None, :], 0.0, NEG_BIG).astype(f32)
    sel = (jnp.arange(BN)[None, :] ==
           (jnp.arange(B) * N_TOK)[:, None]).astype(f32)                # (B, BN)

    L = params["layers"]
    stack = lambda name: jnp.stack([lyr[name] for lyr in L], axis=0)
    stack1 = lambda name: stack(name).reshape(DEPTH, 1, -1)
    row = lambda a: a.reshape(1, -1)

    args = (
        x, keep, add, attn_bias, sel,
        row(params["patch_ln1_g"]), row(params["patch_ln1_b"]),
        params["patch_w"], row(params["patch_b"]),
        row(params["patch_ln2_g"]), row(params["patch_ln2_b"]),
        stack1("attn_ln_g"), stack1("attn_ln_b"),
        stack("w_qkv"),
        stack("attn_out_w"), stack1("attn_out_b"),
        stack1("ff_ln_g"), stack1("ff_ln_b"),
        stack("ff_w1"), stack1("ff_b1"),
        stack("ff_w2"), stack1("ff_b2"),
        row(params["head_ln_g"]), row(params["head_ln_b"]),
        params["head_w"], row(params["head_b"]),
    )

    # Single fused pallas_call: every operand is a whole-array VMEM block.
    # TODO(synk): if batch grows large, add a grid=(B_blocks,) axis with
    # dimension_semantics=("parallel",) to split images across v7x's two cores.
    return pl.pallas_call(
        vit_kernel,
        out_shape=jax.ShapeDtypeStruct((B, NUM_CLASSES), jnp.float32),
    )(*args)

# TODO(synk): Dropout layers (p=0.0) and the debug print() calls of the PyTorch
# module are identity / no-ops at inference and are intentionally omitted.


# --------------------------------- main ---------------------------------------
if __name__ == "__main__":
    key = jax.random.PRNGKey(0)
    k_params, k_img = jax.random.split(key)
    params = init_params(k_params)
    img = jax.random.normal(
        k_img, (2, CHANNELS, IMAGE_SIZE, IMAGE_SIZE), dtype=jnp.float32
    )

    logits = vit_forward(img, params)
    logits = jax.block_until_ready(logits)
    assert logits.shape == (2, NUM_CLASSES)
    assert bool(jnp.all(jnp.isfinite(logits)))
    print("KERNEL_OK")
</pallas_src>

<mosaic_0001>
module attributes {stable_mosaic.version = 11 : i64} {
  func.func @vit_kernel(%arg0: memref<34x64xf32, #tpu.memory_space<vmem>>, %arg1: memref<34x32xf32, #tpu.memory_space<vmem>>, %arg2: memref<34x32xf32, #tpu.memory_space<vmem>>, %arg3: memref<34x34xf32, #tpu.memory_space<vmem>>, %arg4: memref<2x34xf32, #tpu.memory_space<vmem>>, %arg5: memref<1x64xf32, #tpu.memory_space<vmem>>, %arg6: memref<1x64xf32, #tpu.memory_space<vmem>>, %arg7: memref<64x32xf32, #tpu.memory_space<vmem>>, %arg8: memref<1x32xf32, #tpu.memory_space<vmem>>, %arg9: memref<1x32xf32, #tpu.memory_space<vmem>>, %arg10: memref<1x32xf32, #tpu.memory_space<vmem>>, %arg11: memref<2x1x32xf32, #tpu.memory_space<vmem>>, %arg12: memref<2x1x32xf32, #tpu.memory_space<vmem>>, %arg13: memref<2x32x96xf32, #tpu.memory_space<vmem>>, %arg14: memref<2x32x32xf32, #tpu.memory_space<vmem>>, %arg15: memref<2x1x32xf32, #tpu.memory_space<vmem>>, %arg16: memref<2x1x32xf32, #tpu.memory_space<vmem>>, %arg17: memref<2x1x32xf32, #tpu.memory_space<vmem>>, %arg18: memref<2x32x64xf32, #tpu.memory_space<vmem>>, %arg19: memref<2x1x64xf32, #tpu.memory_space<vmem>>, %arg20: memref<2x64x32xf32, #tpu.memory_space<vmem>>, %arg21: memref<2x1x32xf32, #tpu.memory_space<vmem>>, %arg22: memref<1x32xf32, #tpu.memory_space<vmem>>, %arg23: memref<1x32xf32, #tpu.memory_space<vmem>>, %arg24: memref<32x10xf32, #tpu.memory_space<vmem>>, %arg25: memref<1x10xf32, #tpu.memory_space<vmem>>, %arg26: memref<2x10xf32, #tpu.memory_space<vmem>>) attributes {dimension_semantics = [], scalar_prefetch = 0 : i64, scratch_operands = 0 : i64, tpu.core_type = #tpu.core_type<tc>} {
    %c0 = arith.constant 0 : index
    %c0_0 = arith.constant 0 : index
    %0 = vector.load %arg0[%c0, %c0_0] : memref<34x64xf32, #tpu.memory_space<vmem>>, vector<34x64xf32>
    %c0_1 = arith.constant 0 : index
    %c0_2 = arith.constant 0 : index
    %1 = vector.load %arg5[%c0_1, %c0_2] : memref<1x64xf32, #tpu.memory_space<vmem>>, vector<1x64xf32>
    %c0_3 = arith.constant 0 : index
    %c0_4 = arith.constant 0 : index
    %2 = vector.load %arg6[%c0_3, %c0_4] : memref<1x64xf32, #tpu.memory_space<vmem>>, vector<1x64xf32>
    %cst = arith.constant dense<0.000000e+00> : vector<34xf32>
    %3 = vector.multi_reduction <add>, %0, %cst [1] : vector<34x64xf32> to vector<34xf32>
    %4 = vector.shape_cast %3 : vector<34xf32> to vector<34x1xf32>
    %cst_5 = arith.constant 6.400000e+01 : f32
    %5 = vector.broadcast %cst_5 : f32 to vector<34x1xf32>
    %6 = arith.divf %4, %5 : vector<34x1xf32>
    %7 = vector.broadcast %6 : vector<34x1xf32> to vector<34x64xf32>
    %8 = arith.subf %0, %7 : vector<34x64xf32>
    %9 = arith.mulf %8, %8 : vector<34x64xf32>
    %cst_6 = arith.constant dense<0.000000e+00> : vector<34xf32>
    %10 = vector.multi_reduction <add>, %9, %cst_6 [1] : vector<34x64xf32> to vector<34xf32>
    %11 = vector.shape_cast %10 : vector<34xf32> to vector<34x1xf32>
    %cst_7 = arith.constant 6.400000e+01 : f32
    %12 = vector.broadcast %cst_7 : f32 to vector<34x1xf32>
    %13 = arith.divf %11, %12 : vector<34x1xf32>
    %cst_8 = arith.constant 9.99999974E-6 : f32
    %14 = vector.broadcast %cst_8 : f32 to vector<34x1xf32>
    %15 = arith.addf %13, %14 : vector<34x1xf32>
    %16 = math.rsqrt %15 : vector<34x1xf32>
    %17 = vector.broadcast %16 : vector<34x1xf32> to vector<34x64xf32>
    %18 = arith.mulf %8, %17 : vector<34x64xf32>
    %19 = vector.broadcast %1 : vector<1x64xf32> to vector<34x64xf32>
    %20 = arith.mulf %18, %19 : vector<34x64xf32>
    %21 = vector.broadcast %2 : vector<1x64xf32> to vector<34x64xf32>
    %22 = arith.addf %20, %21 : vector<34x64xf32>
    %c0_9 = arith.constant 0 : index
    %c0_10 = arith.constant 0 : index
    %23 = vector.load %arg7[%c0_9, %c0_10] : memref<64x32xf32, #tpu.memory_space<vmem>>, vector<64x32xf32>
    %cst_11 = arith.constant dense<0.000000e+00> : vector<34x32xf32>
    %24 = tpu.matmul %22, %23, %cst_11 {dimension_numbers = #tpu.dot_dimension_numbers<[1], [0], [0], [1], [0, 0, 1, 1], [], []>} : vector<34x64xf32>, vector<64x32xf32>, vector<34x32xf32> -> vector<34x32xf32>
    %c0_12 = arith.constant 0 : index
    %c0_13 = arith.constant 0 : index
    %25 = vector.load %arg8[%c0_12, %c0_13] : memref<1x32xf32, #tpu.memory_space<vmem>>, vector<1x32xf32>
    %26 = vector.broadcast %25 : vector<1x32xf32> to vector<34x32xf32>
    %27 = arith.addf %24, %26 : vector<34x32xf32>
    %c0_14 = arith.constant 0 : index
    %c0_15 = arith.constant 0 : index
    %28 = vector.load %arg9[%c0_14, %c0_15] : memref<1x32xf32, #tpu.memory_space<vmem>>, vector<1x32xf32>
    %c0_16 = arith.constant 0 : index
    %c0_17 = arith.constant 0 : index
    %29 = vector.load %arg10[%c0_16, %c0_17] : memref<1x32xf32, #tpu.memory_space<vmem>>, vector<1x32xf32>
    %cst_18 = arith.constant dense<0.000000e+00> : vector<34xf32>
    %30 = vector.multi_reduction <add>, %27, %cst_18 [1] : vector<34x32xf32> to vector<34xf32>
    %31 = vector.shape_cast %30 : vector<34xf32> to vector<34x1xf32>
    %cst_19 = arith.constant 3.200000e+01 : f32
    %32 = vector.broadcast %cst_19 : f32 to vector<34x1xf32>
    %33 = arith.divf %31, %32 : vector<34x1xf32>
    %34 = vector.broadcast %33 : vector<34x1xf32> to vector<34x32xf32>
    %35 = arith.subf %27, %34 : vector<34x32xf32>
    %36 = arith.mulf %35, %35 : vector<34x32xf32>
    %cst_20 = arith.constant dense<0.000000e+00> : vector<34xf32>
    %37 = vector.multi_reduction <add>, %36, %cst_20 [1] : vector<34x32xf32> to vector<34xf32>
    %38 = vector.shape_cast %37 : vector<34xf32> to vector<34x1xf32>
    %cst_21 = arith.constant 3.200000e+01 : f32
    %39 = vector.broadcast %cst_21 : f32 to vector<34x1xf32>
    %40 = arith.divf %38, %39 : vector<34x1xf32>
    %cst_22 = arith.constant 9.99999974E-6 : f32
    %41 = vector.broadcast %cst_22 : f32 to vector<34x1xf32>
    %42 = arith.addf %40, %41 : vector<34x1xf32>
    %43 = math.rsqrt %42 : vector<34x1xf32>
    %44 = vector.broadcast %43 : vector<34x1xf32> to vector<34x32xf32>
    %45 = arith.mulf %35, %44 : vector<34x32xf32>
    %46 = vector.broadcast %28 : vector<1x32xf32> to vector<34x32xf32>
    %47 = arith.mulf %45, %46 : vector<34x32xf32>
    %48 = vector.broadcast %29 : vector<1x32xf32> to vector<34x32xf32>
    %49 = arith.addf %47, %48 : vector<34x32xf32>
    %c0_23 = arith.constant 0 : index
    %c0_24 = arith.constant 0 : index
    %50 = vector.load %arg1[%c0_23, %c0_24] : memref<34x32xf32, #tpu.memory_space<vmem>>, vector<34x32xf32>
    %51 = arith.mulf %49, %50 : vector<34x32xf32>
    %c0_25 = arith.constant 0 : index
    %c0_26 = arith.constant 0 : index
    %52 = vector.load %arg2[%c0_25, %c0_26] : memref<34x32xf32, #tpu.memory_space<vmem>>, vector<34x32xf32>
    %53 = arith.addf %51, %52 : vector<34x32xf32>
    %c0_27 = arith.constant 0 : index
    %c0_28 = arith.constant 0 : index
    %54 = vector.load %arg3[%c0_27, %c0_28] : memref<34x34xf32, #tpu.memory_space<vmem>>, vector<34x34xf32>
    %c0_29 = arith.constant 0 : index
    %c0_30 = arith.constant 0 : index
    %c0_31 = arith.constant 0 : index
    %55 = vector.load %arg11[%c0_29, %c0_30, %c0_31] : memref<2x1x32xf32, #tpu.memory_space<vmem>>, vector<1x1x32xf32>
    %56 = vector.shape_cast %55 : vector<1x1x32xf32> to vector<1x32xf32>
    %c0_32 = arith.constant 0 : index
    %c0_33 = arith.constant 0 : index
    %c0_34 = arith.constant 0 : index
    %57 = vector.load %arg12[%c0_32, %c0_33, %c0_34] : memref<2x1x32xf32, #tpu.memory_space<vmem>>, vector<1x1x32xf32>
    %58 = vector.shape_cast %57 : vector<1x1x32xf32> to vector<1x32xf32>
    %cst_35 = arith.constant dense<0.000000e+00> : vector<34xf32>
    %59 = vector.multi_reduction <add>, %53, %cst_35 [1] : vector<34x32xf32> to vector<34xf32>
    %60 = vector.shape_cast %59 : vector<34xf32> to vector<34x1xf32>
    %cst_36 = arith.constant 3.200000e+01 : f32
    %61 = vector.broadcast %cst_36 : f32 to vector<34x1xf32>
    %62 = arith.divf %60, %61 : vector<34x1xf32>
    %63 = vector.broadcast %62 : vector<34x1xf32> to vector<34x32xf32>
    %64 = arith.subf %53, %63 : vector<34x32xf32>
    %65 = arith.mulf %64, %64 : vector<34x32xf32>
    %cst_37 = arith.constant dense<0.000000e+00> : vector<34xf32>
    %66 = vector.multi_reduction <add>, %65, %cst_37 [1] : vector<34x32xf32> to vector<34xf32>
    %67 = vector.shape_cast %66 : vector<34xf32> to vector<34x1xf32>
    %cst_38 = arith.constant 3.200000e+01 : f32
    %68 = vector.broadcast %cst_38 : f32 to vector<34x1xf32>
    %69 = arith.divf %67, %68 : vector<34x1xf32>
    %cst_39 = arith.constant 9.99999974E-6 : f32
    %70 = vector.broadcast %cst_39 : f32 to vector<34x1xf32>
    %71 = arith.addf %69, %70 : vector<34x1xf32>
    %72 = math.rsqrt %71 : vector<34x1xf32>
    %73 = vector.broadcast %72 : vector<34x1xf32> to vector<34x32xf32>
    %74 = arith.mulf %64, %73 : vector<34x32xf32>
    %75 = vector.broadcast %56 : vector<1x32xf32> to vector<34x32xf32>
    %76 = arith.mulf %74, %75 : vector<34x32xf32>
    %77 = vector.broadcast %58 : vector<1x32xf32> to vector<34x32xf32>
    %78 = arith.addf %76, %77 : vector<34x32xf32>
    %c0_40 = arith.constant 0 : index
    %c0_41 = arith.constant 0 : index
    %c0_42 = arith.constant 0 : index
    %79 = vector.load %arg13[%c0_40, %c0_41, %c0_42] : memref<2x32x96xf32, #tpu.memory_space<vmem>>, vector<1x32x96xf32>
    %80 = vector.shape_cast %79 : vector<1x32x96xf32> to vector<32x96xf32>
    %cst_43 = arith.constant dense<0.000000e+00> : vector<34x96xf32>
    %81 = tpu.matmul %78, %80, %cst_43 {dimension_numbers = #tpu.dot_dimension_numbers<[1], [0], [0], [1], [0, 0, 1, 1], [], []>} : vector<34x32xf32>, vector<32x96xf32>, vector<34x96xf32> -> vector<34x96xf32>
    %c0_44 = arith.constant 0 : index
    %c0_45 = arith.constant 0 : index
    %c0_46 = arith.constant 0 : index
    %82 = vector.load %arg14[%c0_44, %c0_45, %c0_46] : memref<2x32x32xf32, #tpu.memory_space<vmem>>, vector<1x32x32xf32>
    %83 = vector.shape_cast %82 : vector<1x32x32xf32> to vector<32x32xf32>
    %84 = vector.extract_strided_slice %81 {offsets = [0, 0], sizes = [34, 8], strides = [1, 1]} : vector<34x96xf32> to vector<34x8xf32>
    %85 = vector.extract_strided_slice %81 {offsets = [0, 32], sizes = [34, 8], strides = [1, 1]} : vector<34x96xf32> to vector<34x8xf32>
    %86 = vector.extract_strided_slice %81 {offsets = [0, 64], sizes = [34, 8], strides = [1, 1]} : vector<34x96xf32> to vector<34x8xf32>
    %cst_47 = arith.constant dense<0.000000e+00> : vector<34x34xf32>
    %87 = tpu.matmul %84, %85, %cst_47 {dimension_numbers = #tpu.dot_dimension_numbers<[1], [1], [0], [0], [0, 0, 1, 0], [], []>} : vector<34x8xf32>, vector<34x8xf32>, vector<34x34xf32> -> vector<34x34xf32>
    %cst_48 = arith.constant 0.353553385 : f32
    %88 = vector.broadcast %cst_48 : f32 to vector<34x34xf32>
    %89 = arith.mulf %87, %88 : vector<34x34xf32>
    %90 = arith.addf %89, %54 : vector<34x34xf32>
    %cst_49 = arith.constant dense<0xFF800000> : vector<34xf32>
    %91 = vector.multi_reduction <maximumf>, %90, %cst_49 [1] : vector<34x34xf32> to vector<34xf32>
    %92 = vector.shape_cast %91 : vector<34xf32> to vector<34x1xf32>
    %93 = vector.broadcast %92 : vector<34x1xf32> to vector<34x34xf32>
    %94 = arith.subf %90, %93 : vector<34x34xf32>
    %95 = math.exp %94 : vector<34x34xf32>
    %cst_50 = arith.constant dense<0.000000e+00> : vector<34xf32>
    %96 = vector.multi_reduction <add>, %95, %cst_50 [1] : vector<34x34xf32> to vector<34xf32>
    %97 = vector.shape_cast %96 : vector<34xf32> to vector<34x1xf32>
    %98 = tpu.reciprocal %97 {approx = true} : vector<34x1xf32> -> vector<34x1xf32>
    %99 = vector.broadcast %98 : vector<34x1xf32> to vector<34x34xf32>
    %100 = arith.mulf %95, %99 : vector<34x34xf32>
    %cst_51 = arith.constant dense<0.000000e+00> : vector<34x8xf32>
    %101 = tpu.matmul %100, %86, %cst_51 {dimension_numbers = #tpu.dot_dimension_numbers<[1], [0], [0], [1], [0, 0, 1, 1], [], []>} : vector<34x34xf32>, vector<34x8xf32>, vector<34x8xf32> -> vector<34x8xf32>
    %102 = vector.extract_strided_slice %83 {offsets = [0, 0], sizes = [8, 32], strides = [1, 1]} : vector<32x32xf32> to vector<8x32xf32>
    %cst_52 = arith.constant dense<0.000000e+00> : vector<34x32xf32>
    %103 = tpu.matmul %101, %102, %cst_52 {dimension_numbers = #tpu.dot_dimension_numbers<[1], [0], [0], [1], [0, 0, 1, 1], [], []>} : vector<34x8xf32>, vector<8x32xf32>, vector<34x32xf32> -> vector<34x32xf32>
    %104 = vector.extract_strided_slice %81 {offsets = [0, 8], sizes = [34, 8], strides = [1, 1]} : vector<34x96xf32> to vector<34x8xf32>
    %105 = vector.extract_strided_slice %81 {offsets = [0, 40], sizes = [34, 8], strides = [1, 1]} : vector<34x96xf32> to vector<34x8xf32>
    %106 = vector.extract_strided_slice %81 {offsets = [0, 72], sizes = [34, 8], strides = [1, 1]} : vector<34x96xf32> to vector<34x8xf32>
    %cst_53 = arith.constant dense<0.000000e+00> : vector<34x34xf32>
    %107 = tpu.matmul %104, %105, %cst_53 {dimension_numbers = #tpu.dot_dimension_numbers<[1], [1], [0], [0], [0, 0, 1, 0], [], []>} : vector<34x8xf32>, vector<34x8xf32>, vector<34x34xf32> -> vector<34x34xf32>
    %cst_54 = arith.constant 0.353553385 : f32
    %108 = vector.broadcast %cst_54 : f32 to vector<34x34xf32>
    %109 = arith.mulf %107, %108 : vector<34x34xf32>
    %110 = arith.addf %109, %54 : vector<34x34xf32>
    %cst_55 = arith.constant dense<0xFF800000> : vector<34xf32>
    %111 = vector.multi_reduction <maximumf>, %110, %cst_55 [1] : vector<34x34xf32> to vector<34xf32>
    %112 = vector.shape_cast %111 : vector<34xf32> to vector<34x1xf32>
    %113 = vector.broadcast %112 : vector<34x1xf32> to vector<34x34xf32>
    %114 = arith.subf %110, %113 : vector<34x34xf32>
    %115 = math.exp %114 : vector<34x34xf32>
    %cst_56 = arith.constant dense<0.000000e+00> : vector<34xf32>
    %116 = vector.multi_reduction <add>, %115, %cst_56 [1] : vector<34x34xf32> to vector<34xf32>
    %117 = vector.shape_cast %116 : vector<34xf32> to vector<34x1xf32>
    %118 = tpu.reciprocal %117 {approx = true} : vector<34x1xf32> -> vector<34x1xf32>
    %119 = vector.broadcast %118 : vector<34x1xf32> to vector<34x34xf32>
    %120 = arith.mulf %115, %119 : vector<34x34xf32>
    %cst_57 = arith.constant dense<0.000000e+00> : vector<34x8xf32>
    %121 = tpu.matmul %120, %106, %cst_57 {dimension_numbers = #tpu.dot_dimension_numbers<[1], [0], [0], [1], [0, 0, 1, 1], [], []>} : vector<34x34xf32>, vector<34x8xf32>, vector<34x8xf32> -> vector<34x8xf32>
    %122 = vector.extract_strided_slice %83 {offsets = [8, 0], sizes = [8, 32], strides = [1, 1]} : vector<32x32xf32> to vector<8x32xf32>
    %cst_58 = arith.constant dense<0.000000e+00> : vector<34x32xf32>
    %123 = tpu.matmul %121, %122, %cst_58 {dimension_numbers = #tpu.dot_dimension_numbers<[1], [0], [0], [1], [0, 0, 1, 1], [], []>} : vector<34x8xf32>, vector<8x32xf32>, vector<34x32xf32> -> vector<34x32xf32>
    %124 = arith.addf %103, %123 : vector<34x32xf32>
    %125 = vector.extract_strided_slice %81 {offsets = [0, 16], sizes = [34, 8], strides = [1, 1]} : vector<34x96xf32> to vector<34x8xf32>
    %126 = vector.extract_strided_slice %81 {offsets = [0, 48], sizes = [34, 8], strides = [1, 1]} : vector<34x96xf32> to vector<34x8xf32>
    %127 = vector.extract_strided_slice %81 {offsets = [0, 80], sizes = [34, 8], strides = [1, 1]} : vector<34x96xf32> to vector<34x8xf32>
    %cst_59 = arith.constant dense<0.000000e+00> : vector<34x34xf32>
    %128 = tpu.matmul %125, %126, %cst_59 {dimension_numbers = #tpu.dot_dimension_numbers<[1], [1], [0], [0], [0, 0, 1, 0], [], []>} : vector<34x8xf32>, vector<34x8xf32>, vector<34x34xf32> -> vector<34x34xf32>
    %cst_60 = arith.constant 0.353553385 : f32
    %129 = vector.broadcast %cst_60 : f32 to vector<34x34xf32>
    %130 = arith.mulf %128, %129 : vector<34x34xf32>
    %131 = arith.addf %130, %54 : vector<34x34xf32>
    %cst_61 = arith.constant dense<0xFF800000> : vector<34xf32>
    %132 = vector.multi_reduction <maximumf>, %131, %cst_61 [1] : vector<34x34xf32> to vector<34xf32>
    %133 = vector.shape_cast %132 : vector<34xf32> to vector<34x1xf32>
    %134 = vector.broadcast %133 : vector<34x1xf32> to vector<34x34xf32>
    %135 = arith.subf %131, %134 : vector<34x34xf32>
    %136 = math.exp %135 : vector<34x34xf32>
    %cst_62 = arith.constant dense<0.000000e+00> : vector<34xf32>
    %137 = vector.multi_reduction <add>, %136, %cst_62 [1] : vector<34x34xf32> to vector<34xf32>
    %138 = vector.shape_cast %137 : vector<34xf32> to vector<34x1xf32>
    %139 = tpu.reciprocal %138 {approx = true} : vector<34x1xf32> -> vector<34x1xf32>
    %140 = vector.broadcast %139 : vector<34x1xf32> to vector<34x34xf32>
    %141 = arith.mulf %136, %140 : vector<34x34xf32>
    %cst_63 = arith.constant dense<0.000000e+00> : vector<34x8xf32>
    %142 = tpu.matmul %141, %127, %cst_63 {dimension_numbers = #tpu.dot_dimension_numbers<[1], [0], [0], [1], [0, 0, 1, 1], [], []>} : vector<34x34xf32>, vector<34x8xf32>, vector<34x8xf32> -> vector<34x8xf32>
    %143 = vector.extract_strided_slice %83 {offsets = [16, 0], sizes = [8, 32], strides = [1, 1]} : vector<32x32xf32> to vector<8x32xf32>
    %cst_64 = arith.constant dense<0.000000e+00> : vector<34x32xf32>
    %144 = tpu.matmul %142, %143, %cst_64 {dimension_numbers = #tpu.dot_dimension_numbers<[1], [0], [0], [1], [0, 0, 1, 1], [], []>} : vector<34x8xf32>, vector<8x32xf32>, vector<34x32xf32> -> vector<34x32xf32>
    %145 = arith.addf %124, %144 : vector<34x32xf32>
    %146 = vector.extract_strided_slice %81 {offsets = [0, 24], sizes = [34, 8], strides = [1, 1]} : vector<34x96xf32> to vector<34x8xf32>
    %147 = vector.extract_strided_slice %81 {offsets = [0, 56], sizes = [34, 8], strides = [1, 1]} : vector<34x96xf32> to vector<34x8xf32>
    %148 = vector.extract_strided_slice %81 {offsets = [0, 88], sizes = [34, 8], strides = [1, 1]} : vector<34x96xf32> to vector<34x8xf32>
    %cst_65 = arith.constant dense<0.000000e+00> : vector<34x34xf32>
    %149 = tpu.matmul %146, %147, %cst_65 {dimension_numbers = #tpu.dot_dimension_numbers<[1], [1], [0], [0], [0, 0, 1, 0], [], []>} : vector<34x8xf32>, vector<34x8xf32>, vector<34x34xf32> -> vector<34x34xf32>
    %cst_66 = arith.constant 0.353553385 : f32
    %150 = vector.broadcast %cst_66 : f32 to vector<34x34xf32>
    %151 = arith.mulf %149, %150 : vector<34x34xf32>
    %152 = arith.addf %151, %54 : vector<34x34xf32>
    %cst_67 = arith.constant dense<0xFF800000> : vector<34xf32>
    %153 = vector.multi_reduction <maximumf>, %152, %cst_67 [1] : vector<34x34xf32> to vector<34xf32>
    %154 = vector.shape_cast %153 : vector<34xf32> to vector<34x1xf32>
    %155 = vector.broadcast %154 : vector<34x1xf32> to vector<34x34xf32>
    %156 = arith.subf %152, %155 : vector<34x34xf32>
    %157 = math.exp %156 : vector<34x34xf32>
    %cst_68 = arith.constant dense<0.000000e+00> : vector<34xf32>
    %158 = vector.multi_reduction <add>, %157, %cst_68 [1] : vector<34x34xf32> to vector<34xf32>
    %159 = vector.shape_cast %158 : vector<34xf32> to vector<34x1xf32>
    %160 = tpu.reciprocal %159 {approx = true} : vector<34x1xf32> -> vector<34x1xf32>
    %161 = vector.broadcast %160 : vector<34x1xf32> to vector<34x34xf32>
    %162 = arith.mulf %157, %161 : vector<34x34xf32>
    %cst_69 = arith.constant dense<0.000000e+00> : vector<34x8xf32>
    %163 = tpu.matmul %162, %148, %cst_69 {dimension_numbers = #tpu.dot_dimension_numbers<[1], [0], [0], [1], [0, 0, 1, 1], [], []>} : vector<34x34xf32>, vector<34x8xf32>, vector<34x8xf32> -> vector<34x8xf32>
    %164 = vector.extract_strided_slice %83 {offsets = [24, 0], sizes = [8, 32], strides = [1, 1]} : vector<32x32xf32> to vector<8x32xf32>
    %cst_70 = arith.constant dense<0.000000e+00> : vector<34x32xf32>
    %165 = tpu.matmul %163, %164, %cst_70 {dimension_numbers = #tpu.dot_dimension_numbers<[1], [0], [0], [1], [0, 0, 1, 1], [], []>} : vector<34x8xf32>, vector<8x32xf32>, vector<34x32xf32> -> vector<34x32xf32>
    %166 = arith.addf %145, %165 : vector<34x32xf32>
    %167 = arith.addf %53, %166 : vector<34x32xf32>
    %c0_71 = arith.constant 0 : index
    %c0_72 = arith.constant 0 : index
    %c0_73 = arith.constant 0 : index
    %168 = vector.load %arg15[%c0_71, %c0_72, %c0_73] : memref<2x1x32xf32, #tpu.memory_space<vmem>>, vector<1x1x32xf32>
    %169 = vector.shape_cast %168 : vector<1x1x32xf32> to vector<1x32xf32>
    %170 = vector.broadcast %169 : vector<1x32xf32> to vector<34x32xf32>
    %171 = arith.addf %167, %170 : vector<34x32xf32>
    %c0_74 = arith.constant 0 : index
    %c0_75 = arith.constant 0 : index
    %c0_76 = arith.constant 0 : index
    %172 = vector.load %arg16[%c0_74, %c0_75, %c0_76] : memref<2x1x32xf32, #tpu.memory_space<vmem>>, vector<1x1x32xf32>
    %173 = vector.shape_cast %172 : vector<1x1x32xf32> to vector<1x32xf32>
    %c0_77 = arith.constant 0 : index
    %c0_78 = arith.constant 0 : index
    %c0_79 = arith.constant 0 : index
    %174 = vector.load %arg17[%c0_77, %c0_78, %c0_79] : memref<2x1x32xf32, #tpu.memory_space<vmem>>, vector<1x1x32xf32>
    %175 = vector.shape_cast %174 : vector<1x1x32xf32> to vector<1x32xf32>
    %cst_80 = arith.constant dense<0.000000e+00> : vector<34xf32>
    %176 = vector.multi_reduction <add>, %171, %cst_80 [1] : vector<34x32xf32> to vector<34xf32>
    %177 = vector.shape_cast %176 : vector<34xf32> to vector<34x1xf32>
    %cst_81 = arith.constant 3.200000e+01 : f32
    %178 = vector.broadcast %cst_81 : f32 to vector<34x1xf32>
    %179 = arith.divf %177, %178 : vector<34x1xf32>
    %180 = vector.broadcast %179 : vector<34x1xf32> to vector<34x32xf32>
    %181 = arith.subf %171, %180 : vector<34x32xf32>
    %182 = arith.mulf %181, %181 : vector<34x32xf32>
    %cst_82 = arith.constant dense<0.000000e+00> : vector<34xf32>
    %183 = vector.multi_reduction <add>, %182, %cst_82 [1] : vector<34x32xf32> to vector<34xf32>
    %184 = vector.shape_cast %183 : vector<34xf32> to vector<34x1xf32>
    %cst_83 = arith.constant 3.200000e+01 : f32
    %185 = vector.broadcast %cst_83 : f32 to vector<34x1xf32>
    %186 = arith.divf %184, %185 : vector<34x1xf32>
    %cst_84 = arith.constant 9.99999974E-6 : f32
    %187 = vector.broadcast %cst_84 : f32 to vector<34x1xf32>
    %188 = arith.addf %186, %187 : vector<34x1xf32>
    %189 = math.rsqrt %188 : vector<34x1xf32>
    %190 = vector.broadcast %189 : vector<34x1xf32> to vector<34x32xf32>
    %191 = arith.mulf %181, %190 : vector<34x32xf32>
    %192 = vector.broadcast %173 : vector<1x32xf32> to vector<34x32xf32>
    %193 = arith.mulf %191, %192 : vector<34x32xf32>
    %194 = vector.broadcast %175 : vector<1x32xf32> to vector<34x32xf32>
    %195 = arith.addf %193, %194 : vector<34x32xf32>
    %c0_85 = arith.constant 0 : index
    %c0_86 = arith.constant 0 : index
    %c0_87 = arith.constant 0 : index
    %196 = vector.load %arg18[%c0_85, %c0_86, %c0_87] : memref<2x32x64xf32, #tpu.memory_space<vmem>>, vector<1x32x64xf32>
    %197 = vector.shape_cast %196 : vector<1x32x64xf32> to vector<32x64xf32>
    %cst_88 = arith.constant dense<0.000000e+00> : vector<34x64xf32>
    %198 = tpu.matmul %195, %197, %cst_88 {dimension_numbers = #tpu.dot_dimension_numbers<[1], [0], [0], [1], [0, 0, 1, 1], [], []>} : vector<34x32xf32>, vector<32x64xf32>, vector<34x64xf32> -> vector<34x64xf32>
    %c0_89 = arith.constant 0 : index
    %c0_90 = arith.constant 0 : index
    %c0_91 = arith.constant 0 : index
    %199 = vector.load %arg19[%c0_89, %c0_90, %c0_91] : memref<2x1x64xf32, #tpu.memory_space<vmem>>, vector<1x1x64xf32>
    %200 = vector.shape_cast %199 : vector<1x1x64xf32> to vector<1x64xf32>
    %201 = vector.broadcast %200 : vector<1x64xf32> to vector<34x64xf32>
    %202 = arith.addf %198, %201 : vector<34x64xf32>
    %cst_92 = arith.constant 5.000000e-01 : f32
    %203 = vector.broadcast %cst_92 : f32 to vector<34x64xf32>
    %204 = arith.mulf %203, %202 : vector<34x64xf32>
    %cst_93 = arith.constant 0.707106769 : f32
    %205 = vector.broadcast %cst_93 : f32 to vector<34x64xf32>
    %206 = arith.mulf %202, %205 : vector<34x64xf32>
    %207 = math.erf %206 : vector<34x64xf32>
    %cst_94 = arith.constant 1.000000e+00 : f32
    %208 = vector.broadcast %cst_94 : f32 to vector<34x64xf32>
    %209 = arith.addf %208, %207 : vector<34x64xf32>
    %210 = arith.mulf %204, %209 : vector<34x64xf32>
    %c0_95 = arith.constant 0 : index
    %c0_96 = arith.constant 0 : index
    %c0_97 = arith.constant 0 : index
    %211 = vector.load %arg20[%c0_95, %c0_96, %c0_97] : memref<2x64x32xf32, #tpu.memory_space<vmem>>, vector<1x64x32xf32>
    %212 = vector.shape_cast %211 : vector<1x64x32xf32> to vector<64x32xf32>
    %cst_98 = arith.constant dense<0.000000e+00> : vector<34x32xf32>
    %213 = tpu.matmul %210, %212, %cst_98 {dimension_numbers = #tpu.dot_dimension_numbers<[1], [0], [0], [1], [0, 0, 1, 1], [], []>} : vector<34x64xf32>, vector<64x32xf32>, vector<34x32xf32> -> vector<34x32xf32>
    %214 = arith.addf %171, %213 : vector<34x32xf32>
    %c0_99 = arith.constant 0 : index
    %c0_100 = arith.constant 0 : index
    %c0_101 = arith.constant 0 : index
    %215 = vector.load %arg21[%c0_99, %c0_100, %c0_101] : memref<2x1x32xf32, #tpu.memory_space<vmem>>, vector<1x1x32xf32>
    %216 = vector.shape_cast %215 : vector<1x1x32xf32> to vector<1x32xf32>
    %217 = vector.broadcast %216 : vector<1x32xf32> to vector<34x32xf32>
    %218 = arith.addf %214, %217 : vector<34x32xf32>
    %c1 = arith.constant 1 : index
    %c0_102 = arith.constant 0 : index
    %c0_103 = arith.constant 0 : index
    %219 = vector.load %arg11[%c1, %c0_102, %c0_103] : memref<2x1x32xf32, #tpu.memory_space<vmem>>, vector<1x1x32xf32>
    %220 = vector.shape_cast %219 : vector<1x1x32xf32> to vector<1x32xf32>
    %c1_104 = arith.constant 1 : index
    %c0_105 = arith.constant 0 : index
    %c0_106 = arith.constant 0 : index
    %221 = vector.load %arg12[%c1_104, %c0_105, %c0_106] : memref<2x1x32xf32, #tpu.memory_space<vmem>>, vector<1x1x32xf32>
    %222 = vector.shape_cast %221 : vector<1x1x32xf32> to vector<1x32xf32>
    %cst_107 = arith.constant dense<0.000000e+00> : vector<34xf32>
    %223 = vector.multi_reduction <add>, %218, %cst_107 [1] : vector<34x32xf32> to vector<34xf32>
    %224 = vector.shape_cast %223 : vector<34xf32> to vector<34x1xf32>
    %cst_108 = arith.constant 3.200000e+01 : f32
    %225 = vector.broadcast %cst_108 : f32 to vector<34x1xf32>
    %226 = arith.divf %224, %225 : vector<34x1xf32>
    %227 = vector.broadcast %226 : vector<34x1xf32> to vector<34x32xf32>
    %228 = arith.subf %218, %227 : vector<34x32xf32>
    %229 = arith.mulf %228, %228 : vector<34x32xf32>
    %cst_109 = arith.constant dense<0.000000e+00> : vector<34xf32>
    %230 = vector.multi_reduction <add>, %229, %cst_109 [1] : vector<34x32xf32> to vector<34xf32>
    %231 = vector.shape_cast %230 : vector<34xf32> to vector<34x1xf32>
    %cst_110 = arith.constant 3.200000e+01 : f32
    %232 = vector.broadcast %cst_110 : f32 to vector<34x1xf32>
    %233 = arith.divf %231, %232 : vector<34x1xf32>
    %cst_111 = arith.constant 9.99999974E-6 : f32
    %234 = vector.broadcast %cst_111 : f32 to vector<34x1xf32>
    %235 = arith.addf %233, %234 : vector<34x1xf32>
    %236 = math.rsqrt %235 : vector<34x1xf32>
    %237 = vector.broadcast %236 : vector<34x1xf32> to vector<34x32xf32>
    %238 = arith.mulf %228, %237 : vector<34x32xf32>
    %239 = vector.broadcast %220 : vector<1x32xf32> to vector<34x32xf32>
    %240 = arith.mulf %238, %239 : vector<34x32xf32>
    %241 = vector.broadcast %222 : vector<1x32xf32> to vector<34x32xf32>
    %242 = arith.addf %240, %241 : vector<34x32xf32>
    %c1_112 = arith.constant 1 : index
    %c0_113 = arith.constant 0 : index
    %c0_114 = arith.constant 0 : index
    %243 = vector.load %arg13[%c1_112, %c0_113, %c0_114] : memref<2x32x96xf32, #tpu.memory_space<vmem>>, vector<1x32x96xf32>
    %244 = vector.shape_cast %243 : vector<1x32x96xf32> to vector<32x96xf32>
    %cst_115 = arith.constant dense<0.000000e+00> : vector<34x96xf32>
    %245 = tpu.matmul %242, %244, %cst_115 {dimension_numbers = #tpu.dot_dimension_numbers<[1], [0], [0], [1], [0, 0, 1, 1], [], []>} : vector<34x32xf32>, vector<32x96xf32>, vector<34x96xf32> -> vector<34x96xf32>
    %c1_116 = arith.constant 1 : index
    %c0_117 = arith.constant 0 : index
    %c0_118 = arith.constant 0 : index
    %246 = vector.load %arg14[%c1_116, %c0_117, %c0_118] : memref<2x32x32xf32, #tpu.memory_space<vmem>>, vector<1x32x32xf32>
    %247 = vector.shape_cast %246 : vector<1x32x32xf32> to vector<32x32xf32>
    %248 = vector.extract_strided_slice %245 {offsets = [0, 0], sizes = [34, 8], strides = [1, 1]} : vector<34x96xf32> to vector<34x8xf32>
    %249 = vector.extract_strided_slice %245 {offsets = [0, 32], sizes = [34, 8], strides = [1, 1]} : vector<34x96xf32> to vector<34x8xf32>
    %250 = vector.extract_strided_slice %245 {offsets = [0, 64], sizes = [34, 8], strides = [1, 1]} : vector<34x96xf32> to vector<34x8xf32>
    %cst_119 = arith.constant dense<0.000000e+00> : vector<34x34xf32>
    %251 = tpu.matmul %248, %249, %cst_119 {dimension_numbers = #tpu.dot_dimension_numbers<[1], [1], [0], [0], [0, 0, 1, 0], [], []>} : vector<34x8xf32>, vector<34x8xf32>, vector<34x34xf32> -> vector<34x34xf32>
    %cst_120 = arith.constant 0.353553385 : f32
    %252 = vector.broadcast %cst_120 : f32 to vector<34x34xf32>
    %253 = arith.mulf %251, %252 : vector<34x34xf32>
    %254 = arith.addf %253, %54 : vector<34x34xf32>
    %cst_121 = arith.constant dense<0xFF800000> : vector<34xf32>
    %255 = vector.multi_reduction <maximumf>, %254, %cst_121 [1] : vector<34x34xf32> to vector<34xf32>
    %256 = vector.shape_cast %255 : vector<34xf32> to vector<34x1xf32>
    %257 = vector.broadcast %256 : vector<34x1xf32> to vector<34x34xf32>
    %258 = arith.subf %254, %257 : vector<34x34xf32>
    %259 = math.exp %258 : vector<34x34xf32>
    %cst_122 = arith.constant dense<0.000000e+00> : vector<34xf32>
    %260 = vector.multi_reduction <add>, %259, %cst_122 [1] : vector<34x34xf32> to vector<34xf32>
    %261 = vector.shape_cast %260 : vector<34xf32> to vector<34x1xf32>
    %262 = tpu.reciprocal %261 {approx = true} : vector<34x1xf32> -> vector<34x1xf32>
    %263 = vector.broadcast %262 : vector<34x1xf32> to vector<34x34xf32>
    %264 = arith.mulf %259, %263 : vector<34x34xf32>
    %cst_123 = arith.constant dense<0.000000e+00> : vector<34x8xf32>
    %265 = tpu.matmul %264, %250, %cst_123 {dimension_numbers = #tpu.dot_dimension_numbers<[1], [0], [0], [1], [0, 0, 1, 1], [], []>} : vector<34x34xf32>, vector<34x8xf32>, vector<34x8xf32> -> vector<34x8xf32>
    %266 = vector.extract_strided_slice %247 {offsets = [0, 0], sizes = [8, 32], strides = [1, 1]} : vector<32x32xf32> to vector<8x32xf32>
    %cst_124 = arith.constant dense<0.000000e+00> : vector<34x32xf32>
    %267 = tpu.matmul %265, %266, %cst_124 {dimension_numbers = #tpu.dot_dimension_numbers<[1], [0], [0], [1], [0, 0, 1, 1], [], []>} : vector<34x8xf32>, vector<8x32xf32>, vector<34x32xf32> -> vector<34x32xf32>
    %268 = vector.extract_strided_slice %245 {offsets = [0, 8], sizes = [34, 8], strides = [1, 1]} : vector<34x96xf32> to vector<34x8xf32>
    %269 = vector.extract_strided_slice %245 {offsets = [0, 40], sizes = [34, 8], strides = [1, 1]} : vector<34x96xf32> to vector<34x8xf32>
    %270 = vector.extract_strided_slice %245 {offsets = [0, 72], sizes = [34, 8], strides = [1, 1]} : vector<34x96xf32> to vector<34x8xf32>
    %cst_125 = arith.constant dense<0.000000e+00> : vector<34x34xf32>
    %271 = tpu.matmul %268, %269, %cst_125 {dimension_numbers = #tpu.dot_dimension_numbers<[1], [1], [0], [0], [0, 0, 1, 0], [], []>} : vector<34x8xf32>, vector<34x8xf32>, vector<34x34xf32> -> vector<34x34xf32>
    %cst_126 = arith.constant 0.353553385 : f32
    %272 = vector.broadcast %cst_126 : f32 to vector<34x34xf32>
    %273 = arith.mulf %271, %272 : vector<34x34xf32>
    %274 = arith.addf %273, %54 : vector<34x34xf32>
    %cst_127 = arith.constant dense<0xFF800000> : vector<34xf32>
    %275 = vector.multi_reduction <maximumf>, %274, %cst_127 [1] : vector<34x34xf32> to vector<34xf32>
    %276 = vector.shape_cast %275 : vector<34xf32> to vector<34x1xf32>
    %277 = vector.broadcast %276 : vector<34x1xf32> to vector<34x34xf32>
    %278 = arith.subf %274, %277 : vector<34x34xf32>
    %279 = math.exp %278 : vector<34x34xf32>
    %cst_128 = arith.constant dense<0.000000e+00> : vector<34xf32>
    %280 = vector.multi_reduction <add>, %279, %cst_128 [1] : vector<34x34xf32> to vector<34xf32>
    %281 = vector.shape_cast %280 : vector<34xf32> to vector<34x1xf32>
    %282 = tpu.reciprocal %281 {approx = true} : vector<34x1xf32> -> vector<34x1xf32>
    %283 = vector.broadcast %282 : vector<34x1xf32> to vector<34x34xf32>
    %284 = arith.mulf %279, %283 : vector<34x34xf32>
    %cst_129 = arith.constant dense<0.000000e+00> : vector<34x8xf32>
    %285 = tpu.matmul %284, %270, %cst_129 {dimension_numbers = #tpu.dot_dimension_numbers<[1], [0], [0], [1], [0, 0, 1, 1], [], []>} : vector<34x34xf32>, vector<34x8xf32>, vector<34x8xf32> -> vector<34x8xf32>
    %286 = vector.extract_strided_slice %247 {offsets = [8, 0], sizes = [8, 32], strides = [1, 1]} : vector<32x32xf32> to vector<8x32xf32>
    %cst_130 = arith.constant dense<0.000000e+00> : vector<34x32xf32>
    %287 = tpu.matmul %285, %286, %cst_130 {dimension_numbers = #tpu.dot_dimension_numbers<[1], [0], [0], [1], [0, 0, 1, 1], [], []>} : vector<34x8xf32>, vector<8x32xf32>, vector<34x32xf32> -> vector<34x32xf32>
    %288 = arith.addf %267, %287 : vector<34x32xf32>
    %289 = vector.extract_strided_slice %245 {offsets = [0, 16], sizes = [34, 8], strides = [1, 1]} : vector<34x96xf32> to vector<34x8xf32>
    %290 = vector.extract_strided_slice %245 {offsets = [0, 48], sizes = [34, 8], strides = [1, 1]} : vector<34x96xf32> to vector<34x8xf32>
    %291 = vector.extract_strided_slice %245 {offsets = [0, 80], sizes = [34, 8], strides = [1, 1]} : vector<34x96xf32> to vector<34x8xf32>
    %cst_131 = arith.constant dense<0.000000e+00> : vector<34x34xf32>
    %292 = tpu.matmul %289, %290, %cst_131 {dimension_numbers = #tpu.dot_dimension_numbers<[1], [1], [0], [0], [0, 0, 1, 0], [], []>} : vector<34x8xf32>, vector<34x8xf32>, vector<34x34xf32> -> vector<34x34xf32>
    %cst_132 = arith.constant 0.353553385 : f32
    %293 = vector.broadcast %cst_132 : f32 to vector<34x34xf32>
    %294 = arith.mulf %292, %293 : vector<34x34xf32>
    %295 = arith.addf %294, %54 : vector<34x34xf32>
    %cst_133 = arith.constant dense<0xFF800000> : vector<34xf32>
    %296 = vector.multi_reduction <maximumf>, %295, %cst_133 [1] : vector<34x34xf32> to vector<34xf32>
    %297 = vector.shape_cast %296 : vector<34xf32> to vector<34x1xf32>
    %298 = vector.broadcast %297 : vector<34x1xf32> to vector<34x34xf32>
    %299 = arith.subf %295, %298 : vector<34x34xf32>
    %300 = math.exp %299 : vector<34x34xf32>
    %cst_134 = arith.constant dense<0.000000e+00> : vector<34xf32>
    %301 = vector.multi_reduction <add>, %300, %cst_134 [1] : vector<34x34xf32> to vector<34xf32>
    %302 = vector.shape_cast %301 : vector<34xf32> to vector<34x1xf32>
    %303 = tpu.reciprocal %302 {approx = true} : vector<34x1xf32> -> vector<34x1xf32>
    %304 = vector.broadcast %303 : vector<34x1xf32> to vector<34x34xf32>
    %305 = arith.mulf %300, %304 : vector<34x34xf32>
    %cst_135 = arith.constant dense<0.000000e+00> : vector<34x8xf32>
    %306 = tpu.matmul %305, %291, %cst_135 {dimension_numbers = #tpu.dot_dimension_numbers<[1], [0], [0], [1], [0, 0, 1, 1], [], []>} : vector<34x34xf32>, vector<34x8xf32>, vector<34x8xf32> -> vector<34x8xf32>
    %307 = vector.extract_strided_slice %247 {offsets = [16, 0], sizes = [8, 32], strides = [1, 1]} : vector<32x32xf32> to vector<8x32xf32>
    %cst_136 = arith.constant dense<0.000000e+00> : vector<34x32xf32>
    %308 = tpu.matmul %306, %307, %cst_136 {dimension_numbers = #tpu.dot_dimension_numbers<[1], [0], [0], [1], [0, 0, 1, 1], [], []>} : vector<34x8xf32>, vector<8x32xf32>, vector<34x32xf32> -> vector<34x32xf32>
    %309 = arith.addf %288, %308 : vector<34x32xf32>
    %310 = vector.extract_strided_slice %245 {offsets = [0, 24], sizes = [34, 8], strides = [1, 1]} : vector<34x96xf32> to vector<34x8xf32>
    %311 = vector.extract_strided_slice %245 {offsets = [0, 56], sizes = [34, 8], strides = [1, 1]} : vector<34x96xf32> to vector<34x8xf32>
    %312 = vector.extract_strided_slice %245 {offsets = [0, 88], sizes = [34, 8], strides = [1, 1]} : vector<34x96xf32> to vector<34x8xf32>
    %cst_137 = arith.constant dense<0.000000e+00> : vector<34x34xf32>
    %313 = tpu.matmul %310, %311, %cst_137 {dimension_numbers = #tpu.dot_dimension_numbers<[1], [1], [0], [0], [0, 0, 1, 0], [], []>} : vector<34x8xf32>, vector<34x8xf32>, vector<34x34xf32> -> vector<34x34xf32>
    %cst_138 = arith.constant 0.353553385 : f32
    %314 = vector.broadcast %cst_138 : f32 to vector<34x34xf32>
    %315 = arith.mulf %313, %314 : vector<34x34xf32>
    %316 = arith.addf %315, %54 : vector<34x34xf32>
    %cst_139 = arith.constant dense<0xFF800000> : vector<34xf32>
    %317 = vector.multi_reduction <maximumf>, %316, %cst_139 [1] : vector<34x34xf32> to vector<34xf32>
    %318 = vector.shape_cast %317 : vector<34xf32> to vector<34x1xf32>
    %319 = vector.broadcast %318 : vector<34x1xf32> to vector<34x34xf32>
    %320 = arith.subf %316, %319 : vector<34x34xf32>
    %321 = math.exp %320 : vector<34x34xf32>
    %cst_140 = arith.constant dense<0.000000e+00> : vector<34xf32>
    %322 = vector.multi_reduction <add>, %321, %cst_140 [1] : vector<34x34xf32> to vector<34xf32>
    %323 = vector.shape_cast %322 : vector<34xf32> to vector<34x1xf32>
    %324 = tpu.reciprocal %323 {approx = true} : vector<34x1xf32> -> vector<34x1xf32>
    %325 = vector.broadcast %324 : vector<34x1xf32> to vector<34x34xf32>
    %326 = arith.mulf %321, %325 : vector<34x34xf32>
    %cst_141 = arith.constant dense<0.000000e+00> : vector<34x8xf32>
    %327 = tpu.matmul %326, %312, %cst_141 {dimension_numbers = #tpu.dot_dimension_numbers<[1], [0], [0], [1], [0, 0, 1, 1], [], []>} : vector<34x34xf32>, vector<34x8xf32>, vector<34x8xf32> -> vector<34x8xf32>
    %328 = vector.extract_strided_slice %247 {offsets = [24, 0], sizes = [8, 32], strides = [1, 1]} : vector<32x32xf32> to vector<8x32xf32>
    %cst_142 = arith.constant dense<0.000000e+00> : vector<34x32xf32>
    %329 = tpu.matmul %327, %328, %cst_142 {dimension_numbers = #tpu.dot_dimension_numbers<[1], [0], [0], [1], [0, 0, 1, 1], [], []>} : vector<34x8xf32>, vector<8x32xf32>, vector<34x32xf32> -> vector<34x32xf32>
    %330 = arith.addf %309, %329 : vector<34x32xf32>
    %331 = arith.addf %218, %330 : vector<34x32xf32>
    %c1_143 = arith.constant 1 : index
    %c0_144 = arith.constant 0 : index
    %c0_145 = arith.constant 0 : index
    %332 = vector.load %arg15[%c1_143, %c0_144, %c0_145] : memref<2x1x32xf32, #tpu.memory_space<vmem>>, vector<1x1x32xf32>
    %333 = vector.shape_cast %332 : vector<1x1x32xf32> to vector<1x32xf32>
    %334 = vector.broadcast %333 : vector<1x32xf32> to vector<34x32xf32>
    %335 = arith.addf %331, %334 : vector<34x32xf32>
    %c1_146 = arith.constant 1 : index
    %c0_147 = arith.constant 0 : index
    %c0_148 = arith.constant 0 : index
    %336 = vector.load %arg16[%c1_146, %c0_147, %c0_148] : memref<2x1x32xf32, #tpu.memory_space<vmem>>, vector<1x1x32xf32>
    %337 = vector.shape_cast %336 : vector<1x1x32xf32> to vector<1x32xf32>
    %c1_149 = arith.constant 1 : index
    %c0_150 = arith.constant 0 : index
    %c0_151 = arith.constant 0 : index
    %338 = vector.load %arg17[%c1_149, %c0_150, %c0_151] : memref<2x1x32xf32, #tpu.memory_space<vmem>>, vector<1x1x32xf32>
    %339 = vector.shape_cast %338 : vector<1x1x32xf32> to vector<1x32xf32>
    %cst_152 = arith.constant dense<0.000000e+00> : vector<34xf32>
    %340 = vector.multi_reduction <add>, %335, %cst_152 [1] : vector<34x32xf32> to vector<34xf32>
    %341 = vector.shape_cast %340 : vector<34xf32> to vector<34x1xf32>
    %cst_153 = arith.constant 3.200000e+01 : f32
    %342 = vector.broadcast %cst_153 : f32 to vector<34x1xf32>
    %343 = arith.divf %341, %342 : vector<34x1xf32>
    %344 = vector.broadcast %343 : vector<34x1xf32> to vector<34x32xf32>
    %345 = arith.subf %335, %344 : vector<34x32xf32>
    %346 = arith.mulf %345, %345 : vector<34x32xf32>
    %cst_154 = arith.constant dense<0.000000e+00> : vector<34xf32>
    %347 = vector.multi_reduction <add>, %346, %cst_154 [1] : vector<34x32xf32> to vector<34xf32>
    %348 = vector.shape_cast %347 : vector<34xf32> to vector<34x1xf32>
    %cst_155 = arith.constant 3.200000e+01 : f32
    %349 = vector.broadcast %cst_155 : f32 to vector<34x1xf32>
    %350 = arith.divf %348, %349 : vector<34x1xf32>
    %cst_156 = arith.constant 9.99999974E-6 : f32
    %351 = vector.broadcast %cst_156 : f32 to vector<34x1xf32>
    %352 = arith.addf %350, %351 : vector<34x1xf32>
    %353 = math.rsqrt %352 : vector<34x1xf32>
    %354 = vector.broadcast %353 : vector<34x1xf32> to vector<34x32xf32>
    %355 = arith.mulf %345, %354 : vector<34x32xf32>
    %356 = vector.broadcast %337 : vector<1x32xf32> to vector<34x32xf32>
    %357 = arith.mulf %355, %356 : vector<34x32xf32>
    %358 = vector.broadcast %339 : vector<1x32xf32> to vector<34x32xf32>
    %359 = arith.addf %357, %358 : vector<34x32xf32>
    %c1_157 = arith.constant 1 : index
    %c0_158 = arith.constant 0 : index
    %c0_159 = arith.constant 0 : index
    %360 = vector.load %arg18[%c1_157, %c0_158, %c0_159] : memref<2x32x64xf32, #tpu.memory_space<vmem>>, vector<1x32x64xf32>
    %361 = vector.shape_cast %360 : vector<1x32x64xf32> to vector<32x64xf32>
    %cst_160 = arith.constant dense<0.000000e+00> : vector<34x64xf32>
    %362 = tpu.matmul %359, %361, %cst_160 {dimension_numbers = #tpu.dot_dimension_numbers<[1], [0], [0], [1], [0, 0, 1, 1], [], []>} : vector<34x32xf32>, vector<32x64xf32>, vector<34x64xf32> -> vector<34x64xf32>
    %c1_161 = arith.constant 1 : index
    %c0_162 = arith.constant 0 : index
    %c0_163 = arith.constant 0 : index
    %363 = vector.load %arg19[%c1_161, %c0_162, %c0_163] : memref<2x1x64xf32, #tpu.memory_space<vmem>>, vector<1x1x64xf32>
    %364 = vector.shape_cast %363 : vector<1x1x64xf32> to vector<1x64xf32>
    %365 = vector.broadcast %364 : vector<1x64xf32> to vector<34x64xf32>
    %366 = arith.addf %362, %365 : vector<34x64xf32>
    %cst_164 = arith.constant 5.000000e-01 : f32
    %367 = vector.broadcast %cst_164 : f32 to vector<34x64xf32>
    %368 = arith.mulf %367, %366 : vector<34x64xf32>
    %cst_165 = arith.constant 0.707106769 : f32
    %369 = vector.broadcast %cst_165 : f32 to vector<34x64xf32>
    %370 = arith.mulf %366, %369 : vector<34x64xf32>
    %371 = math.erf %370 : vector<34x64xf32>
    %cst_166 = arith.constant 1.000000e+00 : f32
    %372 = vector.broadcast %cst_166 : f32 to vector<34x64xf32>
    %373 = arith.addf %372, %371 : vector<34x64xf32>
    %374 = arith.mulf %368, %373 : vector<34x64xf32>
    %c1_167 = arith.constant 1 : index
    %c0_168 = arith.constant 0 : index
    %c0_169 = arith.constant 0 : index
    %375 = vector.load %arg20[%c1_167, %c0_168, %c0_169] : memref<2x64x32xf32, #tpu.memory_space<vmem>>, vector<1x64x32xf32>
    %376 = vector.shape_cast %375 : vector<1x64x32xf32> to vector<64x32xf32>
    %cst_170 = arith.constant dense<0.000000e+00> : vector<34x32xf32>
    %377 = tpu.matmul %374, %376, %cst_170 {dimension_numbers = #tpu.dot_dimension_numbers<[1], [0], [0], [1], [0, 0, 1, 1], [], []>} : vector<34x64xf32>, vector<64x32xf32>, vector<34x32xf32> -> vector<34x32xf32>
    %378 = arith.addf %335, %377 : vector<34x32xf32>
    %c1_171 = arith.constant 1 : index
    %c0_172 = arith.constant 0 : index
    %c0_173 = arith.constant 0 : index
    %379 = vector.load %arg21[%c1_171, %c0_172, %c0_173] : memref<2x1x32xf32, #tpu.memory_space<vmem>>, vector<1x1x32xf32>
    %380 = vector.shape_cast %379 : vector<1x1x32xf32> to vector<1x32xf32>
    %381 = vector.broadcast %380 : vector<1x32xf32> to vector<34x32xf32>
    %382 = arith.addf %378, %381 : vector<34x32xf32>
    %c0_174 = arith.constant 0 : index
    %c0_175 = arith.constant 0 : index
    %383 = vector.load %arg4[%c0_174, %c0_175] : memref<2x34xf32, #tpu.memory_space<vmem>>, vector<2x34xf32>
    %cst_176 = arith.constant dense<0.000000e+00> : vector<2x32xf32>
    %384 = tpu.matmul %383, %382, %cst_176 {dimension_numbers = #tpu.dot_dimension_numbers<[1], [0], [0], [1], [0, 0, 1, 1], [], []>} : vector<2x34xf32>, vector<34x32xf32>, vector<2x32xf32> -> vector<2x32xf32>
    %c0_177 = arith.constant 0 : index
    %c0_178 = arith.constant 0 : index
    %385 = vector.load %arg22[%c0_177, %c0_178] : memref<1x32xf32, #tpu.memory_space<vmem>>, vector<1x32xf32>
    %c0_179 = arith.constant 0 : index
    %c0_180 = arith.constant 0 : index
    %386 = vector.load %arg23[%c0_179, %c0_180] : memref<1x32xf32, #tpu.memory_space<vmem>>, vector<1x32xf32>
    %cst_181 = arith.constant dense<0.000000e+00> : vector<2xf32>
    %387 = vector.multi_reduction <add>, %384, %cst_181 [1] : vector<2x32xf32> to vector<2xf32>
    %388 = vector.shape_cast %387 : vector<2xf32> to vector<2x1xf32>
    %cst_182 = arith.constant 3.200000e+01 : f32
    %389 = vector.broadcast %cst_182 : f32 to vector<2x1xf32>
    %390 = arith.divf %388, %389 : vector<2x1xf32>
    %391 = vector.broadcast %390 : vector<2x1xf32> to vector<2x32xf32>
    %392 = arith.subf %384, %391 : vector<2x32xf32>
    %393 = arith.mulf %392, %392 : vector<2x32xf32>
    %cst_183 = arith.constant dense<0.000000e+00> : vector<2xf32>
    %394 = vector.multi_reduction <add>, %393, %cst_183 [1] : vector<2x32xf32> to vector<2xf32>
    %395 = vector.shape_cast %394 : vector<2xf32> to vector<2x1xf32>
    %cst_184 = arith.constant 3.200000e+01 : f32
    %396 = vector.broadcast %cst_184 : f32 to vector<2x1xf32>
    %397 = arith.divf %395, %396 : vector<2x1xf32>
    %cst_185 = arith.constant 9.99999974E-6 : f32
    %398 = vector.broadcast %cst_185 : f32 to vector<2x1xf32>
    %399 = arith.addf %397, %398 : vector<2x1xf32>
    %400 = math.rsqrt %399 : vector<2x1xf32>
    %401 = vector.broadcast %400 : vector<2x1xf32> to vector<2x32xf32>
    %402 = arith.mulf %392, %401 : vector<2x32xf32>
    %403 = vector.broadcast %385 : vector<1x32xf32> to vector<2x32xf32>
    %404 = arith.mulf %402, %403 : vector<2x32xf32>
    %405 = vector.broadcast %386 : vector<1x32xf32> to vector<2x32xf32>
    %406 = arith.addf %404, %405 : vector<2x32xf32>
    %c0_186 = arith.constant 0 : index
    %c0_187 = arith.constant 0 : index
    %407 = vector.load %arg24[%c0_186, %c0_187] : memref<32x10xf32, #tpu.memory_space<vmem>>, vector<32x10xf32>
    %cst_188 = arith.constant dense<0.000000e+00> : vector<2x10xf32>
    %408 = tpu.matmul %406, %407, %cst_188 {dimension_numbers = #tpu.dot_dimension_numbers<[1], [0], [0], [1], [0, 0, 1, 1], [], []>} : vector<2x32xf32>, vector<32x10xf32>, vector<2x10xf32> -> vector<2x10xf32>
    %c0_189 = arith.constant 0 : index
    %c0_190 = arith.constant 0 : index
    %409 = vector.load %arg25[%c0_189, %c0_190] : memref<1x10xf32, #tpu.memory_space<vmem>>, vector<1x10xf32>
    %410 = vector.broadcast %409 : vector<1x10xf32> to vector<2x10xf32>
    %411 = arith.addf %408, %410 : vector<2x10xf32>
    %c0_191 = arith.constant 0 : index
    %c0_192 = arith.constant 0 : index
    %412 = vector.load %arg26[%c0_191, %c0_192] : memref<2x10xf32, #tpu.memory_space<vmem>>, vector<2x10xf32>
    tpu.vector_store %arg26[%c0_191, %c0_192], %411 {strides = array<i32>} : memref<2x10xf32, #tpu.memory_space<vmem>>, vector<2x10xf32>,
    return
  }
}

</mosaic_0001>

<bundles_post_ra>
// kernel: tile.13
= control target key start
LH: loop header
LB: loop body
LE: loop exit
PB: predicated region body
PF: predicated region fallthrough
CT: control target
= control target key end

     0   :  { %vm3_vm0 = vcmask 261120   ;;  %s11_s6 = smov 3  ;;  %s74_s0 = inlined_call_operand.vmem [shape: f32[2,17,32], index: 0, kind: input, shape index: {}]   ;;  %s75_s1 = inlined_call_operand.vmem [shape: f32[34,32], index: 1, kind: output, shape index: {}]  }
   0x1   :  { %v2_v0 = vld [vmem:[%s74_s0] sm:$0xff]   ;;  %v26_v1 = vld [vmem:[%s74_s0 + $0x8] sm:$0xff]  }
   0x2   :  { %v28_v2 = vld [vmem:[%s74_s0 + $0x10] ss:$8 sm:%s11_s6]   ;;  %4 = vst.msk [vmem:[%s75_s1] sm:$0xff] %vm3_vm0, %v2_v0   ;;  %27 = vst.msk [vmem:[%s75_s1 + $0x8] sm:$0xff] %vm3_vm0, %v26_v1  }
   0x3   :  { %29 = vst.msk [vmem:[%s75_s1 + $0x10] sm:$0x3] %vm3_vm0, %v28_v2   ;;  %v30_v3 = vld [vmem:[%s74_s0 + $0x19] sm:$0xff]   ;;  %v32_v4 = vld [vmem:[%s74_s0 + $0x21] sm:$0xff]  }
   0x4   :  { %31 = vst.msk [vmem:[%s75_s1 + $0x12] sm:$0xff] %vm3_vm0, %v30_v3   ;;  %33 = vst.msk [vmem:[%s75_s1 + $0x1a] sm:$0xff] %vm3_vm0, %v32_v4  }

// kernel: vit_forward.1
= control target key start
LH: loop header
LB: loop body
LE: loop exit
PB: predicated region body
PF: predicated region fallthrough
CT: control target
= control target key end

     0   :  { %s8916_s0 = inlined_call_operand.vmem [shape: f32[34,64], index: 0, kind: input, shape index: {}]   ;;  %s8917_s1 = inlined_call_operand.vmem [shape: f32[34,32], index: 1, kind: input, shape index: {}]   ;;  %s8918_s2 = inlined_call_operand.vmem [shape: f32[34,32], index: 2, kind: input, shape index: {}]   ;;  %s8919_s3 = inlined_call_operand.vmem [shape: f32[34,34], index: 3, kind: input, shape index: {}]   ;;  %s8920_s4 = inlined_call_operand.vmem [shape: f32[2,34], index: 4, kind: input, shape index: {}]   ;;  %s8921_s5 = inlined_call_operand.vmem [shape: f32[1,64], index: 5, kind: input, shape index: {}]   ;;  %s8922_s6 = inlined_call_operand.vmem [shape: f32[1,64], index: 6, kind: input, shape index: {}]   ;;  %s8923_s7 = inlined_call_operand.vmem [shape: f32[64,32], index: 7, kind: input, shape index: {}]   ;;  %s8924_s8 = inlined_call_operand.vmem [shape: f32[1,32], index: 8, kind: input, shape index: {}]   ;;  %s8925_s9 = inlined_call_operand.vmem [shape: f32[1,32], index: 9, kind: input, shape index: {}]   ;;  %s8926_s10 = inlined_call_operand.vmem [shape: f32[1,32], index: 10, kind: input, shape index: {}]   ;;  %s8927_s11 = inlined_call_operand.vmem [shape: f32[2,1,32], index: 11, kind: input, shape index: {}]   ;;  %s8928_s12 = inlined_call_operand.vmem [shape: f32[2,1,32], index: 12, kind: input, shape index: {}]   ;;  %s8929_s13 = inlined_call_operand.vmem [shape: f32[2,32,96], index: 13, kind: input, shape index: {}]   ;;  %s8930_s14 = inlined_call_operand.vmem [shape: f32[2,32,32], index: 14, kind: input, shape index: {}]   ;;  %s8931_s15 = inlined_call_operand.vmem [shape: f32[2,1,32], index: 15, kind: input, shape index: {}]   ;;  %s8932_s16 = inlined_call_operand.vmem [shape: f32[2,1,32], index: 16, kind: input, shape index: {}]   ;;  %s8933_s17 = inlined_call_operand.vmem [shape: f32[2,1,32], index: 17, kind: input, shape index: {}]   ;;  %s8934_s18 = inlined_call_operand.vmem [shape: f32[2,32,64], index: 18, kind: input, shape index: {}]   ;;  %s8935_s19 = inlined_call_operand.vmem [shape: f32[2,1,64], index: 19, kind: input, shape index: {}]   ;;  %s8936_s20 = inlined_call_operand.vmem [shape: f32[2,64,32], index: 20, kind: input, shape index: {}]   ;;  %s8937_s21 = inlined_call_operand.vmem [shape: f32[2,1,32], index: 21, kind: input, shape index: {}]   ;;  %s8938_s22 = inlined_call_operand.vmem [shape: f32[1,32], index: 22, kind: input, shape index: {}]   ;;  %s8939_s23 = inlined_call_operand.vmem [shape: f32[1,32], index: 23, kind: input, shape index: {}]   ;;  %s8940_s24 = inlined_call_operand.vmem [shape: f32[32,10], index: 24, kind: input, shape index: {}]   ;;  %s8941_s25 = inlined_call_operand.vmem [shape: f32[1,10], index: 25, kind: input, shape index: {}]   ;;  %s8942_s26 = inlined_call_operand.hbm [shape: f32[2,10], index: 26, kind: output, shape index: {}]  }
   0x1   :  { %8958 = sst [smem:[#allocation5_spill]] %s8916_s0 }
   0x2   :  { %8959 = sst [smem:[#allocation6_spill]] %s8917_s1 }
   0x3   :  { %8960 = sst [smem:[#allocation7_spill]] %s8918_s2 }
   0x4   :  { %8961 = sst [smem:[#allocation8_spill]] %s8919_s3 }
   0x5   :  { %8962 = sst [smem:[#allocation9_spill]] %s8920_s4 }
   0x6   :  { %8963 = sst [smem:[#allocation10_spill]] %s8921_s5 }
   0x7   :  { %8964 = sst [smem:[#allocation11_spill]] %s8922_s6 }
   0x8   :  { %8965 = sst [smem:[#allocation12_spill]] %s8923_s7 }
   0x9   :  { %8966 = sst [smem:[#allocation13_spill]] %s8924_s8 }
   0xa   :  { %8967 = sst [smem:[#allocation14_spill]] %s8925_s9 }
   0xb   :  { %8968 = sst [smem:[#allocation15_spill]] %s8926_s10 }
   0xc   :  { %s8969_s7 = sld [smem:[#allocation5_spill]]  ;;  %vm91_vm0 = vcmask 523264  }
  0x12   :  { %v84_v0 = vld [vmem:[%s8969_s7] sm:$0xff]  ;;  %v86_v1 = vld [vmem:[%s8969_s7 + $0x10] sm:$0xff]  ;;  %v85_v2 = vld [vmem:[%s8969_s7 + $0x8] sm:$0xff] }
  0x13   :  { %v92_v3 = vsel %vm91_vm0, %v84_v0, 0.0  ;;  %v98_v4 = vsel %vm91_vm0, %v86_v1, 0.0  ;;  %v87_v5 = vld [vmem:[%s8969_s7 + $0x18] sm:$0xff] }
  0x14   :  { %93 = vadd.xlane.f32.xlu0 %v92_v3  ;;  %99 = vadd.xlane.f32.xlu1 %v98_v4 }
  0x15   :  { %31 = vsyncpa [#allocation3], 0  ;;  %v95_v6 = vsel %vm91_vm0, %v85_v2, 0.0  ;;  %v101_v7 = vsel %vm91_vm0, %v87_v5, 0.0  ;;  %v88_v8 = vld [vmem:[%s8969_s7 + $0x20] sm:$0x3] }
  0x16   :  { %vm104_vm1 = vcmask 517120   ;;  %s8970_s6 = sld [smem:[#allocation12_spill]]  ;;  %v7104_v38 = vmov 0.0|0.0   ;;  %vm7105_vm2 = vmmov 0   ;;  %v7106_v47 = vmov 0.0   ;;  %s8971_s27 = sld [smem:[#allocation10_spill]] }
  0x17   :  { %v105_v9 = vsel %vm104_vm1, %v88_v8, 0.0  ;;  %6469 = vmatprep.subr.bf16.mxu0 %v7104_v38  ;;  %6481 = vmatprep.subr.bf16.mxu1 %v7104_v38  ;;  %s8972_s28 = sld [smem:[#allocation11_spill]]  ;;  %s8973_s29 = sld [smem:[#allocation13_spill]]  ;;  %vm303_vm3 = vcmask 261120   ;;  %vm316_vm4 = vcmask 254976   ;;  %vm635_vm5 = vcmask 64512  }
  0x18   :  { %96 = vadd.xlane.f32.xlu0 %v95_v6  ;;  %102 = vadd.xlane.f32.xlu1 %v101_v7  ;;  %s8974_s30 = sld [smem:[#allocation14_spill]]  ;;  %s8975_s10 = sld [smem:[#allocation15_spill]]  ;;  %vm7515_vm6 = vmpackc.low %vm635_vm5, %vm635_vm5  ;;  %vm756_vm7 = vcmask 277504   ;;  %vm769_vm8 = vcmask 271360   ;;  %vm842_vm9 = vcmask 1041408   ;;  %vm5159_vm10 = vcmask 74752  }
  0x19   :  { %5740 = vmatprep.mubr.msk.f32.mxu0 %vm7105_vm2, %v7106_v47  ;;  %5763 = vmatprep.mubr.msk.f32.mxu1 %vm7105_vm2, %v7106_v47  ;;  %s7107_s8 = smov 96   ;;  %s7108_s4 = smov 88  }
  0x1a   :  { %s8980_s0 = sld [smem:[#allocation8_spill]]  ;;  %s7110_s7 = smov 64  }
  0x1b   :  { %s8956_s9 = smov 112   ;;  %s8952_s1 = smov 104  }
  0x1c   :  { %106 = vadd.xlane.f32.xlu0 %v105_v9  ;;  %v181_v35 = vld [vmem:[%s8970_s6] sm:$0xff]  ;;  %v182_v36 = vld [vmem:[%s8970_s6 + $0x8] sm:$0xff]  ;;  %v183_v39 = vld [vmem:[%s8970_s6 + $0x10] sm:$0xff]  ;;  %s8948_s3 = smov 72  }
  0x1d   :  { %v6470_v37 = vpack.c.bf16 %v182_v36, %v181_v35  ;;  %v184_v40 = vld [vmem:[%s8970_s6 + $0x18] sm:$0xff]  ;;  %v185_v42 = vld [vmem:[%s8970_s6 + $0x20] sm:$0xff]  ;;  %v186_v43 = vld [vmem:[%s8970_s6 + $0x28] sm:$0xff] }
  0x1e   :  { %v6473_v41 = vpack.c.bf16 %v184_v40, %v183_v39  ;;  %v6476_v44 = vpack.c.bf16 %v186_v43, %v185_v42  ;;  %v187_v45 = vld [vmem:[%s8970_s6 + $0x30] sm:$0xff]  ;;  %v188_v46 = vld [vmem:[%s8970_s6 + $0x38] sm:$0xff]  ;;  %v5176_v3 = vld [vmem:[%s8972_s28] ss:$0 sm:$0xff]  ;;  %s8977_s28 = sld [smem:[#allocation7_spill]]  ;;  %s8954_s6 = smov 48  }
  0x1f   :  { %6471 = vmatpush3.bf16.msra.mxu0 %v6470_v37  ;;  %v6479_v48 = vpack.c.bf16 %v188_v46, %v187_v45 }
  0x20   :  { %6472 = vmatprep.subr.bf16.mxu0 %v7104_v38 }
  0x23   :  { %6474 = vmatpush3.bf16.msra.mxu0 %v6473_v41 }
  0x24   :  { %6475 = vmatprep.subr.bf16.mxu0 %v7104_v38 }
  0x27   :  { %6477 = vmatpush3.bf16.msra.mxu0 %v6476_v44 }
  0x28   :  { %6478 = vmatprep.subr.bf16.mxu0 %v7104_v38 }
  0x2b   :  { %6480 = vmatpush3.bf16.msra.mxu0 %v6479_v48 }
  0x2c   :  { %6495 = vmatprep.subr.bf16.mxu0 %v7104_v38 }
  0xa1   :  { %v94_v10 = vpop.xlane.xlu0 %93  ;;  %v100_v11 = vpop.xlane.xlu1 %99 }
  0xa2   :  { %v109_v12 = vmul.f32 0.015625, %v94_v10  ;;  %v111_v13 = vmul.f32 0.015625, %v100_v11 }
  0xa4   :  { %v7274_v14 = vsub.f32 %v84_v0, %v109_v12  ;;  %v7276_v15 = vsub.f32 %v86_v1, %v111_v13  ;;  %v5175_v1 = vld [vmem:[%s8971_s27] ss:$0 sm:$0xff]  ;;  %s8976_s27 = sld [smem:[#allocation6_spill]] }
  0xa5   :  { %v97_v16 = vpop.xlane.xlu0 %96  ;;  %v103_v17 = vpop.xlane.xlu1 %102 }
  0xa6   :  { %v110_v18 = vmul.f32 0.015625, %v97_v16  ;;  %v112_v19 = vmul.f32 0.015625, %v103_v17  ;;  %v119_v20 = vmul.f32 %v7274_v14, %v7274_v14  ;;  %v121_v21 = vmul.f32 %v7276_v15, %v7276_v15 }
  0xa8   :  { %v7282_v22 = vsub.f32 %v85_v2, %v110_v18  ;;  %v7284_v23 = vsub.f32 %v87_v5, %v112_v19  ;;  %v124_v24 = vsel %vm91_vm0, %v119_v20, 0.0  ;;  %v130_v27 = vsel %vm91_vm0, %v121_v21, 0.0 }
  0xa9   :  { %125 = vadd.xlane.f32.xlu1 %v124_v24  ;;  %v107_v25 = vpop.xlane.xlu0 %106 }
  0xaa   :  { %v113_v26 = vmul.f32 0.015625, %v107_v25  ;;  %v120_v28 = vmul.f32 %v7282_v22, %v7282_v22  ;;  %v122_v29 = vmul.f32 %v7284_v23, %v7284_v23 }
  0xac   :  { %v7292_v30 = vsub.f32 %v88_v8, %v113_v26  ;;  %v127_v31 = vsel %vm91_vm0, %v120_v28, 0.0  ;;  %v133_v32 = vsel %vm91_vm0, %v122_v29, 0.0 }
  0xad   :  { %131 = vadd.xlane.f32.xlu1 %v130_v27  ;;  %128 = vadd.xlane.f32.xlu0 %v127_v31 }
  0xae   :  { %v123_v33 = vmul.f32 %v7292_v30, %v7292_v30 }
  0xb0   :  { %v136_v34 = vsel %vm104_vm1, %v123_v33, 0.0 }
  0xb1   :  { %134 = vadd.xlane.f32.xlu0 %v133_v32  ;;  %137 = vadd.xlane.f32.xlu1 %v136_v34 }
 0x136   :  { %v126_v49 = vpop.xlane.xlu1 %125 }
 0x137   :  { %v139_v50 = vmul.f32 0.015625, %v126_v49 }
 0x139   :  { %v144_v51 = vadd.f32 1e-05, %v139_v50 }
 0x13a   :  { %v132_v52 = vpop.xlane.xlu1 %131  ;;  %v129_v53 = vpop.xlane.xlu0 %128 }
 0x13b   :  { %6828 = vrsqrt.f32 %v144_v51  ;;  %v141_v54 = vmul.f32 0.015625, %v132_v52  ;;  %v140_v55 = vmul.f32 0.015625, %v129_v53 }
 0x13d   :  { %v146_v56 = vadd.f32 1e-05, %v141_v54  ;;  %v145_v57 = vadd.f32 1e-05, %v140_v55 }
 0x13e   :  { %v138_v58 = vpop.xlane.xlu1 %137  ;;  %v135_v59 = vpop.xlane.xlu0 %134 }
 0x13f   :  { %6830 = vrsqrt.f32 %v146_v56  ;;  %v143_v60 = vmul.f32 0.015625, %v138_v58  ;;  %v142_v61 = vmul.f32 0.015625, %v135_v59 }
 0x140   :  { %6832 = vrsqrt.f32 %v145_v57 }
 0x141   :  { %v147_v62 = vadd.f32 1e-05, %v142_v61  ;;  %v148_v63 = vadd.f32 1e-05, %v143_v60 }
 0x143   :  { %6834 = vrsqrt.f32 %v147_v62 }
 0x144   :  { %6836 = vrsqrt.f32 %v148_v63 }
 0x145   :  { %v6829_v0 = vpop.eup %6828 }
 0x146   :  { %v154_v2 = vmul.f32 %v6829_v0, %v7274_v14 }
 0x148   :  { %v165_v4 = vmul.f32 %v5175_v1, %v154_v2 }
 0x149   :  { %v6831_v5 = vpop.eup %6830 }
 0x14a   :  { %v6833_v6 = vpop.eup %6832  ;;  %v176_v7 = vadd.f32 %v5176_v3, %v165_v4  ;;  %v156_v9 = vmul.f32 %v6831_v5, %v7276_v15 }
 0x14b   :  { %v155_v8 = vmul.f32 %v6833_v6, %v7282_v22  ;;  %v5177_v22 = vld [vmem:[%s8973_s29] ss:$0 sm:$0xff]  ;;  %s7109_s29 = smov 120  }
 0x14c   :  { %5741 = vmatmul.mubr.msk.f32.vlgmr.msra.gmra.mrb[0].mxu0 %vm91_vm0, %v176_v7  ;;  %v167_v13 = vmul.f32 %v5175_v1, %v156_v9 }
 0x14d   :  { %5743 = vmatprep.mubr.msk.f32.mxu0 %vm7105_vm2, %v7106_v47  ;;  %v166_v10 = vmul.f32 %v5175_v1, %v155_v8  ;;  %v6835_v11 = vpop.eup %6834 }
 0x14e   :  { %v157_v14 = vmul.f32 %v6835_v11, %v7284_v23  ;;  %v6837_v16 = vpop.eup %6836  ;;  %v178_v17 = vadd.f32 %v5176_v3, %v167_v13 }
 0x14f   :  { %v177_v12 = vadd.f32 %v5176_v3, %v166_v10  ;;  %v158_v15 = vmul.f32 %v6837_v16, %v7292_v30 }
 0x150   :  { %v168_v18 = vmul.f32 %v5175_v1, %v157_v14 }
 0x151   :  { %5744 = vmatmul.mubr.msk.f32.gmra.mrb[2].mxu0 %vm91_vm0, %v177_v12  ;;  %v169_v20 = vmul.f32 %v5175_v1, %v158_v15  ;;  %v5183_v15 = vld [vmem:[%s8974_s30] ss:$0 sm:$0xff] }
 0x152   :  { %5746 = vmatprep.mubr.msk.f32.mxu0 %vm7105_vm2, %v7106_v47  ;;  %v179_v19 = vadd.f32 %v5176_v3, %v168_v18 }
 0x153   :  { %v180_v21 = vadd.f32 %v5176_v3, %v169_v20 }
 0x155   :  { %5747 = vmatmul.mubr.msk.f32.gmra.mrb[4].mxu0 %vm91_vm0, %v178_v17 }
 0x156   :  { %5749 = vmatprep.mubr.msk.f32.mxu0 %vm7105_vm2, %v7106_v47 }
 0x159   :  { %5750 = vmatmul.mubr.msk.f32.gmra.mrb[6].mxu0 %vm91_vm0, %v179_v19 }
 0x15a   :  { %5752 = vmatprep.mubr.msk.f32.mxu0 %vm7105_vm2, %v7106_v47 }
 0x15d   :  { %5753 = vmatmul.mubr.msk.f32.gmra.mrb[8].mxu0 %vm91_vm0, %v180_v21 }
 0x15e   :  { %5813 = vmatprep.mubr.msk.f32.mxu0 %vm7105_vm2, %v7106_v47 }
 0x21f   :  { %v277_v23 = vpop.f32.mrb[0].mxu0 }
 0x220   :  { %v278_v24 = vadd.f32 %v5177_v22, %v277_v23  ;;  %v5742_v25 = vpop.f32.mrb[1].mxu0 }
 0x221   :  { %v393_v25 = vld [vmem:[%s8976_s27] sm:$0xff] }
 0x222   :  { %v304_v26 = vsel %vm303_vm3, %v278_v24, 0.0 }
 0x223   :  { %305 = vadd.xlane.f32.xlu0 %v304_v26 }
 0x224   :  { %v282_v27 = vpop.f32.mrb[2].mxu0 }
 0x225   :  { %v283_v28 = vadd.f32 %v5177_v22, %v282_v27  ;;  %v5745_v29 = vpop.f32.mrb[3].mxu0 }
 0x226   :  { %v403_v29 = vld [vmem:[%s8977_s28] sm:$0xff] }
 0x227   :  { %v307_v30 = vsel %vm303_vm3, %v283_v28, 0.0 }
 0x228   :  { %308 = vadd.xlane.f32.xlu1 %v307_v30  ;;  %v287_v31 = vpop.f32.mrb[4].mxu0 }
 0x229   :  { %v288_v32 = vadd.f32 %v5177_v22, %v287_v31  ;;  %v5748_v33 = vpop.f32.mrb[5].mxu0 }
 0x22b   :  { %v310_v34 = vsel %vm303_vm3, %v288_v32, 0.0 }
 0x22c   :  { %311 = vadd.xlane.f32.xlu0 %v310_v34  ;;  %v292_v35 = vpop.f32.mrb[6].mxu0 }
 0x22d   :  { %v293_v36 = vadd.f32 %v5177_v22, %v292_v35  ;;  %v5751_v37 = vpop.f32.mrb[7].mxu0  ;;  %v394_v35 = vld [vmem:[%s8976_s27 + $0x8] sm:$0xff] }
 0x22f   :  { %v313_v39 = vsel %vm303_vm3, %v293_v36, 0.0 }
 0x230   :  { %314 = vadd.xlane.f32.xlu1 %v313_v39  ;;  %v297_v40 = vpop.f32.mrb[8].mxu0 }
 0x231   :  { %v298_v41 = vadd.f32 %v5177_v22, %v297_v40  ;;  %v5754_v42 = vpop.f32.mrb[9].mxu0  ;;  %v5184_v22 = vld [vmem:[%s8975_s10] ss:$0 sm:$0xff]  ;;  %v404_v40 = vld [vmem:[%s8977_s28 + $0x8] sm:$0xff] }
 0x233   :  { %v317_v43 = vsel %vm316_vm4, %v298_v41, 0.0 }
 0x234   :  { %318 = vadd.xlane.f32.xlu0 %v317_v43 }
 0x2b0   :  { %v306_v44 = vpop.xlane.xlu0 %305 }
 0x2b1   :  { %v321_v45 = vmul.f32 0.03125, %v306_v44  ;;  %v395_v44 = vld [vmem:[%s8976_s27 + $0x10] sm:$0xff] }
 0x2b3   :  { %v326_v46 = vsub.f32 %v278_v24, %v321_v45 }
 0x2b5   :  { %v309_v48 = vpop.xlane.xlu1 %308  ;;  %v331_v49 = vmul.f32 %v326_v46, %v326_v46 }
 0x2b6   :  { %v322_v50 = vmul.f32 0.03125, %v309_v48 }
 0x2b7   :  { %v336_v51 = vsel %vm303_vm3, %v331_v49, 0.0  ;;  %v405_v49 = vld [vmem:[%s8977_s28 + $0x10] sm:$0xff] }
 0x2b8   :  { %v327_v52 = vsub.f32 %v283_v28, %v322_v50  ;;  %337 = vadd.xlane.f32.xlu1 %v336_v51 }
 0x2b9   :  { %v312_v53 = vpop.xlane.xlu0 %311 }
 0x2ba   :  { %v323_v54 = vmul.f32 0.03125, %v312_v53  ;;  %v332_v55 = vmul.f32 %v327_v52, %v327_v52 }
 0x2bc   :  { %v328_v56 = vsub.f32 %v288_v32, %v323_v54  ;;  %v339_v57 = vsel %vm303_vm3, %v332_v55, 0.0  ;;  %v396_v54 = vld [vmem:[%s8976_s27 + $0x18] sm:$0xff] }
 0x2bd   :  { %v315_v58 = vpop.xlane.xlu1 %314  ;;  %340 = vadd.xlane.f32.xlu0 %v339_v57 }
 0x2be   :  { %v324_v59 = vmul.f32 0.03125, %v315_v58  ;;  %v333_v60 = vmul.f32 %v328_v56, %v328_v56  ;;  %v406_v58 = vld [vmem:[%s8977_s28 + $0x18] sm:$0xff] }
 0x2c0   :  { %v329_v61 = vsub.f32 %v293_v36, %v324_v59  ;;  %v342_v62 = vsel %vm303_vm3, %v333_v60, 0.0 }
 0x2c1   :  { %343 = vadd.xlane.f32.xlu1 %v342_v62  ;;  %v319_v63 = vpop.xlane.xlu0 %318  ;;  %v397_v62 = vld [vmem:[%s8976_s27 + $0x20] sm:$0x3]  ;;  %s7111_s27 = smov 56  }
 0x2c2   :  { %v325_v0 = vmul.f32 0.03125, %v319_v63  ;;  %v334_v1 = vmul.f32 %v329_v61, %v329_v61 }
 0x2c4   :  { %v330_v2 = vsub.f32 %v298_v41, %v325_v0  ;;  %v345_v3 = vsel %vm303_vm3, %v334_v1, 0.0  ;;  %v407_v1 = vld [vmem:[%s8977_s28 + $0x20] sm:$0x3]  ;;  %s7112_s28 = smov 80  }
 0x2c5   :  { %346 = vadd.xlane.f32.xlu0 %v345_v3 }
 0x2c6   :  { %v335_v4 = vmul.f32 %v330_v2, %v330_v2 }
 0x2c8   :  { %v348_v5 = vsel %vm316_vm4, %v335_v4, 0.0 }
 0x2c9   :  { %349 = vadd.xlane.f32.xlu1 %v348_v5 }
 0x345   :  { %v338_v6 = vpop.xlane.xlu1 %337 }
 0x346   :  { %v351_v7 = vmul.f32 0.03125, %v338_v6 }
 0x348   :  { %v356_v8 = vadd.f32 1e-05, %v351_v7 }
 0x34a   :  { %6838 = vrsqrt.f32 %v356_v8  ;;  %v341_v9 = vpop.xlane.xlu0 %340 }
 0x34b   :  { %v352_v10 = vmul.f32 0.03125, %v341_v9 }
 0x34d   :  { %v357_v11 = vadd.f32 1e-05, %v352_v10 }
 0x34e   :  { %v344_v12 = vpop.xlane.xlu1 %343 }
 0x34f   :  { %6840 = vrsqrt.f32 %v357_v11  ;;  %v353_v13 = vmul.f32 0.03125, %v344_v12 }
 0x351   :  { %v358_v14 = vadd.f32 1e-05, %v353_v13 }
 0x352   :  { %v347_v16 = vpop.xlane.xlu0 %346 }
 0x353   :  { %6842 = vrsqrt.f32 %v358_v14  ;;  %v354_v17 = vmul.f32 0.03125, %v347_v16 }
 0x354   :  { %v6839_v18 = vpop.eup %6838 }
 0x355   :  { %v359_v19 = vadd.f32 1e-05, %v354_v17  ;;  %v366_v20 = vmul.f32 %v6839_v18, %v326_v46 }
 0x356   :  { %v350_v21 = vpop.xlane.xlu1 %349 }
 0x357   :  { %6844 = vrsqrt.f32 %v359_v19  ;;  %v355_v23 = vmul.f32 0.03125, %v350_v21  ;;  %v377_v24 = vmul.f32 %v5183_v15, %v366_v20 }
 0x359   :  { %v6841_v26 = vpop.eup %6840  ;;  %v360_v27 = vadd.f32 1e-05, %v355_v23  ;;  %v388_v28 = vadd.f32 %v5184_v22, %v377_v24 }
 0x35a   :  { %v367_v30 = vmul.f32 %v6841_v26, %v327_v52 }
 0x35b   :  { %6846 = vrsqrt.f32 %v360_v27  ;;  %v398_v31 = vmul.f32 %v393_v25, %v388_v28 }
 0x35c   :  { %v378_v32 = vmul.f32 %v5183_v15, %v367_v30 }
 0x35d   :  { %v6843_v33 = vpop.eup %6842  ;;  %v7384_v34 = vadd.f32 %v403_v29, %v398_v31  ;;  %v507_v31 = vld [vmem:[%s8929_s13] sm:$0xff] }
 0x35e   :  { %v389_v36 = vadd.f32 %v5184_v22, %v378_v32  ;;  %v368_v37 = vmul.f32 %v6843_v33, %v328_v56  ;;  %v508_v32 = vld [vmem:[%s8929_s13 + $0x8] sm:$0xff] }
 0x35f   :  { %v420_v39 = vsel %vm303_vm3, %v7384_v34, 0.0  ;;  %v6482_v33 = vpack.c.bf16 %v508_v32, %v507_v31 }
 0x360   :  { %421 = vadd.xlane.f32.xlu0 %v420_v39  ;;  %v399_v41 = vmul.f32 %v394_v35, %v389_v36  ;;  %v379_v42 = vmul.f32 %v5183_v15, %v368_v37  ;;  %v509_v35 = vld [vmem:[%s8929_s13 + $0x10] sm:$0xff]  ;;  %v510_v36 = vld [vmem:[%s8929_s13 + $0x18] sm:$0xff] }
 0x361   :  { %v6845_v43 = vpop.eup %6844  ;;  %6483 = vmatpush3.bf16.msra.mxu1 %v6482_v33  ;;  %v6485_v37 = vpack.c.bf16 %v510_v36, %v509_v35 }
 0x362   :  { %v7397_v45 = vadd.f32 %v404_v40, %v399_v41  ;;  %v390_v46 = vadd.f32 %v5184_v22, %v379_v42  ;;  %v369_v48 = vmul.f32 %v6845_v43, %v329_v61  ;;  %6484 = vmatprep.subr.bf16.mxu1 %v7104_v38 }
 0x364   :  { %v423_v50 = vsel %vm303_vm3, %v7397_v45, 0.0  ;;  %v400_v51 = vmul.f32 %v395_v44, %v390_v46  ;;  %v380_v52 = vmul.f32 %v5183_v15, %v369_v48 }
 0x365   :  { %v6847_v53 = vpop.eup %6846  ;;  %424 = vadd.xlane.f32.xlu1 %v423_v50  ;;  %6486 = vmatpush3.bf16.msra.mxu1 %v6485_v37 }
 0x366   :  { %v7407_v55 = vadd.f32 %v405_v49, %v400_v51  ;;  %v391_v56 = vadd.f32 %v5184_v22, %v380_v52  ;;  %v370_v57 = vmul.f32 %v6847_v53, %v330_v2  ;;  %6487 = vmatprep.subr.bf16.mxu1 %v7104_v38  ;;  %v5185_v53 = vld [vmem:[%s8927_s11] ss:$0 sm:$0xff] }
 0x368   :  { %v426_v59 = vsel %vm303_vm3, %v7407_v55, 0.0  ;;  %v401_v60 = vmul.f32 %v396_v54, %v391_v56  ;;  %v381_v61 = vmul.f32 %v5183_v15, %v370_v57 }
 0x369   :  { %427 = vadd.xlane.f32.xlu0 %v426_v59 }
 0x36a   :  { %v7417_v63 = vadd.f32 %v406_v58, %v401_v60  ;;  %v392_v0 = vadd.f32 %v5184_v22, %v381_v61  ;;  %v5186_v58 = vld [vmem:[%s8928_s12] ss:$0 sm:$0xff] }
 0x36c   :  { %v429_v2 = vsel %vm303_vm3, %v7417_v63, 0.0  ;;  %v402_v3 = vmul.f32 %v397_v62, %v392_v0 }
 0x36d   :  { %430 = vadd.xlane.f32.xlu1 %v429_v2 }
 0x36e   :  { %v7424_v4 = vadd.f32 %v407_v1, %v402_v3 }
 0x370   :  { %v432_v5 = vsel %vm316_vm4, %v7424_v4, 0.0 }
 0x371   :  { %433 = vadd.xlane.f32.xlu0 %v432_v5 }
 0x3ed   :  { %v422_v6 = vpop.xlane.xlu0 %421 }
 0x3ee   :  { %v435_v7 = vmul.f32 0.03125, %v422_v6 }
 0x3f0   :  { %v440_v8 = vsub.f32 %v7384_v34, %v435_v7 }
 0x3f2   :  { %v425_v9 = vpop.xlane.xlu1 %424  ;;  %v445_v10 = vmul.f32 %v440_v8, %v440_v8 }
 0x3f3   :  { %v436_v11 = vmul.f32 0.03125, %v425_v9 }
 0x3f4   :  { %v450_v12 = vsel %vm303_vm3, %v445_v10, 0.0 }
 0x3f5   :  { %v441_v13 = vsub.f32 %v7397_v45, %v436_v11  ;;  %451 = vadd.xlane.f32.xlu1 %v450_v12 }
 0x3f6   :  { %v428_v14 = vpop.xlane.xlu0 %427 }
 0x3f7   :  { %v437_v16 = vmul.f32 0.03125, %v428_v14  ;;  %v446_v17 = vmul.f32 %v441_v13, %v441_v13 }
 0x3f9   :  { %v442_v18 = vsub.f32 %v7407_v55, %v437_v16  ;;  %v453_v15 = vsel %vm303_vm3, %v446_v17, 0.0 }
 0x3fa   :  { %454 = vadd.xlane.f32.xlu0 %v453_v15  ;;  %v431_v19 = vpop.xlane.xlu1 %430 }
 0x3fb   :  { %v438_v20 = vmul.f32 0.03125, %v431_v19  ;;  %v447_v21 = vmul.f32 %v442_v18, %v442_v18 }
 0x3fd   :  { %v443_v22 = vsub.f32 %v7417_v63, %v438_v20  ;;  %v456_v23 = vsel %vm303_vm3, %v447_v21, 0.0 }
 0x3fe   :  { %457 = vadd.xlane.f32.xlu1 %v456_v23  ;;  %v434_v24 = vpop.xlane.xlu0 %433 }
 0x3ff   :  { %v439_v25 = vmul.f32 0.03125, %v434_v24  ;;  %v448_v26 = vmul.f32 %v443_v22, %v443_v22 }
 0x401   :  { %v444_v27 = vsub.f32 %v7424_v4, %v439_v25  ;;  %v459_v28 = vsel %vm303_vm3, %v448_v26, 0.0 }
 0x402   :  { %460 = vadd.xlane.f32.xlu0 %v459_v28 }
 0x403   :  { %v449_v29 = vmul.f32 %v444_v27, %v444_v27 }
 0x405   :  { %v462_v30 = vsel %vm316_vm4, %v449_v29, 0.0 }
 0x406   :  { %463 = vadd.xlane.f32.xlu1 %v462_v30 }
 0x482   :  { %v452_v39 = vpop.xlane.xlu1 %451 }
 0x483   :  { %v465_v40 = vmul.f32 0.03125, %v452_v39 }
 0x485   :  { %v470_v41 = vadd.f32 1e-05, %v465_v40 }
 0x487   :  { %6848 = vrsqrt.f32 %v470_v41  ;;  %v455_v42 = vpop.xlane.xlu0 %454 }
 0x488   :  { %v466_v43 = vmul.f32 0.03125, %v455_v42 }
 0x48a   :  { %v471_v44 = vadd.f32 1e-05, %v466_v43 }
 0x48b   :  { %v458_v46 = vpop.xlane.xlu1 %457 }
 0x48c   :  { %6850 = vrsqrt.f32 %v471_v44  ;;  %v467_v48 = vmul.f32 0.03125, %v458_v46 }
 0x48e   :  { %v472_v49 = vadd.f32 1e-05, %v467_v48 }
 0x48f   :  { %v461_v50 = vpop.xlane.xlu0 %460 }
 0x490   :  { %6852 = vrsqrt.f32 %v472_v49  ;;  %v468_v51 = vmul.f32 0.03125, %v461_v50 }
 0x491   :  { %v6849_v52 = vpop.eup %6848 }
 0x492   :  { %v473_v54 = vadd.f32 1e-05, %v468_v51  ;;  %v480_v56 = vmul.f32 %v6849_v52, %v440_v8 }
 0x493   :  { %v464_v57 = vpop.xlane.xlu1 %463 }
 0x494   :  { %6854 = vrsqrt.f32 %v473_v54  ;;  %v469_v59 = vmul.f32 0.03125, %v464_v57  ;;  %v491_v60 = vmul.f32 %v5185_v53, %v480_v56 }
 0x496   :  { %v6851_v61 = vpop.eup %6850  ;;  %v474_v62 = vadd.f32 1e-05, %v469_v59  ;;  %v502_v0 = vadd.f32 %v5186_v58, %v491_v60  ;;  %v7573_v59 = vld [vmem:[%s8980_s0] sm:$0xff] }
 0x497   :  { %v481_v1 = vmul.f32 %v6851_v61, %v441_v13 }
 0x498   :  { %6856 = vrsqrt.f32 %v474_v62  ;;  %5764 = vmatmul.mubr.msk.f32.vlgmr.msra.gmra.mrb[0].mxu1 %vm303_vm3, %v502_v0 }
 0x499   :  { %5766 = vmatprep.mubr.msk.f32.mxu1 %vm7105_vm2, %v7106_v47  ;;  %v492_v2 = vmul.f32 %v5185_v53, %v481_v1  ;;  %v7581_v1 = vld [vmem:[%s8980_s0 + $0x8] sm:$0xff] }
 0x49a   :  { %v6853_v3 = vpop.eup %6852 }
 0x49b   :  { %v503_v5 = vadd.f32 %v5186_v58, %v492_v2  ;;  %v482_v6 = vmul.f32 %v6853_v3, %v442_v18 }
 0x49d   :  { %5767 = vmatmul.mubr.msk.f32.gmra.mrb[2].mxu1 %vm303_vm3, %v503_v5  ;;  %v493_v7 = vmul.f32 %v5185_v53, %v482_v6 }
 0x49e   :  { %v6855_v8 = vpop.eup %6854  ;;  %5769 = vmatprep.mubr.msk.f32.mxu1 %vm7105_vm2, %v7106_v47 }
 0x49f   :  { %v504_v9 = vadd.f32 %v5186_v58, %v493_v7  ;;  %v483_v10 = vmul.f32 %v6855_v8, %v443_v22  ;;  %v7591_v8 = vld [vmem:[%s8980_s0 + $0x10] sm:$0xff] }
 0x4a1   :  { %5770 = vmatmul.mubr.msk.f32.gmra.mrb[4].mxu1 %vm303_vm3, %v504_v9  ;;  %v494_v11 = vmul.f32 %v5185_v53, %v483_v10 }
 0x4a2   :  { %v6857_v12 = vpop.eup %6856  ;;  %5772 = vmatprep.mubr.msk.f32.mxu1 %vm7105_vm2, %v7106_v47 }
 0x4a3   :  { %v505_v13 = vadd.f32 %v5186_v58, %v494_v11  ;;  %v484_v14 = vmul.f32 %v6857_v12, %v444_v27 }
 0x4a5   :  { %5773 = vmatmul.mubr.msk.f32.gmra.mrb[6].mxu1 %vm303_vm3, %v505_v13  ;;  %v495_v16 = vmul.f32 %v5185_v53, %v484_v14  ;;  %v7599_v14 = vld [vmem:[%s8980_s0 + $0x18] sm:$0xff] }
 0x4a6   :  { %5775 = vmatprep.mubr.msk.f32.mxu1 %vm7105_vm2, %v7106_v47 }
 0x4a7   :  { %v506_v17 = vadd.f32 %v5186_v58, %v495_v16 }
 0x4a9   :  { %5776 = vmatmul.mubr.msk.f32.gmra.mrb[8].mxu1 %vm303_vm3, %v506_v17 }
 0x4aa   :  { %5788 = vmatprep.mubr.msk.f32.mxu1 %vm7105_vm2, %v7106_v47 }
 0x56b   :  { %v7473_v18 = vpop.f32.mrb[0].mxu1 }
 0x56c   :  { %v5765_v15 = vpop.f32.mrb[1].mxu1 }
 0x570   :  { %v7475_v19 = vpop.f32.mrb[2].mxu1 }
 0x571   :  { %v5768_v20 = vpop.f32.mrb[3].mxu1  ;;  %v7479_v21 = vpack.i.bf16 %v7475_v19, %v7473_v18 }
 0x573   :  { %6669 = vrot.lane.b32.xlu0 %v7479_v21, %s7107_s8 }
 0x574   :  { %v7483_v22 = vpop.f32.mrb[4].mxu1 }
 0x575   :  { %v5771_v23 = vpop.f32.mrb[5].mxu1 }
 0x578   :  { %v7485_v24 = vpop.f32.mrb[6].mxu1 }
 0x579   :  { %v5774_v25 = vpop.f32.mrb[7].mxu1  ;;  %v7489_v26 = vpack.i.bf16 %v7485_v24, %v7483_v22 }
 0x57a   :  { %v7606_v25 = vld [vmem:[%s8980_s0 + $0x20] sm:$0x3] }
 0x57b   :  { %6684 = vrot.lane.b32.xlu0 %v7489_v26, %s7108_s4  ;;  %6674 = vrot.lane.b32.xlu1 %v7489_v26, %s7107_s8 }
 0x57c   :  { %v7495_v27 = vpop.f32.mrb[8].mxu1 }
 0x57d   :  { %v5777_v28 = vpop.f32.mrb[9].mxu1 }
 0x57f   :  { %935 = vrot.lane.b32.xlu0 %v7473_v18, %s7109_s29  ;;  %633 = vrot.lane.b32.xlu1 %v7495_v27, %s7107_s8 }
 0x583   :  { %939 = vrot.lane.b32.xlu0 %v7483_v22, %s7109_s29  ;;  %6679 = vrot.lane.b32.xlu1 %v7479_v21, %s7108_s4 }
 0x587   :  { %943 = vrot.lane.b32.xlu0 %v7495_v27, %s7109_s29  ;;  %953 = vrot.lane.b32.xlu1 %v7495_v27, %s7108_s4 }
 0x58b   :  { %937 = vrot.lane.b32.xlu1 %v7475_v19, %s7109_s29 }
 0x58f   :  { %941 = vrot.lane.b32.xlu1 %v7485_v24, %s7109_s29 }
 0x5e5   :  { %v6670_v29 = vpop.permute.xlu0 %6669 }
 0x5e6   :  { %v6672_v30 = vunpack.i.h.bf16 %v6670_v29  ;;  %v6671_v31 = vunpack.i.l.bf16 %v6670_v29 }
 0x5e8   :  { %v6488_v33 = vpack.c.bf16 %v6672_v30, %v6671_v31 }
 0x5ea   :  { %6490 = vmatpush3.bf16.xpose.msk.msra.mxu1 %vm7515_vm6, %v6488_v33 }
 0x5eb   :  { %6491 = vmatprep.subr.bf16.mxu1 %v7104_v38 }
 0x5ed   :  { %v6675_v35 = vpop.permute.xlu1 %6674  ;;  %v6685_v46 = vpop.permute.xlu0 %6684 }
 0x5ee   :  { %v6677_v36 = vunpack.i.h.bf16 %v6675_v35  ;;  %v6676_v37 = vunpack.i.l.bf16 %v6675_v35  ;;  %v6687_v48 = vunpack.i.h.bf16 %v6685_v46  ;;  %v6686_v49 = vunpack.i.l.bf16 %v6685_v46 }
 0x5f0   :  { %v6492_v39 = vpack.c.bf16 %v6677_v36, %v6676_v37  ;;  %v6506_v50 = vpack.c.bf16 %v6687_v48, %v6686_v49 }
 0x5f1   :  { %v634_v40 = vpop.permute.xlu1 %633  ;;  %v936_v52 = vpop.permute.xlu0 %935 }
 0x5f2   :  { %6494 = vmatpush3.bf16.xpose.msk.msra.mxu1 %vm7515_vm6, %v6492_v39 }
 0x5f3   :  { %5786 = vmatprep.subr.mxu1 %v7106_v47 }
 0x5f5   :  { %v6680_v41 = vpop.permute.xlu1 %6679  ;;  %v940_v54 = vpop.permute.xlu0 %939 }
 0x5f6   :  { %v6682_v42 = vunpack.i.h.bf16 %v6680_v41  ;;  %v6681_v43 = vunpack.i.l.bf16 %v6680_v41 }
 0x5f8   :  { %v6502_v44 = vpack.c.bf16 %v6682_v42, %v6681_v43 }
 0x5f9   :  { %v954_v51 = vpop.permute.xlu1 %953  ;;  %v944_v57 = vpop.permute.xlu0 %943 }
 0x5fa   :  { %5787 = vmatpush3.xpose.msk.msra.mxu1 %vm635_vm5, %v634_v40 }
 0x5fb   :  { %6501 = vmatprep.subr.bf16.mxu1 %v7104_v38 }
 0x5fd   :  { %5789 = vmatmul.mubr.msk.f32.vlgmr.msra.gmra.mrb[10].mxu1 %vm635_vm5, %v7473_v18  ;;  %v938_v53 = vpop.permute.xlu1 %937 }
 0x5fe   :  { %6504 = vmatpush3.bf16.xpose.msk.msra.mxu1 %vm7515_vm6, %v6502_v44  ;;  %5791 = vmatprep.mubr.msk.f32.mxu1 %vm7105_vm2, %v7106_v47 }
 0x5ff   :  { %6505 = vmatprep.subr.bf16.mxu1 %v7104_v38 }
 0x601   :  { %5792 = vmatmul.mubr.msk.f32.gmra.mrb[12].mxu1 %vm635_vm5, %v7475_v19  ;;  %v942_v56 = vpop.permute.xlu1 %941 }
 0x602   :  { %5794 = vmatprep.mubr.msk.f32.mxu1 %vm7105_vm2, %v7106_v47 }
 0x605   :  { %5795 = vmatmul.mubr.msk.f32.gmra.mrb[14].mxu1 %vm635_vm5, %v7483_v22 }
 0x606   :  { %6508 = vmatpush3.bf16.xpose.msk.msra.mxu1 %vm7515_vm6, %v6506_v50  ;;  %5797 = vmatprep.mubr.msk.f32.mxu1 %vm7105_vm2, %v7106_v47 }
 0x607   :  { %5836 = vmatprep.subr.mxu1 %v7106_v47 }
 0x609   :  { %5798 = vmatmul.mubr.msk.f32.gmra.mrb[16].mxu1 %vm635_vm5, %v7485_v24 }
 0x60a   :  { %5800 = vmatprep.mubr.msk.f32.mxu1 %vm7105_vm2, %v7106_v47 }
 0x60d   :  { %5801 = vmatmul.mubr.msk.f32.gmra.mrb[18].mxu1 %vm635_vm5, %v7495_v27 }
 0x60e   :  { %5837 = vmatpush3.xpose.msk.msra.mxu1 %vm635_vm5, %v954_v51  ;;  %5838 = vmatprep.mubr.msk.f32.mxu1 %vm7105_vm2, %v7106_v47 }
 0x60f   :  { %5878 = vmatprep.subr.mxu1 %v7106_v47 }
 0x611   :  { %5839 = vmatmul.mubr.msk.f32.vlgmr.msra.gmra.mrb[20].mxu1 %vm635_vm5, %v936_v52 }
 0x612   :  { %5841 = vmatprep.mubr.msk.f32.mxu1 %vm7105_vm2, %v7106_v47 }
 0x615   :  { %5842 = vmatmul.mubr.msk.f32.gmra.mrb[22].mxu1 %vm635_vm5, %v938_v53 }
 0x616   :  { %5844 = vmatprep.mubr.msk.f32.mxu1 %vm7105_vm2, %v7106_v47 }
 0x619   :  { %5845 = vmatmul.mubr.msk.f32.gmra.mrb[24].mxu1 %vm635_vm5, %v940_v54 }
 0x61a   :  { %5847 = vmatprep.mubr.msk.f32.mxu1 %vm7105_vm2, %v7106_v47 }
 0x61d   :  { %5848 = vmatmul.mubr.msk.f32.gmra.mrb[26].mxu1 %vm635_vm5, %v942_v56 }
 0x61e   :  { %5850 = vmatprep.mubr.msk.f32.mxu1 %vm7105_vm2, %v7106_v47 }
 0x621   :  { %5851 = vmatmul.mubr.msk.f32.gmra.mrb[28].mxu1 %vm635_vm5, %v944_v57 }
 0x622   :  { %5880 = vmatprep.mubr.msk.f32.mxu1 %vm7105_vm2, %v7106_v47 }
 0x6d0   :  { %v722_v58 = vpop.f32.mrb[10].mxu1 }
 0x6d1   :  { %v746_v60 = vmul.f32 0.35355338, %v722_v58  ;;  %v5790_v61 = vpop.f32.mrb[11].mxu1 }
 0x6d3   :  { %v7576_v62 = vadd.f32 %v746_v60, %v7573_v59 }
 0x6d4   :  { %v727_v0 = vpop.f32.mrb[12].mxu1 }
 0x6d5   :  { %v747_v2 = vmul.f32 0.35355338, %v727_v0  ;;  %v5793_v3 = vpop.f32.mrb[13].mxu1  ;;  %v757_v5 = vsel %vm756_vm7, %v7576_v62, -inf }
 0x6d6   :  { %758 = vmax.xlane.f32.xlu1 %v757_v5 }
 0x6d7   :  { %v7586_v6 = vadd.f32 %v747_v2, %v7581_v1 }
 0x6d8   :  { %v732_v7 = vpop.f32.mrb[14].mxu1 }
 0x6d9   :  { %v748_v9 = vmul.f32 0.35355338, %v732_v7  ;;  %v5796_v10 = vpop.f32.mrb[15].mxu1  ;;  %v760_v11 = vsel %vm756_vm7, %v7586_v6, -inf }
 0x6da   :  { %761 = vmax.xlane.f32.xlu0 %v760_v11 }
 0x6db   :  { %v753_v12 = vadd.f32 %v748_v9, %v7591_v8 }
 0x6dc   :  { %v737_v13 = vpop.f32.mrb[16].mxu1 }
 0x6dd   :  { %v749_v16 = vmul.f32 0.35355338, %v737_v13  ;;  %v5799_v17 = vpop.f32.mrb[17].mxu1  ;;  %v763_v15 = vsel %vm756_vm7, %v753_v12, -inf }
 0x6de   :  { %764 = vmax.xlane.f32.xlu0 %v763_v15 }
 0x6df   :  { %v754_v20 = vadd.f32 %v749_v16, %v7599_v14 }
 0x6e0   :  { %v742_v23 = vpop.f32.mrb[18].mxu1 }
 0x6e1   :  { %v750_v28 = vmul.f32 0.35355338, %v742_v23  ;;  %v5802_v29 = vpop.f32.mrb[19].mxu1  ;;  %v766_v30 = vsel %vm756_vm7, %v754_v20, -inf }
 0x6e2   :  { %767 = vmax.xlane.f32.xlu0 %v766_v30 }
 0x6e3   :  { %v755_v31 = vadd.f32 %v750_v28, %v7606_v25 }
 0x6e4   :  { %v1041_v33 = vpop.f32.mrb[20].mxu1 }
 0x6e5   :  { %v1065_v35 = vmul.f32 0.35355338, %v1041_v33  ;;  %v5840_v36 = vpop.f32.mrb[21].mxu1  ;;  %v770_v37 = vsel %vm769_vm8, %v755_v31, -inf }
 0x6e6   :  { %771 = vmax.xlane.f32.xlu1 %v770_v37 }
 0x6e7   :  { %v1070_v39 = vadd.f32 %v1065_v35, %v7573_v59 }
 0x6e8   :  { %v1046_v40 = vpop.f32.mrb[22].mxu1 }
 0x6e9   :  { %v1066_v41 = vmul.f32 0.35355338, %v1046_v40  ;;  %v5843_v42 = vpop.f32.mrb[23].mxu1  ;;  %v1075_v43 = vsel %vm756_vm7, %v1070_v39, -inf }
 0x6ea   :  { %1076 = vmax.xlane.f32.xlu0 %v1075_v43 }
 0x6eb   :  { %v1071_v44 = vadd.f32 %v1066_v41, %v7581_v1 }
 0x6ec   :  { %v1051_v46 = vpop.f32.mrb[24].mxu1 }
 0x6ed   :  { %v1067_v48 = vmul.f32 0.35355338, %v1051_v46  ;;  %v5846_v49 = vpop.f32.mrb[25].mxu1  ;;  %v1078_v50 = vsel %vm756_vm7, %v1071_v44, -inf }
 0x6ee   :  { %1079 = vmax.xlane.f32.xlu1 %v1078_v50 }
 0x6ef   :  { %v1072_v51 = vadd.f32 %v1067_v48, %v7591_v8 }
 0x6f0   :  { %v1056_v52 = vpop.f32.mrb[26].mxu1 }
 0x6f1   :  { %v1068_v53 = vmul.f32 0.35355338, %v1056_v52  ;;  %v5849_v54 = vpop.f32.mrb[27].mxu1  ;;  %v1081_v56 = vsel %vm756_vm7, %v1072_v51, -inf }
 0x6f2   :  { %1082 = vmax.xlane.f32.xlu0 %v1081_v56 }
 0x6f3   :  { %v7618_v57 = vadd.f32 %v1068_v53, %v7599_v14 }
 0x6f4   :  { %v1061_v58 = vpop.f32.mrb[28].mxu1 }
 0x6f5   :  { %v5852_v60 = vpop.f32.mrb[29].mxu1  ;;  %v1084_v61 = vsel %vm756_vm7, %v7618_v57, -inf  ;;  %v1069_v0 = vmul.f32 0.35355338, %v1061_v58 }
 0x6f6   :  { %1085 = vmax.xlane.f32.xlu1 %v1084_v61 }
 0x6f7   :  { %v7627_v2 = vadd.f32 %v1069_v0, %v7606_v25 }
 0x6f9   :  { %v1087_v3 = vsel %vm769_vm8, %v7627_v2, -inf }
 0x707   :  { %6694 = vrot.lane.b32.xlu1 %v7489_v26, %s7110_s7 }
 0x708   :  { %6689 = vrot.lane.b32.xlu0 %v7479_v21, %s7110_s7 }
 0x727   :  { %1088 = vmax.xlane.f32.xlu0 %v1087_v3 }
 0x73d   :  { %821 = vrot.lane.b32.xlu0 %v7495_v27, %s7110_s7 }
 0x763   :  { %v759_v5 = vpop.xlane.xlu1 %758 }
 0x764   :  { %v773_v7 = vsub.f32 %v7576_v62, %v759_v5 }
 0x766   :  { %v778_v9 = vmul.f32 1.442695, %v773_v7 }
 0x767   :  { %v762_v10 = vpop.xlane.xlu0 %761 }
 0x768   :  { %6858 = vpow2.f32 %v778_v9  ;;  %v774_v11 = vsub.f32 %v7586_v6, %v762_v10 }
 0x76a   :  { %v780_v13 = vmul.f32 1.442695, %v774_v11 }
 0x76b   :  { %v765_v16 = vpop.xlane.xlu0 %764 }
 0x76c   :  { %6860 = vpow2.f32 %v780_v13  ;;  %v775_v17 = vsub.f32 %v753_v12, %v765_v16 }
 0x76e   :  { %v782_v15 = vmul.f32 1.442695, %v775_v17 }
 0x76f   :  { %v768_v23 = vpop.xlane.xlu0 %767 }
 0x770   :  { %6862 = vpow2.f32 %v782_v15  ;;  %v776_v28 = vsub.f32 %v754_v20, %v768_v23 }
 0x772   :  { %v7635_v29 = vpop.eup %6858  ;;  %v784_v30 = vmul.f32 1.442695, %v776_v28 }
 0x773   :  { %v772_v33 = vpop.xlane.xlu1 %771  ;;  %v788_v62 = vsel %vm756_vm7, %v7635_v29, 0.0 }
 0x774   :  { %6864 = vpow2.f32 %v784_v30  ;;  %v777_v35 = vsub.f32 %v755_v31, %v772_v33  ;;  %789 = vadd.xlane.f32.xlu1 %v788_v62 }
 0x776   :  { %v7639_v36 = vpop.eup %6860  ;;  %v786_v6 = vmul.f32 1.442695, %v777_v35 }
 0x777   :  { %v1077_v37 = vpop.xlane.xlu0 %1076  ;;  %v791_v12 = vsel %vm756_vm7, %v7639_v36, 0.0 }
 0x778   :  { %6866 = vpow2.f32 %v786_v6  ;;  %v1090_v40 = vsub.f32 %v1070_v39, %v1077_v37  ;;  %792 = vadd.xlane.f32.xlu0 %v791_v12 }
 0x77a   :  { %v7643_v20 = vpop.eup %6862  ;;  %v1095_v41 = vmul.f32 1.442695, %v1090_v40 }
 0x77b   :  { %v1080_v42 = vpop.xlane.xlu1 %1079  ;;  %v794_v43 = vsel %vm756_vm7, %v7643_v20, 0.0 }
 0x77c   :  { %6868 = vpow2.f32 %v1095_v41  ;;  %v1091_v31 = vsub.f32 %v1071_v44, %v1080_v42  ;;  %795 = vadd.xlane.f32.xlu1 %v794_v43 }
 0x77e   :  { %v7647_v46 = vpop.eup %6864  ;;  %v1097_v48 = vmul.f32 1.442695, %v1091_v31 }
 0x77f   :  { %v1083_v49 = vpop.xlane.xlu0 %1082  ;;  %v797_v50 = vsel %vm756_vm7, %v7647_v46, 0.0 }
 0x780   :  { %6870 = vpow2.f32 %v1097_v48  ;;  %v1092_v39 = vsub.f32 %v1072_v51, %v1083_v49  ;;  %798 = vadd.xlane.f32.xlu0 %v797_v50 }
 0x782   :  { %v7651_v52 = vpop.eup %6866  ;;  %v1099_v53 = vmul.f32 1.442695, %v1092_v39 }
 0x783   :  { %v6690_v54 = vpop.permute.xlu0 %6689  ;;  %v1086_v56 = vpop.xlane.xlu1 %1085  ;;  %v800_v58 = vsel %vm769_vm8, %v7651_v52, 0.0 }
 0x784   :  { %6872 = vpow2.f32 %v1099_v53  ;;  %v6692_v44 = vunpack.i.h.bf16 %v6690_v54  ;;  %v6691_v60 = vunpack.i.l.bf16 %v6690_v54  ;;  %v1093_v61 = vsub.f32 %v7618_v57, %v1086_v56  ;;  %801 = vadd.xlane.f32.xlu1 %v800_v58 }
 0x786   :  { %v7656_v0 = vpop.eup %6868  ;;  %v6496_v3 = vpack.c.bf16 %v6692_v44, %v6691_v60  ;;  %v1101_v5 = vmul.f32 1.442695, %v1093_v61 }
 0x787   :  { %v6695_v51 = vpop.permute.xlu1 %6694  ;;  %v1105_v7 = vsel %vm756_vm7, %v7656_v0, 0.0 }
 0x788   :  { %6874 = vpow2.f32 %v1101_v5  ;;  %v6697_v9 = vunpack.i.h.bf16 %v6695_v51  ;;  %v6696_v10 = vunpack.i.l.bf16 %v6695_v51  ;;  %6497 = vmatpush3.bf16.msra.mxu0 %v6496_v3  ;;  %1106 = vadd.xlane.f32.xlu1 %v1105_v7 }
 0x789   :  { %6498 = vmatprep.subr.bf16.mxu0 %v7104_v38 }
 0x78a   :  { %v7661_v11 = vpop.eup %6870  ;;  %v6499_v13 = vpack.c.bf16 %v6697_v9, %v6696_v10 }
 0x78b   :  { %v1108_v57 = vsel %vm756_vm7, %v7661_v11, 0.0 }
 0x78c   :  { %6500 = vmatpush3.bf16.msra.mxu0 %v6499_v13  ;;  %1109 = vadd.xlane.f32.xlu0 %v1108_v57  ;;  %v616_v57 = vld [vmem:[%s8930_s14] sm:$0xff] }
 0x78d   :  { %5811 = vmatprep.subr.mxu0 %v7106_v47 }
 0x78e   :  { %v7666_v16 = vpop.eup %6872 }
 0x78f   :  { %v1111_v17 = vsel %vm756_vm7, %v7666_v16, 0.0 }
 0x790   :  { %1112 = vadd.xlane.f32.xlu1 %v1111_v17 }
 0x792   :  { %v7670_v15 = vpop.eup %6874 }
 0x793   :  { %v1114_v23 = vsel %vm756_vm7, %v7670_v15, 0.0 }
 0x794   :  { %1115 = vadd.xlane.f32.xlu1 %v1114_v23 }
 0x7a2   :  { %6704 = vrot.lane.b32.xlu0 %v7489_v26, %s7111_s27 }
 0x7a6   :  { %1138 = vrot.lane.b32.xlu0 %v7495_v27, %s7111_s27 }
 0x7aa   :  { %6714 = vrot.lane.b32.xlu0 %v7489_v26, %s7112_s28 }
 0x7ae   :  { %1461 = vrot.lane.b32.xlu0 %v7473_v18, %s8956_s9 }
 0x7b2   :  { %1465 = vrot.lane.b32.xlu0 %v7483_v22, %s8956_s9 }
 0x7b4   :  { %v1089_v28 = vpop.xlane.xlu0 %1088 }
 0x7b5   :  { %v1094_v30 = vsub.f32 %v7627_v2, %v1089_v28 }
 0x7b6   :  { %1469 = vrot.lane.b32.xlu0 %v7495_v27, %s8956_s9 }
 0x7b7   :  { %v1103_v33 = vmul.f32 1.442695, %v1094_v30 }
 0x7b8   :  { %v822_v62 = vpop.permute.xlu0 %821 }
 0x7b9   :  { %6876 = vpow2.f32 %v1103_v33  ;;  %5812 = vmatpush3.msk.msra.mxu0 %vm842_vm9, %v822_v62 }
 0x7ba   :  { %6509 = vmatprep.subr.bf16.mxu0 %v7104_v38 }
 0x7c3   :  { %v7689_v35 = vpop.eup %6876 }
 0x7c4   :  { %v1117_v6 = vsel %vm769_vm8, %v7689_v35, 0.0 }
 0x7c5   :  { %1118 = vadd.xlane.f32.xlu1 %v1117_v6 }
 0x7d6   :  { %6699 = vrot.lane.b32.xlu1 %v7479_v21, %s7111_s27 }
 0x7da   :  { %6709 = vrot.lane.b32.xlu1 %v7479_v21, %s7112_s28 }
 0x7de   :  { %1479 = vrot.lane.b32.xlu1 %v7495_v27, %s7112_s28 }
 0x7e2   :  { %1463 = vrot.lane.b32.xlu1 %v7475_v19, %s8956_s9 }
 0x7e6   :  { %1467 = vrot.lane.b32.xlu1 %v7485_v24, %s8956_s9  ;;  %s8982_s9 = smov 48  }
 0x801   :  { %v790_v2 = vpop.xlane.xlu1 %789 }
 0x802   :  { %6878 = vrcp.f32 %v790_v2 }
 0x805   :  { %v793_v37 = vpop.xlane.xlu0 %792 }
 0x806   :  { %6880 = vrcp.f32 %v793_v37 }
 0x809   :  { %v796_v12 = vpop.xlane.xlu1 %795 }
 0x80a   :  { %6882 = vrcp.f32 %v796_v12 }
 0x80c   :  { %v6879_v40 = vpop.eup %6878 }
 0x80d   :  { %v808_v41 = vmul.f32 %v6879_v40, %v7635_v29  ;;  %v799_v42 = vpop.xlane.xlu0 %798 }
 0x80e   :  { %6884 = vrcp.f32 %v799_v42 }
 0x80f   :  { %5814 = vmatmul.mubr.msk.f32.vlgmr.msra.gmra.mrb[10].mxu0 %vm756_vm7, %v808_v41 }
 0x810   :  { %v6881_v43 = vpop.eup %6880  ;;  %5816 = vmatprep.mubr.msk.f32.mxu0 %vm7105_vm2, %v7106_v47 }
 0x811   :  { %v802_v31 = vpop.xlane.xlu1 %801  ;;  %v809_v48 = vmul.f32 %v6881_v43, %v7639_v36 }
 0x812   :  { %6886 = vrcp.f32 %v802_v31 }
 0x813   :  { %5817 = vmatmul.mubr.msk.f32.gmra.mrb[12].mxu0 %vm756_vm7, %v809_v48 }
 0x814   :  { %v6883_v49 = vpop.eup %6882  ;;  %5819 = vmatprep.mubr.msk.f32.mxu0 %vm7105_vm2, %v7106_v47 }
 0x815   :  { %v810_v29 = vmul.f32 %v6883_v49, %v7643_v20  ;;  %v1107_v20 = vpop.xlane.xlu1 %1106 }
 0x816   :  { %6888 = vrcp.f32 %v1107_v20 }
 0x817   :  { %5820 = vmatmul.mubr.msk.f32.gmra.mrb[14].mxu0 %vm756_vm7, %v810_v29 }
 0x818   :  { %v6885_v50 = vpop.eup %6884  ;;  %5822 = vmatprep.mubr.msk.f32.mxu0 %vm7105_vm2, %v7106_v47 }
 0x819   :  { %v811_v39 = vmul.f32 %v6885_v50, %v7647_v46  ;;  %v1110_v58 = vpop.xlane.xlu0 %1109 }
 0x81a   :  { %6890 = vrcp.f32 %v1110_v58 }
 0x81b   :  { %5823 = vmatmul.mubr.msk.f32.gmra.mrb[16].mxu0 %vm756_vm7, %v811_v39 }
 0x81c   :  { %v6887_v36 = vpop.eup %6886  ;;  %5825 = vmatprep.mubr.msk.f32.mxu0 %vm7105_vm2, %v7106_v47 }
 0x81d   :  { %v812_v53 = vmul.f32 %v6887_v36, %v7651_v52  ;;  %v1113_v54 = vpop.xlane.xlu1 %1112  ;;  %v6705_v46 = vpop.permute.xlu0 %6704 }
 0x81e   :  { %v6707_v5 = vunpack.i.h.bf16 %v6705_v46  ;;  %v6706_v51 = vunpack.i.l.bf16 %v6705_v46  ;;  %6892 = vrcp.f32 %v1113_v54 }
 0x81f   :  { %5826 = vmatmul.mubr.msk.f32.gmra.mrb[18].mxu0 %vm756_vm7, %v812_v53 }
 0x820   :  { %5863 = vmatprep.mubr.msk.f32.mxu0 %vm7105_vm2, %v7106_v47  ;;  %v6513_v52 = vpack.c.bf16 %v6707_v5, %v6706_v51  ;;  %v6889_v9 = vpop.eup %6888 }
 0x821   :  { %v1116_v56 = vpop.xlane.xlu1 %1115  ;;  %v1125_v10 = vmul.f32 %v6889_v9, %v7656_v0  ;;  %v1139_v13 = vpop.permute.xlu0 %1138 }
 0x822   :  { %6894 = vrcp.f32 %v1116_v56 }
 0x824   :  { %v6891_v17 = vpop.eup %6890 }
 0x825   :  { %v1126_v23 = vmul.f32 %v6891_v17, %v7661_v11  ;;  %v6715_v39 = vpop.permute.xlu0 %6714 }
 0x826   :  { %v6717_v53 = vunpack.i.h.bf16 %v6715_v39  ;;  %v6716_v20 = vunpack.i.l.bf16 %v6715_v39 }
 0x828   :  { %v6893_v0 = vpop.eup %6892  ;;  %v6520_v58 = vpack.c.bf16 %v6717_v53, %v6716_v20 }
 0x829   :  { %v1127_v28 = vmul.f32 %v6893_v0, %v7666_v16  ;;  %v617_v16 = vld [vmem:[%s8930_s14 + $0x8] sm:$0xff] }
 0x82a   :  { %5879 = vmatpush3.msra.mxu1 %v617_v16 }
 0x82b   :  { %6515 = vmatprep.subr.bf16.mxu1 %v7104_v38 }
 0x82c   :  { %v6895_v30 = vpop.eup %6894 }
 0x82d   :  { %v1128_v33 = vmul.f32 %v6895_v30, %v7670_v15 }
 0x852   :  { %v1119_v44 = vpop.xlane.xlu1 %1118 }
 0x853   :  { %6896 = vrcp.f32 %v1119_v44 }
 0x856   :  { %v6700_v60 = vpop.permute.xlu1 %6699 }
 0x857   :  { %v6702_v61 = vunpack.i.h.bf16 %v6700_v60  ;;  %v6701_v3 = vunpack.i.l.bf16 %v6700_v60 }
 0x859   :  { %v6510_v7 = vpack.c.bf16 %v6702_v61, %v6701_v3 }
 0x85a   :  { %v6710_v31 = vpop.permute.xlu1 %6709 }
 0x85b   :  { %6511 = vmatpush3.bf16.msra.mxu0 %v6510_v7  ;;  %v6712_v48 = vunpack.i.h.bf16 %v6710_v31  ;;  %v6711_v49 = vunpack.i.l.bf16 %v6710_v31  ;;  %v1462_v7 = vpop.permute.xlu0 %1461 }
 0x85c   :  { %6512 = vmatprep.subr.bf16.mxu0 %v7104_v38 }
 0x85d   :  { %v6897_v62 = vpop.eup %6896  ;;  %v6516_v29 = vpack.c.bf16 %v6712_v48, %v6711_v49 }
 0x85e   :  { %v1129_v11 = vmul.f32 %v6897_v62, %v7689_v35  ;;  %v1480_v5 = vpop.permute.xlu1 %1479 }
 0x85f   :  { %6514 = vmatpush3.bf16.msra.mxu0 %v6513_v52  ;;  %v1466_v9 = vpop.permute.xlu0 %1465 }
 0x860   :  { %5861 = vmatprep.subr.mxu0 %v7106_v47 }
 0x862   :  { %v1464_v52 = vpop.permute.xlu1 %1463 }
 0x863   :  { %5862 = vmatpush3.msk.msra.mxu0 %vm842_vm9, %v1139_v13  ;;  %v1470_v13 = vpop.permute.xlu0 %1469 }
 0x864   :  { %5864 = vmatmul.mubr.msk.f32.vlgmr.msra.gmra.mrb[20].mxu0 %vm756_vm7, %v1125_v10  ;;  %5895 = vmatprep.subr.mxu0 %v7106_v47 }
 0x865   :  { %5866 = vmatprep.mubr.msk.f32.mxu0 %vm7105_vm2, %v7106_v47  ;;  %5896 = vmatpush3.msra.mxu0 %v616_v57 }
 0x866   :  { %6523 = vmatprep.subr.bf16.mxu0 %v7104_v38  ;;  %v1468_v10 = vpop.permute.xlu1 %1467 }
 0x868   :  { %5867 = vmatmul.mubr.msk.f32.gmra.mrb[22].mxu0 %vm756_vm7, %v1126_v23 }
 0x869   :  { %5869 = vmatprep.mubr.msk.f32.mxu0 %vm7105_vm2, %v7106_v47 }
 0x86c   :  { %5870 = vmatmul.mubr.msk.f32.gmra.mrb[24].mxu0 %vm756_vm7, %v1127_v28 }
 0x86d   :  { %5872 = vmatprep.mubr.msk.f32.mxu0 %vm7105_vm2, %v7106_v47 }
 0x870   :  { %5873 = vmatmul.mubr.msk.f32.gmra.mrb[26].mxu0 %vm756_vm7, %v1128_v33 }
 0x871   :  { %5875 = vmatprep.mubr.msk.f32.mxu0 %vm7105_vm2, %v7106_v47 }
 0x874   :  { %5876 = vmatmul.mubr.msk.f32.gmra.mrb[28].mxu0 %vm756_vm7, %v1129_v11 }
 0x875   :  { %5897 = vmatprep.mubr.msk.f32.mxu0 %vm7105_vm2, %v7106_v47 }
 0x8e2   :  { %v911_v15 = vpop.f32.mrb[10].mxu0 }
 0x8e3   :  { %v5815_v6 = vpop.f32.mrb[11].mxu0  ;;  %5898 = vmatmul.mubr.msk.f32.vlgmr.msra.gmra.mrb[30].mxu0 %vm635_vm5, %v911_v15 }
 0x8e4   :  { %5900 = vmatprep.mubr.msk.f32.mxu0 %vm7105_vm2, %v7106_v47 }
 0x8e6   :  { %v916_v35 = vpop.f32.mrb[12].mxu0 }
 0x8e7   :  { %v5818_v2 = vpop.f32.mrb[13].mxu0  ;;  %5901 = vmatmul.mubr.msk.f32.gmra.mrb[32].mxu0 %vm635_vm5, %v916_v35 }
 0x8e8   :  { %5903 = vmatprep.mubr.msk.f32.mxu0 %vm7105_vm2, %v7106_v47 }
 0x8ea   :  { %v921_v37 = vpop.f32.mrb[14].mxu0 }
 0x8eb   :  { %v5821_v12 = vpop.f32.mrb[15].mxu0  ;;  %5904 = vmatmul.mubr.msk.f32.gmra.mrb[34].mxu0 %vm635_vm5, %v921_v37 }
 0x8ec   :  { %5906 = vmatprep.mubr.msk.f32.mxu0 %vm7105_vm2, %v7106_v47 }
 0x8ee   :  { %v926_v40 = vpop.f32.mrb[16].mxu0 }
 0x8ef   :  { %v5824_v41 = vpop.f32.mrb[17].mxu0  ;;  %5907 = vmatmul.mubr.msk.f32.gmra.mrb[36].mxu0 %vm635_vm5, %v926_v40 }
 0x8f0   :  { %5909 = vmatprep.mubr.msk.f32.mxu0 %vm7105_vm2, %v7106_v47 }
 0x8f2   :  { %v931_v42 = vpop.f32.mrb[18].mxu0 }
 0x8f3   :  { %v5827_v43 = vpop.f32.mrb[19].mxu0  ;;  %5910 = vmatmul.mubr.msk.f32.gmra.mrb[38].mxu0 %vm635_vm5, %v931_v42 }
 0x8f4   :  { %5947 = vmatprep.mubr.msk.f32.mxu0 %vm7105_vm2, %v7106_v47 }
 0x937   :  { %v1227_v50 = vpop.f32.mrb[20].mxu0 }
 0x938   :  { %v5865_v36 = vpop.f32.mrb[21].mxu0  ;;  %5881 = vmatmul.mubr.msk.f32.vlgmr.msra.gmra.mrb[30].mxu1 %vm635_vm5, %v1227_v50 }
 0x939   :  { %6518 = vmatpush3.bf16.xpose.msk.msra.mxu1 %vm7515_vm6, %v6516_v29  ;;  %5883 = vmatprep.mubr.msk.f32.mxu1 %vm7105_vm2, %v7106_v47 }
 0x93a   :  { %6519 = vmatprep.subr.bf16.mxu1 %v7104_v38 }
 0x93b   :  { %v1232_v54 = vpop.f32.mrb[22].mxu0 }
 0x93c   :  { %v5868_v56 = vpop.f32.mrb[23].mxu0  ;;  %5884 = vmatmul.mubr.msk.f32.gmra.mrb[32].mxu1 %vm635_vm5, %v1232_v54 }
 0x93d   :  { %5886 = vmatprep.mubr.msk.f32.mxu1 %vm7105_vm2, %v7106_v47 }
 0x93f   :  { %v1237_v44 = vpop.f32.mrb[24].mxu0 }
 0x940   :  { %v5871_v46 = vpop.f32.mrb[25].mxu0  ;;  %5887 = vmatmul.mubr.msk.f32.gmra.mrb[34].mxu1 %vm635_vm5, %v1237_v44 }
 0x941   :  { %6522 = vmatpush3.bf16.xpose.msk.msra.mxu1 %vm7515_vm6, %v6520_v58  ;;  %5889 = vmatprep.mubr.msk.f32.mxu1 %vm7105_vm2, %v7106_v47 }
 0x942   :  { %5920 = vmatprep.subr.mxu1 %v7106_v47 }
 0x943   :  { %v1242_v60 = vpop.f32.mrb[26].mxu0 }
 0x944   :  { %v5874_v61 = vpop.f32.mrb[27].mxu0  ;;  %5890 = vmatmul.mubr.msk.f32.gmra.mrb[36].mxu1 %vm635_vm5, %v1242_v60 }
 0x945   :  { %5892 = vmatprep.mubr.msk.f32.mxu1 %vm7105_vm2, %v7106_v47 }
 0x947   :  { %v1247_v3 = vpop.f32.mrb[28].mxu0 }
 0x948   :  { %v5877_v51 = vpop.f32.mrb[29].mxu0  ;;  %5893 = vmatmul.mubr.msk.f32.gmra.mrb[38].mxu1 %vm635_vm5, %v1247_v3 }
 0x949   :  { %5921 = vmatpush3.xpose.msk.msra.mxu1 %vm635_vm5, %v1480_v5  ;;  %5922 = vmatprep.mubr.msk.f32.mxu1 %vm7105_vm2, %v7106_v47 }
 0x94a   :  { %5962 = vmatprep.subr.mxu1 %v7106_v47 }
 0x94c   :  { %5923 = vmatmul.mubr.msk.f32.vlgmr.msra.gmra.mrb[40].mxu1 %vm635_vm5, %v1462_v7 }
 0x94d   :  { %5925 = vmatprep.mubr.msk.f32.mxu1 %vm7105_vm2, %v7106_v47 }
 0x950   :  { %5926 = vmatmul.mubr.msk.f32.gmra.mrb[42].mxu1 %vm635_vm5, %v1464_v52 }
 0x951   :  { %5928 = vmatprep.mubr.msk.f32.mxu1 %vm7105_vm2, %v7106_v47 }
 0x954   :  { %5929 = vmatmul.mubr.msk.f32.gmra.mrb[44].mxu1 %vm635_vm5, %v1466_v9 }
 0x955   :  { %5931 = vmatprep.mubr.msk.f32.mxu1 %vm7105_vm2, %v7106_v47 }
 0x958   :  { %5932 = vmatmul.mubr.msk.f32.gmra.mrb[46].mxu1 %vm635_vm5, %v1468_v10 }
 0x959   :  { %5934 = vmatprep.mubr.msk.f32.mxu1 %vm7105_vm2, %v7106_v47 }
 0x95c   :  { %5935 = vmatmul.mubr.msk.f32.gmra.mrb[48].mxu1 %vm635_vm5, %v1470_v13 }
 0x95d   :  { %5964 = vmatprep.mubr.msk.f32.mxu1 %vm7105_vm2, %v7106_v47 }
 0x9b6   :  { %v1437_v57 = vpop.f32.mrb[30].mxu0 }
 0x9b7   :  { %v5899_v17 = vpop.f32.mrb[31].mxu0 }
 0x9ba   :  { %v1442_v23 = vpop.f32.mrb[32].mxu0 }
 0x9bb   :  { %v5902_v0 = vpop.f32.mrb[33].mxu0 }
 0x9be   :  { %v1447_v28 = vpop.f32.mrb[34].mxu0 }
 0x9bf   :  { %v5905_v30 = vpop.f32.mrb[35].mxu0 }
 0x9c2   :  { %v1452_v33 = vpop.f32.mrb[36].mxu0 }
 0x9c3   :  { %v5908_v62 = vpop.f32.mrb[37].mxu0 }
 0x9c6   :  { %v1457_v11 = vpop.f32.mrb[38].mxu0 }
 0x9c7   :  { %v5911_v16 = vpop.f32.mrb[39].mxu0 }
 0xa0b   :  { %v1332_v15 = vpop.f32.mrb[30].mxu1 }
 0xa0c   :  { %v7808_v6 = vadd.f32 %v1437_v57, %v1332_v15  ;;  %v5882_v35 = vpop.f32.mrb[31].mxu1 }
 0xa0f   :  { %v1337_v2 = vpop.f32.mrb[32].mxu1 }
 0xa10   :  { %v7810_v37 = vadd.f32 %v1442_v23, %v1337_v2  ;;  %v5885_v12 = vpop.f32.mrb[33].mxu1 }
 0xa13   :  { %v1342_v40 = vpop.f32.mrb[34].mxu1 }
 0xa14   :  { %v7812_v41 = vadd.f32 %v1447_v28, %v1342_v40  ;;  %v5888_v42 = vpop.f32.mrb[35].mxu1 }
 0xa17   :  { %v1347_v43 = vpop.f32.mrb[36].mxu1 }
 0xa18   :  { %v7814_v31 = vadd.f32 %v1452_v33, %v1347_v43  ;;  %v5891_v48 = vpop.f32.mrb[37].mxu1 }
 0xa1b   :  { %v1352_v49 = vpop.f32.mrb[38].mxu1 }
 0xa1c   :  { %v7816_v29 = vadd.f32 %v1457_v11, %v1352_v49  ;;  %v5894_v50 = vpop.f32.mrb[39].mxu1 }
 0xa1f   :  { %v1567_v39 = vpop.f32.mrb[40].mxu1 }
 0xa20   :  { %v1591_v36 = vmul.f32 0.35355338, %v1567_v39  ;;  %v5924_v53 = vpop.f32.mrb[41].mxu1 }
 0xa22   :  { %v1596_v20 = vadd.f32 %v1591_v36, %v7573_v59 }
 0xa23   :  { %v1572_v54 = vpop.f32.mrb[42].mxu1 }
 0xa24   :  { %v1592_v56 = vmul.f32 0.35355338, %v1572_v54  ;;  %v5927_v58 = vpop.f32.mrb[43].mxu1  ;;  %v1601_v44 = vsel %vm756_vm7, %v1596_v20, -inf }
 0xa25   :  { %1602 = vmax.xlane.f32.xlu1 %v1601_v44 }
 0xa26   :  { %v1597_v46 = vadd.f32 %v1592_v56, %v7581_v1 }
 0xa27   :  { %v1577_v60 = vpop.f32.mrb[44].mxu1 }
 0xa28   :  { %v1593_v61 = vmul.f32 0.35355338, %v1577_v60  ;;  %v5930_v3 = vpop.f32.mrb[45].mxu1  ;;  %v1604_v5 = vsel %vm756_vm7, %v1597_v46, -inf }
 0xa29   :  { %1605 = vmax.xlane.f32.xlu0 %v1604_v5 }
 0xa2a   :  { %v1598_v51 = vadd.f32 %v1593_v61, %v7591_v8 }
 0xa2b   :  { %v1582_v7 = vpop.f32.mrb[46].mxu1 }
 0xa2c   :  { %v1594_v52 = vmul.f32 0.35355338, %v1582_v7  ;;  %v5933_v9 = vpop.f32.mrb[47].mxu1  ;;  %v1607_v59 = vsel %vm756_vm7, %v1598_v51, -inf }
 0xa2d   :  { %1608 = vmax.xlane.f32.xlu0 %v1607_v59 }
 0xa2e   :  { %v1599_v10 = vadd.f32 %v1594_v52, %v7599_v14 }
 0xa2f   :  { %v1587_v13 = vpop.f32.mrb[48].mxu1 }
 0xa30   :  { %v1595_v57 = vmul.f32 0.35355338, %v1587_v13  ;;  %v5936_v17 = vpop.f32.mrb[49].mxu1  ;;  %v1610_v1 = vsel %vm756_vm7, %v1599_v10, -inf }
 0xa31   :  { %1611 = vmax.xlane.f32.xlu0 %v1610_v1 }
 0xa32   :  { %v1600_v23 = vadd.f32 %v1595_v57, %v7606_v25 }
 0xa34   :  { %v1613_v0 = vsel %vm769_vm8, %v1600_v23, -inf }
 0xa35   :  { %1614 = vmax.xlane.f32.xlu1 %v1613_v0 }
 0xab2   :  { %v1603_v8 = vpop.xlane.xlu1 %1602 }
 0xab3   :  { %v1616_v28 = vsub.f32 %v1596_v20, %v1603_v8 }
 0xab5   :  { %v1621_v30 = vmul.f32 1.442695, %v1616_v28 }
 0xab6   :  { %v1606_v33 = vpop.xlane.xlu0 %1605 }
 0xab7   :  { %6898 = vpow2.f32 %v1621_v30  ;;  %v1617_v62 = vsub.f32 %v1597_v46, %v1606_v33 }
 0xab9   :  { %v1623_v11 = vmul.f32 1.442695, %v1617_v62 }
 0xaba   :  { %v1609_v35 = vpop.xlane.xlu0 %1608 }
 0xabb   :  { %6900 = vpow2.f32 %v1623_v11  ;;  %v1618_v2 = vsub.f32 %v1598_v51, %v1609_v35 }
 0xabd   :  { %v1625_v43 = vmul.f32 1.442695, %v1618_v2 }
 0xabe   :  { %v1612_v12 = vpop.xlane.xlu0 %1611 }
 0xabf   :  { %v1619_v42 = vsub.f32 %v1599_v10, %v1612_v12  ;;  %6902 = vpow2.f32 %v1625_v43  ;;  %v618_v43 = vld [vmem:[%s8930_s14 + $0x10] sm:$0xff] }
 0xac0   :  { %5963 = vmatpush3.msra.mxu1 %v618_v43 }
 0xac1   :  { %v6899_v14 = vpop.eup %6898  ;;  %v1627_v49 = vmul.f32 1.442695, %v1619_v42  ;;  %6537 = vmatprep.subr.bf16.mxu1 %v7104_v38 }
 0xac2   :  { %v1631_v16 = vsel %vm756_vm7, %v6899_v14, 0.0  ;;  %v1615_v40 = vpop.xlane.xlu1 %1614 }
 0xac3   :  { %1632 = vadd.xlane.f32.xlu0 %v1631_v16  ;;  %v1620_v48 = vsub.f32 %v1600_v23, %v1615_v40  ;;  %6904 = vpow2.f32 %v1627_v49 }
 0xac5   :  { %v7829_v15 = vpop.eup %6900  ;;  %v1629_v50 = vmul.f32 1.442695, %v1620_v48 }
 0xac6   :  { %v1634_v25 = vsel %vm756_vm7, %v7829_v15, 0.0 }
 0xac7   :  { %1635 = vadd.xlane.f32.xlu1 %v1634_v25  ;;  %6906 = vpow2.f32 %v1629_v50 }
 0xac9   :  { %v6903_v39 = vpop.eup %6902 }
 0xaca   :  { %v1637_v53 = vsel %vm756_vm7, %v6903_v39, 0.0 }
 0xacd   :  { %v7837_v36 = vpop.eup %6904 }
 0xace   :  { %v1640_v54 = vsel %vm756_vm7, %v7837_v36, 0.0 }
 0xad1   :  { %v7840_v20 = vpop.eup %6906 }
 0xad2   :  { %v1643_v56 = vsel %vm769_vm8, %v7840_v20, 0.0 }
 0xad8   :  { %6719 = vrot.lane.b32.xlu1 %v7479_v21, %s8954_s6 }
 0xad9   :  { %6724 = vrot.lane.b32.xlu0 %v7489_v26, %s8954_s6 }
 0xaf8   :  { %1638 = vadd.xlane.f32.xlu0 %v1637_v53 }
 0xafc   :  { %1641 = vadd.xlane.f32.xlu0 %v1640_v54  ;;  %1644 = vadd.xlane.f32.xlu1 %v1643_v56 }
 0xb0d   :  { %1891 = vrot.lane.b32.xlu1 %v7483_v22, %s8952_s1 }
 0xb12   :  { %1664 = vrot.lane.b32.xlu0 %v7495_v27, %s8954_s6  ;;  %s8983_s6 = smov 104  }
 0xb16   :  { %6729 = vrot.lane.b32.xlu0 %v7479_v21, %s8948_s3 }
 0xb1a   :  { %6734 = vrot.lane.b32.xlu0 %v7489_v26, %s8948_s3 }
 0xb1e   :  { %1905 = vrot.lane.b32.xlu0 %v7495_v27, %s8948_s3  ;;  %s8950_s3 = smov 40  }
 0xb22   :  { %1887 = vrot.lane.b32.xlu0 %v7473_v18, %s8952_s1 }
 0xb26   :  { %1889 = vrot.lane.b32.xlu0 %v7475_v19, %s8952_s1 }
 0xb2a   :  { %1893 = vrot.lane.b32.xlu0 %v7485_v24, %s8952_s1 }
 0xb2e   :  { %1895 = vrot.lane.b32.xlu0 %v7495_v27, %s8952_s1  ;;  %s8984_s1 = smov 72  }
 0xb50   :  { %v1633_v22 = vpop.xlane.xlu0 %1632 }
 0xb51   :  { %6908 = vrcp.f32 %v1633_v22 }
 0xb54   :  { %v1636_v58 = vpop.xlane.xlu1 %1635  ;;  %v6725_v44 = vpop.permute.xlu0 %6724 }
 0xb55   :  { %v6727_v3 = vunpack.i.h.bf16 %v6725_v44  ;;  %v6726_v5 = vunpack.i.l.bf16 %v6725_v44  ;;  %6910 = vrcp.f32 %v1636_v58 }
 0xb57   :  { %v6527_v18 = vpack.c.bf16 %v6727_v3, %v6726_v5 }
 0xb58   :  { %v6720_v46 = vpop.permute.xlu1 %6719 }
 0xb59   :  { %v6722_v60 = vunpack.i.h.bf16 %v6720_v46  ;;  %v6721_v61 = vunpack.i.l.bf16 %v6720_v46 }
 0xb5b   :  { %v6524_v51 = vpack.c.bf16 %v6722_v60, %v6721_v61  ;;  %v6909_v7 = vpop.eup %6908  ;;  %v7070_v60 = vld [vmem:[%s8980_s0] sm:$0xff] }
 0xb5c   :  { %v1651_v52 = vmul.f32 %v6909_v7, %v6899_v14 }
 0xb5d   :  { %6525 = vmatpush3.bf16.msra.mxu0 %v6524_v51 }
 0xb5e   :  { %6526 = vmatprep.subr.bf16.mxu0 %v7104_v38 }
 0xb5f   :  { %v6911_v10 = vpop.eup %6910 }
 0xb60   :  { %v1652_v57 = vmul.f32 %v6911_v10, %v7829_v15  ;;  %v7072_v10 = vld [vmem:[%s8980_s0 + $0x10] sm:$0xff] }
 0xb61   :  { %6528 = vmatpush3.bf16.msra.mxu0 %v6527_v18 }
 0xb62   :  { %5945 = vmatprep.subr.mxu0 %v7106_v47 }
 0xb85   :  { %v1639_v19 = vpop.xlane.xlu0 %1638 }
 0xb86   :  { %6912 = vrcp.f32 %v1639_v19  ;;  %v7071_v19 = vld [vmem:[%s8980_s0 + $0x8] sm:$0xff] }
 0xb89   :  { %v1642_v24 = vpop.xlane.xlu0 %1641  ;;  %v1645_v9 = vpop.xlane.xlu1 %1644 }
 0xb8a   :  { %6914 = vrcp.f32 %v1642_v24 }
 0xb8b   :  { %6916 = vrcp.f32 %v1645_v9 }
 0xb8d   :  { %v1665_v59 = vpop.permute.xlu0 %1664  ;;  %v1892_v12 = vpop.permute.xlu1 %1891 }
 0xb8e   :  { %5946 = vmatpush3.msk.msra.mxu0 %vm842_vm9, %v1665_v59 }
 0xb8f   :  { %5948 = vmatmul.mubr.msk.f32.vlgmr.msra.gmra.mrb[40].mxu0 %vm756_vm7, %v1651_v52  ;;  %6529 = vmatprep.subr.bf16.mxu0 %v7104_v38 }
 0xb90   :  { %5950 = vmatprep.mubr.msk.f32.mxu0 %vm7105_vm2, %v7106_v47  ;;  %v6913_v17 = vpop.eup %6912 }
 0xb91   :  { %v6730_v13 = vpop.permute.xlu0 %6729  ;;  %v1653_v28 = vmul.f32 %v6913_v17, %v6903_v39 }
 0xb92   :  { %v6732_v1 = vunpack.i.h.bf16 %v6730_v13  ;;  %v6731_v23 = vunpack.i.l.bf16 %v6730_v13 }
 0xb93   :  { %5951 = vmatmul.mubr.msk.f32.gmra.mrb[42].mxu0 %vm756_vm7, %v1652_v57 }
 0xb94   :  { %v6530_v0 = vpack.c.bf16 %v6732_v1, %v6731_v23  ;;  %5953 = vmatprep.mubr.msk.f32.mxu0 %vm7105_vm2, %v7106_v47  ;;  %v6915_v30 = vpop.eup %6914 }
 0xb95   :  { %v6735_v8 = vpop.permute.xlu0 %6734  ;;  %v1654_v11 = vmul.f32 %v6915_v30, %v7837_v36  ;;  %v6917_v14 = vpop.eup %6916 }
 0xb96   :  { %6532 = vmatpush3.bf16.xpose.msk.msra.mxu0 %vm7515_vm6, %v6530_v0  ;;  %v6737_v33 = vunpack.i.h.bf16 %v6735_v8  ;;  %v6736_v62 = vunpack.i.l.bf16 %v6735_v8  ;;  %v1655_v15 = vmul.f32 %v6917_v14, %v7840_v20  ;;  %v7073_v0 = vld [vmem:[%s8980_s0 + $0x18] sm:$0xff] }
 0xb97   :  { %5954 = vmatmul.mubr.msk.f32.gmra.mrb[44].mxu0 %vm756_vm7, %v1653_v28  ;;  %6533 = vmatprep.subr.bf16.mxu0 %v7104_v38 }
 0xb98   :  { %5956 = vmatprep.mubr.msk.f32.mxu0 %vm7105_vm2, %v7106_v47  ;;  %v6534_v16 = vpack.c.bf16 %v6737_v33, %v6736_v62 }
 0xb99   :  { %v1906_v25 = vpop.permute.xlu0 %1905 }
 0xb9b   :  { %5957 = vmatmul.mubr.msk.f32.gmra.mrb[46].mxu0 %vm756_vm7, %v1654_v11  ;;  %v7074_v11 = vld [vmem:[%s8980_s0 + $0x20] sm:$0x3] }
 0xb9c   :  { %5959 = vmatprep.mubr.msk.f32.mxu0 %vm7105_vm2, %v7106_v47 }
 0xb9d   :  { %v1888_v35 = vpop.permute.xlu0 %1887 }
 0xb9e   :  { %6536 = vmatpush3.bf16.xpose.msk.msra.mxu0 %vm7515_vm6, %v6534_v16 }
 0xb9f   :  { %5960 = vmatmul.mubr.msk.f32.gmra.mrb[48].mxu0 %vm756_vm7, %v1655_v15  ;;  %5987 = vmatprep.subr.mxu0 %v7106_v47 }
 0xba0   :  { %5989 = vmatprep.mubr.msk.f32.mxu0 %vm7105_vm2, %v7106_v47 }
 0xba1   :  { %v1890_v2 = vpop.permute.xlu0 %1889 }
 0xba5   :  { %v1894_v40 = vpop.permute.xlu0 %1893 }
 0xba6   :  { %5988 = vmatpush3.xpose.msk.msra.mxu0 %vm635_vm5, %v1906_v25 }
 0xba7   :  { %6029 = vmatprep.subr.mxu0 %v7106_v47 }
 0xba9   :  { %5990 = vmatmul.mubr.msk.f32.vlgmr.msra.gmra.mrb[50].mxu0 %vm635_vm5, %v1888_v35  ;;  %v1896_v42 = vpop.permute.xlu0 %1895 }
 0xbaa   :  { %5992 = vmatprep.mubr.msk.f32.mxu0 %vm7105_vm2, %v7106_v47 }
 0xbad   :  { %5993 = vmatmul.mubr.msk.f32.gmra.mrb[52].mxu0 %vm635_vm5, %v1890_v2 }
 0xbae   :  { %5995 = vmatprep.mubr.msk.f32.mxu0 %vm7105_vm2, %v7106_v47 }
 0xbb1   :  { %5996 = vmatmul.mubr.msk.f32.gmra.mrb[54].mxu0 %vm635_vm5, %v1892_v12 }
 0xbb2   :  { %5998 = vmatprep.mubr.msk.f32.mxu0 %vm7105_vm2, %v7106_v47 }
 0xbb5   :  { %5999 = vmatmul.mubr.msk.f32.gmra.mrb[56].mxu0 %vm635_vm5, %v1894_v40 }
 0xbb6   :  { %6001 = vmatprep.mubr.msk.f32.mxu0 %vm7105_vm2, %v7106_v47 }
 0xbb9   :  { %6002 = vmatmul.mubr.msk.f32.gmra.mrb[58].mxu0 %vm635_vm5, %v1896_v42 }
 0xbba   :  { %6031 = vmatprep.mubr.msk.f32.mxu0 %vm7105_vm2, %v7106_v47 }
 0xc62   :  { %v1753_v48 = vpop.f32.mrb[40].mxu0 }
 0xc63   :  { %v5949_v49 = vpop.f32.mrb[41].mxu0  ;;  %5965 = vmatmul.mubr.msk.f32.vlgmr.msra.gmra.mrb[50].mxu1 %vm635_vm5, %v1753_v48 }
 0xc64   :  { %5967 = vmatprep.mubr.msk.f32.mxu1 %vm7105_vm2, %v7106_v47 }
 0xc66   :  { %v1758_v50 = vpop.f32.mrb[42].mxu0 }
 0xc67   :  { %v5952_v39 = vpop.f32.mrb[43].mxu0  ;;  %5968 = vmatmul.mubr.msk.f32.gmra.mrb[52].mxu1 %vm635_vm5, %v1758_v50 }
 0xc68   :  { %5970 = vmatprep.mubr.msk.f32.mxu1 %vm7105_vm2, %v7106_v47 }
 0xc6a   :  { %v1763_v36 = vpop.f32.mrb[44].mxu0 }
 0xc6b   :  { %v5955_v53 = vpop.f32.mrb[45].mxu0  ;;  %5971 = vmatmul.mubr.msk.f32.gmra.mrb[54].mxu1 %vm635_vm5, %v1763_v36 }
 0xc6c   :  { %5973 = vmatprep.mubr.msk.f32.mxu1 %vm7105_vm2, %v7106_v47 }
 0xc6e   :  { %v1768_v20 = vpop.f32.mrb[46].mxu0 }
 0xc6f   :  { %v5958_v54 = vpop.f32.mrb[47].mxu0  ;;  %5974 = vmatmul.mubr.msk.f32.gmra.mrb[56].mxu1 %vm635_vm5, %v1768_v20 }
 0xc70   :  { %5976 = vmatprep.mubr.msk.f32.mxu1 %vm7105_vm2, %v7106_v47 }
 0xc72   :  { %v1773_v56 = vpop.f32.mrb[48].mxu0 }
 0xc73   :  { %v5961_v22 = vpop.f32.mrb[49].mxu0  ;;  %5977 = vmatmul.mubr.msk.f32.gmra.mrb[58].mxu1 %vm635_vm5, %v1773_v56 }
 0xc74   :  { %6014 = vmatprep.mubr.msk.f32.mxu1 %vm7105_vm2, %v7106_v47 }
 0xc7c   :  { %v1993_v58 = vpop.f32.mrb[50].mxu0 }
 0xc7d   :  { %v2017_v44 = vmul.f32 0.35355338, %v1993_v58  ;;  %v5991_v46 = vpop.f32.mrb[51].mxu0 }
 0xc7f   :  { %v2022_v61 = vadd.f32 %v7070_v60, %v2017_v44 }
 0xc80   :  { %v1998_v3 = vpop.f32.mrb[52].mxu0 }
 0xc81   :  { %v2018_v5 = vmul.f32 0.35355338, %v1998_v3  ;;  %v5994_v51 = vpop.f32.mrb[53].mxu0  ;;  %v2027_v18 = vsel %vm756_vm7, %v2022_v61, -inf }
 0xc82   :  { %2028 = vmax.xlane.f32.xlu0 %v2027_v18 }
 0xc83   :  { %v2023_v24 = vadd.f32 %v7071_v19, %v2018_v5 }
 0xc84   :  { %v2003_v7 = vpop.f32.mrb[54].mxu0 }
 0xc85   :  { %v2019_v52 = vmul.f32 0.35355338, %v2003_v7  ;;  %v5997_v9 = vpop.f32.mrb[55].mxu0  ;;  %v2030_v59 = vsel %vm756_vm7, %v2023_v24, -inf }
 0xc86   :  { %2031 = vmax.xlane.f32.xlu1 %v2030_v59 }
 0xc87   :  { %v2024_v13 = vadd.f32 %v7072_v10, %v2019_v52 }
 0xc88   :  { %v2008_v57 = vpop.f32.mrb[56].mxu0 }
 0xc89   :  { %v2020_v17 = vmul.f32 0.35355338, %v2008_v57  ;;  %v6000_v1 = vpop.f32.mrb[57].mxu0  ;;  %v2033_v23 = vsel %vm756_vm7, %v2024_v13, -inf }
 0xc8a   :  { %2034 = vmax.xlane.f32.xlu0 %v2033_v23 }
 0xc8b   :  { %v2025_v8 = vadd.f32 %v7073_v0, %v2020_v17 }
 0xc8c   :  { %v2013_v28 = vpop.f32.mrb[58].mxu0 }
 0xc8d   :  { %v2021_v30 = vmul.f32 0.35355338, %v2013_v28  ;;  %v6003_v33 = vpop.f32.mrb[59].mxu0  ;;  %v2036_v62 = vsel %vm756_vm7, %v2025_v8, -inf }
 0xc8e   :  { %2037 = vmax.xlane.f32.xlu0 %v2036_v62 }
 0xc8f   :  { %v2026_v14 = vadd.f32 %v7074_v11, %v2021_v30 }
 0xc91   :  { %v2039_v16 = vsel %vm769_vm8, %v2026_v14, -inf }
 0xc92   :  { %2040 = vmax.xlane.f32.xlu0 %v2039_v16 }
 0xca8   :  { %6739 = vrot.lane.b32.xlu0 %v7479_v21, %s8950_s3 }
 0xd0f   :  { %v2029_v15 = vpop.xlane.xlu0 %2028 }
 0xd10   :  { %v2042_v25 = vsub.f32 %v2022_v61, %v2029_v15 }
 0xd12   :  { %v2047_v35 = vmul.f32 1.442695, %v2042_v25 }
 0xd13   :  { %v2032_v2 = vpop.xlane.xlu1 %2031 }
 0xd14   :  { %6918 = vpow2.f32 %v2047_v35  ;;  %v2043_v12 = vsub.f32 %v2023_v24, %v2032_v2 }
 0xd16   :  { %v2049_v40 = vmul.f32 1.442695, %v2043_v12 }
 0xd17   :  { %v2035_v42 = vpop.xlane.xlu0 %2034 }
 0xd18   :  { %6920 = vpow2.f32 %v2049_v40  ;;  %v2044_v43 = vsub.f32 %v2024_v13, %v2035_v42 }
 0xd1a   :  { %v2051_v48 = vmul.f32 1.442695, %v2044_v43 }
 0xd1b   :  { %v2038_v49 = vpop.xlane.xlu0 %2037 }
 0xd1c   :  { %6922 = vpow2.f32 %v2051_v48  ;;  %v2045_v50 = vsub.f32 %v2025_v8, %v2038_v49  ;;  %v619_v48 = vld [vmem:[%s8930_s14 + $0x18] sm:$0xff] }
 0xd1d   :  { %6030 = vmatpush3.msra.mxu0 %v619_v48 }
 0xd1e   :  { %v6919_v39 = vpop.eup %6918  ;;  %v2053_v36 = vmul.f32 1.442695, %v2045_v50  ;;  %6549 = vmatprep.subr.bf16.mxu0 %v7104_v38 }
 0xd1f   :  { %v2041_v53 = vpop.xlane.xlu0 %2040  ;;  %v2057_v20 = vsel %vm756_vm7, %v6919_v39, 0.0 }
 0xd20   :  { %6924 = vpow2.f32 %v2053_v36  ;;  %2058 = vadd.xlane.f32.xlu0 %v2057_v20  ;;  %v2046_v1 = vsub.f32 %v2026_v14, %v2041_v53 }
 0xd22   :  { %v6921_v21 = vpop.eup %6920 }
 0xd23   :  { %v6740_v54 = vpop.permute.xlu0 %6739  ;;  %v2060_v56 = vsel %vm756_vm7, %v6921_v21, 0.0 }
 0xd24   :  { %v6742_v22 = vunpack.i.h.bf16 %v6740_v54  ;;  %v6741_v58 = vunpack.i.l.bf16 %v6740_v54  ;;  %2061 = vadd.xlane.f32.xlu1 %v2060_v56 }
 0xd26   :  { %v6923_v44 = vpop.eup %6922  ;;  %v6538_v46 = vpack.c.bf16 %v6742_v22, %v6741_v58 }
 0xd27   :  { %v2063_v60 = vsel %vm756_vm7, %v6923_v44, 0.0 }
 0xd28   :  { %2064 = vadd.xlane.f32.xlu0 %v2063_v60  ;;  %6539 = vmatpush3.bf16.msra.mxu1 %v6538_v46  ;;  %v5276_v60 = vld [vmem:[%s8931_s15] ss:$0 sm:$0xff] }
 0xd29   :  { %6540 = vmatprep.subr.bf16.mxu1 %v7104_v38 }
 0xd2a   :  { %v6925_v61 = vpop.eup %6924 }
 0xd2b   :  { %v2066_v3 = vsel %vm756_vm7, %v6925_v61, 0.0 }
 0xd2c   :  { %2067 = vadd.xlane.f32.xlu1 %v2066_v3 }
 0xd36   :  { %v1858_v5 = vpop.f32.mrb[50].mxu1 }
 0xd37   :  { %v7956_v51 = vadd.f32 %v1858_v5, %v7808_v6  ;;  %v5966_v18 = vpop.f32.mrb[51].mxu1 }
 0xd3a   :  { %v1863_v19 = vpop.f32.mrb[52].mxu1 }
 0xd3b   :  { %v7959_v24 = vadd.f32 %v1863_v19, %v7810_v37  ;;  %v5969_v7 = vpop.f32.mrb[53].mxu1 }
 0xd3d   :  { %6744 = vrot.lane.b32.xlu1 %v7489_v26, %s8950_s3  ;;  %v2055_v26 = vmul.f32 1.442695, %v2046_v1 }
 0xd3e   :  { %2090 = vrot.lane.b32.xlu0 %v7495_v27, %s8950_s3  ;;  %v1868_v52 = vpop.f32.mrb[54].mxu1  ;;  %s7118_s3 = smov [#allocation2]  }
 0xd3f   :  { %v7966_v9 = vadd.f32 %v1868_v52, %v7812_v41  ;;  %v5972_v59 = vpop.f32.mrb[55].mxu1  ;;  %6926 = vpow2.f32 %v2055_v26 }
 0xd42   :  { %v1873_v10 = vpop.f32.mrb[56].mxu1 }
 0xd43   :  { %v7969_v6 = vadd.f32 %v1873_v10, %v7814_v31  ;;  %v5975_v13 = vpop.f32.mrb[57].mxu1 }
 0xd46   :  { %v1878_v57 = vpop.f32.mrb[58].mxu1 }
 0xd47   :  { %v7972_v37 = vadd.f32 %v1878_v57, %v7816_v29  ;;  %v5978_v17 = vpop.f32.mrb[59].mxu1 }
 0xd49   :  { %v6927_v23 = vpop.eup %6926 }
 0xd4a   :  { %v2069_v27 = vsel %vm769_vm8, %v6927_v23, 0.0 }
 0xd61   :  { %2070 = vadd.xlane.f32.xlu1 %v2069_v27 }
 0xdad   :  { %v2059_v41 = vpop.xlane.xlu0 %2058 }
 0xdae   :  { %6928 = vrcp.f32 %v2059_v41 }
 0xdb1   :  { %v2062_v0 = vpop.xlane.xlu1 %2061 }
 0xdb2   :  { %6930 = vrcp.f32 %v2062_v0 }
 0xdb5   :  { %v2065_v31 = vpop.xlane.xlu0 %2064 }
 0xdb6   :  { %6932 = vrcp.f32 %v2065_v31 }
 0xdb8   :  { %v6929_v62 = vpop.eup %6928 }
 0xdb9   :  { %v2068_v8 = vpop.xlane.xlu1 %2067  ;;  %v2077_v11 = vmul.f32 %v6929_v62, %v6919_v39  ;;  %v2091_v14 = vpop.permute.xlu0 %2090 }
 0xdba   :  { %6934 = vrcp.f32 %v2068_v8 }
 0xdbc   :  { %v6931_v16 = vpop.eup %6930 }
 0xdbd   :  { %v6745_v28 = vpop.permute.xlu1 %6744  ;;  %v2078_v15 = vmul.f32 %v6931_v16, %v6921_v21 }
 0xdbe   :  { %v6747_v30 = vunpack.i.h.bf16 %v6745_v28  ;;  %v6746_v33 = vunpack.i.l.bf16 %v6745_v28 }
 0xdc0   :  { %v6541_v29 = vpack.c.bf16 %v6747_v30, %v6746_v33  ;;  %v6933_v25 = vpop.eup %6932 }
 0xdc1   :  { %v2079_v35 = vmul.f32 %v6933_v25, %v6923_v44 }
 0xdc2   :  { %6542 = vmatpush3.bf16.msra.mxu1 %v6541_v29 }
 0xdc3   :  { %6012 = vmatprep.subr.mxu1 %v7106_v47 }
 0xdc4   :  { %v6935_v2 = vpop.eup %6934 }
 0xdc5   :  { %v2080_v12 = vmul.f32 %v6935_v2, %v6925_v61 }
 0xdc6   :  { %6013 = vmatpush3.msk.msra.mxu1 %vm842_vm9, %v2091_v14 }
 0xdc7   :  { %6015 = vmatmul.mubr.msk.f32.vlgmr.msra.gmra.mrb[60].mxu1 %vm756_vm7, %v2077_v11  ;;  %6543 = vmatprep.subr.bf16.mxu1 %v7104_v38 }
 0xdc8   :  { %6017 = vmatprep.mubr.msk.f32.mxu1 %vm7105_vm2, %v7106_v47 }
 0xdcb   :  { %6018 = vmatmul.mubr.msk.f32.gmra.mrb[62].mxu1 %vm756_vm7, %v2078_v15 }
 0xdcc   :  { %6020 = vmatprep.mubr.msk.f32.mxu1 %vm7105_vm2, %v7106_v47 }
 0xdcf   :  { %6021 = vmatmul.mubr.msk.f32.gmra.mrb[64].mxu1 %vm756_vm7, %v2079_v35 }
 0xdd0   :  { %6023 = vmatprep.mubr.msk.f32.mxu1 %vm7105_vm2, %v7106_v47 }
 0xdd3   :  { %6024 = vmatmul.mubr.msk.f32.gmra.mrb[66].mxu1 %vm756_vm7, %v2080_v12 }
 0xdd4   :  { %6026 = vmatprep.mubr.msk.f32.mxu1 %vm7105_vm2, %v7106_v47 }
 0xdee   :  { %v2071_v40 = vpop.xlane.xlu1 %2070 }
 0xdef   :  { %6936 = vrcp.f32 %v2071_v40 }
 0xdf9   :  { %v6937_v42 = vpop.eup %6936 }
 0xdfa   :  { %v2081_v43 = vmul.f32 %v6937_v42, %v6927_v23 }
 0xdfc   :  { %6027 = vmatmul.mubr.msk.f32.gmra.mrb[68].mxu1 %vm756_vm7, %v2081_v43 }
 0xdfd   :  { %6054 = vmatprep.mubr.msk.f32.mxu1 %vm7105_vm2, %v7106_v47 }
 0xe9a   :  { %v2179_v49 = vpop.f32.mrb[60].mxu1 }
 0xe9b   :  { %v6016_v50 = vpop.f32.mrb[61].mxu1  ;;  %6032 = vmatmul.mubr.msk.f32.vlgmr.msra.gmra.mrb[60].mxu0 %vm635_vm5, %v2179_v49  ;;  %v2419_v49 = vld [vmem:[%s8934_s18] sm:$0xff] }
 0xe9c   :  { %6034 = vmatprep.mubr.msk.f32.mxu0 %vm7105_vm2, %v7106_v47  ;;  %v2420_v50 = vld [vmem:[%s8934_s18 + $0x8] sm:$0xff] }
 0xe9e   :  { %v2184_v39 = vpop.f32.mrb[62].mxu1 }
 0xe9f   :  { %v6019_v36 = vpop.f32.mrb[63].mxu1  ;;  %6035 = vmatmul.mubr.msk.f32.gmra.mrb[62].mxu0 %vm635_vm5, %v2184_v39  ;;  %v6544_v39 = vpack.c.bf16 %v2420_v50, %v2419_v49  ;;  %v2566_v50 = vld [vmem:[%s8936_s20 + $0x30] sm:$0xff] }
 0xea0   :  { %6037 = vmatprep.mubr.msk.f32.mxu0 %vm7105_vm2, %v7106_v47  ;;  %v2421_v36 = vld [vmem:[%s8934_s18 + $0x10] sm:$0xff] }
 0xea1   :  { %6545 = vmatpush3.bf16.msra.mxu1 %v6544_v39  ;;  %v2567_v39 = vld [vmem:[%s8936_s20 + $0x38] sm:$0xff] }
 0xea2   :  { %v2189_v53 = vpop.f32.mrb[64].mxu1  ;;  %6546 = vmatprep.subr.bf16.mxu1 %v7104_v38 }
 0xea3   :  { %v6022_v20 = vpop.f32.mrb[65].mxu1  ;;  %6038 = vmatmul.mubr.msk.f32.gmra.mrb[64].mxu0 %vm635_vm5, %v2189_v53  ;;  %v2422_v53 = vld [vmem:[%s8934_s18 + $0x18] sm:$0xff] }
 0xea4   :  { %6040 = vmatprep.mubr.msk.f32.mxu0 %vm7105_vm2, %v7106_v47  ;;  %v6547_v20 = vpack.c.bf16 %v2422_v53, %v2421_v36  ;;  %v6559_v36 = vpack.c.bf16 %v2567_v39, %v2566_v50  ;;  %v5279_v53 = vld [vmem:[%s8935_s19] ss:$0 sm:$0xff] }
 0xea6   :  { %v2194_v21 = vpop.f32.mrb[66].mxu1  ;;  %6548 = vmatpush3.bf16.msra.mxu1 %v6547_v20 }
 0xea7   :  { %v6025_v54 = vpop.f32.mrb[67].mxu1  ;;  %6041 = vmatmul.mubr.msk.f32.gmra.mrb[66].mxu0 %vm635_vm5, %v2194_v21  ;;  %6561 = vmatprep.subr.bf16.mxu1 %v7104_v38 }
 0xea8   :  { %6043 = vmatprep.mubr.msk.f32.mxu0 %vm7105_vm2, %v7106_v47 }
 0xecf   :  { %v2199_v56 = vpop.f32.mrb[68].mxu1 }
 0xed0   :  { %v6028_v22 = vpop.f32.mrb[69].mxu1  ;;  %6044 = vmatmul.mubr.msk.f32.gmra.mrb[68].mxu0 %vm635_vm5, %v2199_v56 }
 0xed1   :  { %6085 = vmatprep.mubr.msk.f32.mxu0 %vm7105_vm2, %v7106_v47 }
 0xf6e   :  { %v2284_v58 = vpop.f32.mrb[60].mxu0 }
 0xf6f   :  { %v2308_v44 = vadd.f32 %v2284_v58, %v7956_v51  ;;  %v6033_v46 = vpop.f32.mrb[61].mxu0 }
 0xf71   :  { %v2313_v61 = vadd.f32 %v2308_v44, %v7384_v34 }
 0xf72   :  { %v2289_v3 = vpop.f32.mrb[62].mxu0 }
 0xf73   :  { %v8017_v5 = vadd.f32 %v5276_v60, %v2313_v61  ;;  %v2309_v18 = vadd.f32 %v2289_v3, %v7959_v24  ;;  %v6036_v19 = vpop.f32.mrb[63].mxu0 }
 0xf75   :  { %v2314_v7 = vadd.f32 %v2309_v18, %v7397_v45  ;;  %v2332_v52 = vsel %vm303_vm3, %v8017_v5, 0.0 }
 0xf76   :  { %2333 = vadd.xlane.f32.xlu0 %v2332_v52  ;;  %v2294_v51 = vpop.f32.mrb[64].mxu0 }
 0xf77   :  { %v8023_v59 = vadd.f32 %v5276_v60, %v2314_v7  ;;  %v2310_v10 = vadd.f32 %v2294_v51, %v7966_v9  ;;  %v6039_v13 = vpop.f32.mrb[65].mxu0 }
 0xf79   :  { %v2315_v34 = vadd.f32 %v2310_v10, %v7407_v55  ;;  %v2335_v57 = vsel %vm303_vm3, %v8023_v59, 0.0 }
 0xf7a   :  { %2336 = vadd.xlane.f32.xlu1 %v2335_v57  ;;  %v2299_v24 = vpop.f32.mrb[66].mxu0 }
 0xf7b   :  { %v8029_v17 = vadd.f32 %v5276_v60, %v2315_v34  ;;  %v2311_v45 = vadd.f32 %v2299_v24, %v7969_v6  ;;  %v6042_v1 = vpop.f32.mrb[67].mxu0  ;;  %v5277_v34 = vld [vmem:[%s8932_s16] ss:$0 sm:$0xff] }
 0xf7d   :  { %v2316_v26 = vadd.f32 %v2311_v45, %v7417_v63  ;;  %v2338_v23 = vsel %vm303_vm3, %v8029_v17, 0.0  ;;  %v5278_v45 = vld [vmem:[%s8933_s17] ss:$0 sm:$0xff] }
 0xf7e   :  { %2339 = vadd.xlane.f32.xlu0 %v2338_v23 }
 0xf7f   :  { %v8035_v9 = vadd.f32 %v5276_v60, %v2316_v26 }
 0xf81   :  { %v2341_v55 = vsel %vm303_vm3, %v8035_v9, 0.0 }
 0xf82   :  { %2342 = vadd.xlane.f32.xlu1 %v2341_v55 }
 0xfa3   :  { %v2304_v27 = vpop.f32.mrb[68].mxu0 }
 0xfa4   :  { %v2312_v41 = vadd.f32 %v2304_v27, %v7972_v37  ;;  %v6045_v0 = vpop.f32.mrb[69].mxu0 }
 0xfa6   :  { %v2317_v8 = vadd.f32 %v2312_v41, %v7424_v4 }
 0xfa8   :  { %v8041_v6 = vadd.f32 %v5276_v60, %v2317_v8 }
 0xfaa   :  { %v2344_v63 = vsel %vm316_vm4, %v8041_v6, 0.0 }
 0xfab   :  { %2345 = vadd.xlane.f32.xlu0 %v2344_v63 }
0x1003   :  { %v2334_v31 = vpop.xlane.xlu0 %2333 }
0x1004   :  { %v2347_v28 = vmul.f32 0.03125, %v2334_v31 }
0x1006   :  { %v2352_v30 = vsub.f32 %v8017_v5, %v2347_v28 }
0x1007   :  { %v2337_v33 = vpop.xlane.xlu1 %2336 }
0x1008   :  { %v2348_v29 = vmul.f32 0.03125, %v2337_v33  ;;  %v2357_v62 = vmul.f32 %v2352_v30, %v2352_v30 }
0x100a   :  { %v2353_v11 = vsub.f32 %v8023_v59, %v2348_v29  ;;  %v2362_v37 = vsel %vm303_vm3, %v2357_v62, 0.0 }
0x100b   :  { %v2340_v14 = vpop.xlane.xlu0 %2339  ;;  %2363 = vadd.xlane.f32.xlu1 %v2362_v37 }
0x100c   :  { %v2349_v4 = vmul.f32 0.03125, %v2340_v14  ;;  %v2358_v16 = vmul.f32 %v2353_v11, %v2353_v11 }
0x100e   :  { %v2354_v15 = vsub.f32 %v8029_v17, %v2349_v4  ;;  %v2365_v25 = vsel %vm303_vm3, %v2358_v16, 0.0 }
0x100f   :  { %v2343_v35 = vpop.xlane.xlu1 %2342  ;;  %2366 = vadd.xlane.f32.xlu0 %v2365_v25  ;;  %v2560_v25 = vld [vmem:[%s8936_s20] sm:$0xff] }
0x1010   :  { %v2350_v2 = vmul.f32 0.03125, %v2343_v35  ;;  %v2359_v12 = vmul.f32 %v2354_v15, %v2354_v15  ;;  %v2561_v35 = vld [vmem:[%s8936_s20 + $0x8] sm:$0xff] }
0x1012   :  { %v2355_v40 = vsub.f32 %v8035_v9, %v2350_v2  ;;  %v2368_v42 = vsel %vm303_vm3, %v2359_v12, 0.0  ;;  %v6550_v2 = vpack.c.bf16 %v2561_v35, %v2560_v25  ;;  %v2562_v12 = vld [vmem:[%s8936_s20 + $0x10] sm:$0xff] }
0x1013   :  { %2369 = vadd.xlane.f32.xlu1 %v2368_v42 }
0x1014   :  { %v2360_v43 = vmul.f32 %v2355_v40, %v2355_v40  ;;  %6551 = vmatpush3.bf16.msra.mxu0 %v6550_v2 }
0x1015   :  { %6552 = vmatprep.subr.bf16.mxu0 %v7104_v38 }
0x1016   :  { %v2371_v48 = vsel %vm303_vm3, %v2360_v43, 0.0  ;;  %v2564_v43 = vld [vmem:[%s8936_s20 + $0x20] sm:$0xff] }
0x1017   :  { %2372 = vadd.xlane.f32.xlu0 %v2371_v48  ;;  %v2565_v48 = vld [vmem:[%s8936_s20 + $0x28] sm:$0xff] }
0x1018   :  { %v6556_v49 = vpack.c.bf16 %v2565_v48, %v2564_v43 }
0x1038   :  { %v2346_v21 = vpop.xlane.xlu0 %2345 }
0x1039   :  { %v2351_v54 = vmul.f32 0.03125, %v2346_v21 }
0x103b   :  { %v2356_v56 = vsub.f32 %v8041_v6, %v2351_v54 }
0x103d   :  { %v2361_v22 = vmul.f32 %v2356_v56, %v2356_v56 }
0x103f   :  { %v2374_v58 = vsel %vm316_vm4, %v2361_v22, 0.0 }
0x1040   :  { %2375 = vadd.xlane.f32.xlu1 %v2374_v58 }
0x1098   :  { %v2364_v44 = vpop.xlane.xlu1 %2363 }
0x1099   :  { %v2377_v46 = vmul.f32 0.03125, %v2364_v44 }
0x109b   :  { %v2382_v60 = vadd.f32 1e-05, %v2377_v46 }
0x109c   :  { %v2367_v61 = vpop.xlane.xlu0 %2366 }
0x109d   :  { %6938 = vrsqrt.f32 %v2382_v60  ;;  %v2378_v3 = vmul.f32 0.03125, %v2367_v61 }
0x109f   :  { %v2383_v18 = vadd.f32 1e-05, %v2378_v3 }
0x10a0   :  { %v2370_v19 = vpop.xlane.xlu1 %2369 }
0x10a1   :  { %6940 = vrsqrt.f32 %v2383_v18  ;;  %v2379_v7 = vmul.f32 0.03125, %v2370_v19 }
0x10a3   :  { %v2384_v52 = vadd.f32 1e-05, %v2379_v7 }
0x10a4   :  { %v2373_v51 = vpop.xlane.xlu0 %2372 }
0x10a5   :  { %6942 = vrsqrt.f32 %v2384_v52  ;;  %v2380_v10 = vmul.f32 0.03125, %v2373_v51 }
0x10a7   :  { %v6939_v13 = vpop.eup %6938  ;;  %v2385_v57 = vadd.f32 1e-05, %v2380_v10 }
0x10a8   :  { %v2392_v24 = vmul.f32 %v6939_v13, %v2352_v30 }
0x10a9   :  { %6944 = vrsqrt.f32 %v2385_v57 }
0x10aa   :  { %v2403_v1 = vmul.f32 %v5277_v34, %v2392_v24 }
0x10ab   :  { %v6941_v26 = vpop.eup %6940 }
0x10ac   :  { %v2414_v23 = vadd.f32 %v5278_v45, %v2403_v1  ;;  %v2393_v55 = vmul.f32 %v6941_v26, %v2353_v11 }
0x10ae   :  { %6055 = vmatmul.mubr.msk.f32.vlgmr.msra.gmra.mrb[70].mxu1 %vm303_vm3, %v2414_v23  ;;  %v2404_v27 = vmul.f32 %v5277_v34, %v2393_v55 }
0x10af   :  { %v6943_v41 = vpop.eup %6942  ;;  %6057 = vmatprep.mubr.msk.f32.mxu1 %vm7105_vm2, %v7106_v47 }
0x10b0   :  { %v2415_v0 = vadd.f32 %v5278_v45, %v2404_v27  ;;  %v2394_v8 = vmul.f32 %v6943_v41, %v2354_v15 }
0x10b2   :  { %6058 = vmatmul.mubr.msk.f32.gmra.mrb[72].mxu1 %vm303_vm3, %v2415_v0  ;;  %v2405_v63 = vmul.f32 %v5277_v34, %v2394_v8 }
0x10b3   :  { %v6945_v31 = vpop.eup %6944  ;;  %6060 = vmatprep.mubr.msk.f32.mxu1 %vm7105_vm2, %v7106_v47 }
0x10b4   :  { %v2416_v28 = vadd.f32 %v5278_v45, %v2405_v63  ;;  %v2395_v30 = vmul.f32 %v6945_v31, %v2355_v40  ;;  %v2563_v40 = vld [vmem:[%s8936_s20 + $0x18] sm:$0xff] }
0x10b5   :  { %v6553_v42 = vpack.c.bf16 %v2563_v40, %v2562_v12 }
0x10b6   :  { %6061 = vmatmul.mubr.msk.f32.gmra.mrb[74].mxu1 %vm303_vm3, %v2416_v28  ;;  %v2406_v33 = vmul.f32 %v5277_v34, %v2395_v30 }
0x10b7   :  { %6063 = vmatprep.mubr.msk.f32.mxu1 %vm7105_vm2, %v7106_v47  ;;  %6554 = vmatpush3.bf16.msra.mxu0 %v6553_v42 }
0x10b8   :  { %v2417_v29 = vadd.f32 %v5278_v45, %v2406_v33  ;;  %6555 = vmatprep.subr.bf16.mxu0 %v7104_v38 }
0x10ba   :  { %6064 = vmatmul.mubr.msk.f32.gmra.mrb[76].mxu1 %vm303_vm3, %v2417_v29 }
0x10bb   :  { %6066 = vmatprep.mubr.msk.f32.mxu1 %vm7105_vm2, %v7106_v47  ;;  %6557 = vmatpush3.bf16.msra.mxu0 %v6556_v49 }
0x10bc   :  { %6558 = vmatprep.subr.bf16.mxu0 %v7104_v38 }
0x10bf   :  { %6560 = vmatpush3.bf16.msra.mxu0 %v6559_v36 }
0x10c0   :  { %6567 = vmatprep.subr.bf16.mxu0 %v7104_v38 }
0x10cd   :  { %v2376_v62 = vpop.xlane.xlu1 %2375 }
0x10ce   :  { %v2381_v11 = vmul.f32 0.03125, %v2376_v62 }
0x10d0   :  { %v2386_v37 = vadd.f32 1e-05, %v2381_v11 }
0x10d2   :  { %6946 = vrsqrt.f32 %v2386_v37 }
0x10dc   :  { %v6947_v14 = vpop.eup %6946 }
0x10dd   :  { %v2396_v4 = vmul.f32 %v6947_v14, %v2356_v56 }
0x10df   :  { %v2407_v16 = vmul.f32 %v5277_v34, %v2396_v4 }
0x10e1   :  { %v2418_v15 = vadd.f32 %v5278_v45, %v2407_v16  ;;  %v5290_v16 = vld [vmem:[%s8937_s21] ss:$0 sm:$0xff] }
0x10e3   :  { %6067 = vmatmul.mubr.msk.f32.gmra.mrb[78].mxu1 %vm303_vm3, %v2418_v15 }
0x10e4   :  { %6108 = vmatprep.mubr.msk.f32.mxu1 %vm7105_vm2, %v7106_v47 }
0x1181   :  { %v2511_v20 = vpop.f32.mrb[70].mxu1 }
0x1182   :  { %v2512_v21 = vadd.f32 %v5279_v53, %v2511_v20  ;;  %v6056_v54 = vpop.f32.mrb[71].mxu1 }
0x1184   :  { %v2540_v56 = vmul.f32 0.70710677, %v2512_v21  ;;  %v2535_v13 = vmul.f32 0.5, %v2512_v21 }
0x1185   :  { %v2516_v22 = vpop.f32.mrb[72].mxu1 }
0x1186   :  { %6948 = verf.f32 %v2540_v56  ;;  %v2517_v58 = vadd.f32 %v5279_v53, %v2516_v22  ;;  %v6059_v44 = vpop.f32.mrb[73].mxu1 }
0x1188   :  { %v2541_v46 = vmul.f32 0.70710677, %v2517_v58  ;;  %v2536_v45 = vmul.f32 0.5, %v2517_v58 }
0x1189   :  { %v2521_v60 = vpop.f32.mrb[74].mxu1 }
0x118a   :  { %6950 = verf.f32 %v2541_v46  ;;  %v2522_v61 = vadd.f32 %v5279_v53, %v2521_v60  ;;  %v6062_v3 = vpop.f32.mrb[75].mxu1 }
0x118c   :  { %v2542_v18 = vmul.f32 0.70710677, %v2522_v61  ;;  %v2537_v55 = vmul.f32 0.5, %v2522_v61 }
0x118d   :  { %v2526_v19 = vpop.f32.mrb[76].mxu1 }
0x118e   :  { %6952 = verf.f32 %v2542_v18  ;;  %v2527_v7 = vadd.f32 %v5279_v53, %v2526_v19  ;;  %v6065_v52 = vpop.f32.mrb[77].mxu1 }
0x1190   :  { %v6949_v51 = vpop.eup %6948  ;;  %v2543_v10 = vmul.f32 0.70710677, %v2527_v7  ;;  %v2538_v8 = vmul.f32 0.5, %v2527_v7 }
0x1191   :  { %v2550_v34 = vadd.f32 1.0, %v6949_v51 }
0x1192   :  { %6954 = verf.f32 %v2543_v10 }
0x1193   :  { %v2555_v57 = vmul.f32 %v2550_v34, %v2535_v13 }
0x1194   :  { %v6951_v24 = vpop.eup %6950 }
0x1195   :  { %v2551_v1 = vadd.f32 1.0, %v6951_v24  ;;  %6086 = vmatmul.mubr.msk.f32.vlgmr.msra.gmra.mrb[70].mxu0 %vm91_vm0, %v2555_v57 }
0x1196   :  { %6088 = vmatprep.mubr.msk.f32.mxu0 %vm7105_vm2, %v7106_v47 }
0x1197   :  { %v2556_v26 = vmul.f32 %v2551_v1, %v2536_v45 }
0x1198   :  { %v6953_v23 = vpop.eup %6952 }
0x1199   :  { %v2552_v27 = vadd.f32 1.0, %v6953_v23  ;;  %6089 = vmatmul.mubr.msk.f32.gmra.mrb[72].mxu0 %vm91_vm0, %v2556_v26 }
0x119a   :  { %6091 = vmatprep.mubr.msk.f32.mxu0 %vm7105_vm2, %v7106_v47 }
0x119b   :  { %v2557_v41 = vmul.f32 %v2552_v27, %v2537_v55  ;;  %v5295_v55 = vld [vmem:[%s8929_s13 + $0x20] sm:$0xff]  ;;  %v5296_v27 = vld [vmem:[%s8929_s13 + $0x28] sm:$0xff] }
0x119c   :  { %v6955_v0 = vpop.eup %6954 }
0x119d   :  { %v2553_v63 = vadd.f32 1.0, %v6955_v0  ;;  %6092 = vmatmul.mubr.msk.f32.gmra.mrb[74].mxu0 %vm91_vm0, %v2557_v41  ;;  %v6562_v41 = vpack.c.bf16 %v5296_v27, %v5295_v55  ;;  %v5297_v0 = vld [vmem:[%s8929_s13 + $0x30] sm:$0xff] }
0x119e   :  { %6094 = vmatprep.mubr.msk.f32.mxu0 %vm7105_vm2, %v7106_v47 }
0x119f   :  { %v2558_v31 = vmul.f32 %v2553_v63, %v2538_v8  ;;  %6563 = vmatpush3.bf16.msra.mxu1 %v6562_v41  ;;  %v5298_v8 = vld [vmem:[%s8929_s13 + $0x38] sm:$0xff] }
0x11a0   :  { %6564 = vmatprep.subr.bf16.mxu1 %v7104_v38  ;;  %v6565_v63 = vpack.c.bf16 %v5298_v8, %v5297_v0 }
0x11a1   :  { %6095 = vmatmul.mubr.msk.f32.gmra.mrb[76].mxu0 %vm91_vm0, %v2558_v31 }
0x11a2   :  { %6097 = vmatprep.mubr.msk.f32.mxu0 %vm7105_vm2, %v7106_v47 }
0x11a3   :  { %6566 = vmatpush3.bf16.msra.mxu1 %v6565_v63 }
0x11a4   :  { %6575 = vmatprep.subr.bf16.mxu1 %v7104_v38 }
0x11b6   :  { %v2531_v28 = vpop.f32.mrb[78].mxu1 }
0x11b7   :  { %v2532_v30 = vadd.f32 %v5279_v53, %v2531_v28  ;;  %v6068_v33 = vpop.f32.mrb[79].mxu1 }
0x11b9   :  { %v2544_v29 = vmul.f32 0.70710677, %v2532_v30  ;;  %v2539_v11 = vmul.f32 0.5, %v2532_v30 }
0x11bb   :  { %6956 = verf.f32 %v2544_v29 }
0x11c5   :  { %v6957_v62 = vpop.eup %6956 }
0x11c6   :  { %v2554_v37 = vadd.f32 1.0, %v6957_v62 }
0x11c8   :  { %v2559_v14 = vmul.f32 %v2554_v37, %v2539_v11 }
0x11ca   :  { %6098 = vmatmul.mubr.msk.f32.gmra.mrb[78].mxu0 %vm91_vm0, %v2559_v14 }
0x11cb   :  { %6133 = vmatprep.mubr.msk.f32.mxu0 %vm7105_vm2, %v7106_v47 }
0x1268   :  { %v2649_v4 = vpop.f32.mrb[70].mxu0 }
0x1269   :  { %v2673_v15 = vadd.f32 %v2649_v4, %v8017_v5  ;;  %v6087_v25 = vpop.f32.mrb[71].mxu0 }
0x126b   :  { %v8140_v35 = vadd.f32 %v5290_v16, %v2673_v15 }
0x126c   :  { %v2654_v2 = vpop.f32.mrb[72].mxu0 }
0x126d   :  { %v2674_v12 = vadd.f32 %v2654_v2, %v8023_v59  ;;  %v6090_v40 = vpop.f32.mrb[73].mxu0  ;;  %v2694_v42 = vsel %vm303_vm3, %v8140_v35, 0.0 }
0x126e   :  { %2695 = vadd.xlane.f32.xlu0 %v2694_v42 }
0x126f   :  { %v8145_v43 = vadd.f32 %v5290_v16, %v2674_v12 }
0x1270   :  { %v2659_v48 = vpop.f32.mrb[74].mxu0 }
0x1271   :  { %v2675_v49 = vadd.f32 %v2659_v48, %v8029_v17  ;;  %v6093_v50 = vpop.f32.mrb[75].mxu0  ;;  %v2697_v5 = vsel %vm303_vm3, %v8145_v43, 0.0  ;;  %v5293_v48 = vld [vmem:[%s8927_s11 + $0x1] ss:$0 sm:$0xff] }
0x1272   :  { %2698 = vadd.xlane.f32.xlu1 %v2697_v5  ;;  %v5294_v5 = vld [vmem:[%s8928_s12 + $0x1] ss:$0 sm:$0xff] }
0x1273   :  { %v8150_v39 = vadd.f32 %v5290_v16, %v2675_v49 }
0x1274   :  { %v2664_v36 = vpop.f32.mrb[76].mxu0 }
0x1275   :  { %v2676_v59 = vadd.f32 %v2664_v36, %v8035_v9  ;;  %v6096_v53 = vpop.f32.mrb[77].mxu0  ;;  %v2700_v20 = vsel %vm303_vm3, %v8150_v39, 0.0 }
0x1276   :  { %2701 = vadd.xlane.f32.xlu0 %v2700_v20 }
0x1277   :  { %v8155_v21 = vadd.f32 %v5290_v16, %v2676_v59 }
0x1279   :  { %v2703_v17 = vsel %vm303_vm3, %v8155_v21, 0.0 }
0x127a   :  { %2704 = vadd.xlane.f32.xlu1 %v2703_v17 }
0x129d   :  { %v2669_v54 = vpop.f32.mrb[78].mxu0 }
0x129e   :  { %v2677_v56 = vadd.f32 %v2669_v54, %v8041_v6  ;;  %v6099_v22 = vpop.f32.mrb[79].mxu0 }
0x12a0   :  { %v8160_v58 = vadd.f32 %v5290_v16, %v2677_v56 }
0x12a2   :  { %v2706_v9 = vsel %vm316_vm4, %v8160_v58, 0.0 }
0x12a3   :  { %2707 = vadd.xlane.f32.xlu0 %v2706_v9 }
0x12fb   :  { %v2696_v44 = vpop.xlane.xlu0 %2695 }
0x12fc   :  { %v2709_v46 = vmul.f32 0.03125, %v2696_v44 }
0x12fe   :  { %v2714_v60 = vsub.f32 %v8140_v35, %v2709_v46 }
0x12ff   :  { %v2699_v61 = vpop.xlane.xlu1 %2698 }
0x1300   :  { %v2710_v3 = vmul.f32 0.03125, %v2699_v61  ;;  %v2719_v18 = vmul.f32 %v2714_v60, %v2714_v60 }
0x1302   :  { %v2715_v19 = vsub.f32 %v8145_v43, %v2710_v3  ;;  %v2724_v7 = vsel %vm303_vm3, %v2719_v18, 0.0 }
0x1303   :  { %v2702_v52 = vpop.xlane.xlu0 %2701  ;;  %2725 = vadd.xlane.f32.xlu1 %v2724_v7 }
0x1304   :  { %v2711_v6 = vmul.f32 0.03125, %v2702_v52  ;;  %v2720_v51 = vmul.f32 %v2715_v19, %v2715_v19 }
0x1306   :  { %v2716_v10 = vsub.f32 %v8150_v39, %v2711_v6  ;;  %v2727_v13 = vsel %vm303_vm3, %v2720_v51, 0.0 }
0x1307   :  { %v2705_v34 = vpop.xlane.xlu1 %2704  ;;  %2728 = vadd.xlane.f32.xlu0 %v2727_v13 }
0x1308   :  { %v2712_v57 = vmul.f32 0.03125, %v2705_v34  ;;  %v2721_v24 = vmul.f32 %v2716_v10, %v2716_v10 }
0x130a   :  { %v2717_v45 = vsub.f32 %v8155_v21, %v2712_v57  ;;  %v2730_v1 = vsel %vm303_vm3, %v2721_v24, 0.0 }
0x130b   :  { %2731 = vadd.xlane.f32.xlu1 %v2730_v1 }
0x130c   :  { %v2722_v26 = vmul.f32 %v2717_v45, %v2717_v45 }
0x130e   :  { %v2733_v23 = vsel %vm303_vm3, %v2722_v26, 0.0 }
0x130f   :  { %2734 = vadd.xlane.f32.xlu0 %v2733_v23 }
0x1330   :  { %v2708_v31 = vpop.xlane.xlu0 %2707 }
0x1331   :  { %v2713_v28 = vmul.f32 0.03125, %v2708_v31 }
0x1333   :  { %v2718_v30 = vsub.f32 %v8160_v58, %v2713_v28 }
0x1335   :  { %v2723_v33 = vmul.f32 %v2718_v30, %v2718_v30 }
0x1337   :  { %v2736_v29 = vsel %vm316_vm4, %v2723_v33, 0.0 }
0x1338   :  { %2737 = vadd.xlane.f32.xlu1 %v2736_v29 }
0x1390   :  { %v2726_v62 = vpop.xlane.xlu1 %2725 }
0x1391   :  { %v2739_v11 = vmul.f32 0.03125, %v2726_v62 }
0x1393   :  { %v2744_v37 = vadd.f32 1e-05, %v2739_v11 }
0x1394   :  { %v2729_v14 = vpop.xlane.xlu0 %2728 }
0x1395   :  { %6958 = vrsqrt.f32 %v2744_v37  ;;  %v2740_v4 = vmul.f32 0.03125, %v2729_v14 }
0x1397   :  { %v2745_v16 = vadd.f32 1e-05, %v2740_v4 }
0x1398   :  { %v2732_v15 = vpop.xlane.xlu1 %2731 }
0x1399   :  { %6960 = vrsqrt.f32 %v2745_v16  ;;  %v2741_v25 = vmul.f32 0.03125, %v2732_v15 }
0x139b   :  { %v2746_v2 = vadd.f32 1e-05, %v2741_v25 }
0x139c   :  { %v2735_v12 = vpop.xlane.xlu0 %2734 }
0x139d   :  { %6962 = vrsqrt.f32 %v2746_v2  ;;  %v2742_v40 = vmul.f32 0.03125, %v2735_v12 }
0x139f   :  { %v6959_v42 = vpop.eup %6958  ;;  %v2747_v49 = vadd.f32 1e-05, %v2742_v40 }
0x13a0   :  { %v2754_v50 = vmul.f32 %v6959_v42, %v2714_v60 }
0x13a1   :  { %6964 = vrsqrt.f32 %v2747_v49 }
0x13a2   :  { %v2765_v36 = vmul.f32 %v5293_v48, %v2754_v50 }
0x13a3   :  { %v6961_v59 = vpop.eup %6960 }
0x13a4   :  { %v2776_v53 = vadd.f32 %v5294_v5, %v2765_v36  ;;  %v2755_v20 = vmul.f32 %v6961_v59, %v2715_v19 }
0x13a6   :  { %6109 = vmatmul.mubr.msk.f32.vlgmr.msra.gmra.mrb[80].mxu1 %vm303_vm3, %v2776_v53  ;;  %v2766_v17 = vmul.f32 %v5293_v48, %v2755_v20  ;;  %v8303_v20 = vld [vmem:[%s8980_s0] sm:$0xff] }
0x13a7   :  { %v6963_v54 = vpop.eup %6962  ;;  %6111 = vmatprep.mubr.msk.f32.mxu1 %vm7105_vm2, %v7106_v47 }
0x13a8   :  { %v2777_v56 = vadd.f32 %v5294_v5, %v2766_v17  ;;  %v2756_v22 = vmul.f32 %v6963_v54, %v2716_v10 }
0x13aa   :  { %6112 = vmatmul.mubr.msk.f32.gmra.mrb[82].mxu1 %vm303_vm3, %v2777_v56  ;;  %v2767_v9 = vmul.f32 %v5293_v48, %v2756_v22 }
0x13ab   :  { %v6965_v44 = vpop.eup %6964  ;;  %6114 = vmatprep.mubr.msk.f32.mxu1 %vm7105_vm2, %v7106_v47 }
0x13ac   :  { %v2778_v46 = vadd.f32 %v5294_v5, %v2767_v9  ;;  %v2757_v60 = vmul.f32 %v6965_v44, %v2717_v45  ;;  %v8313_v44 = vld [vmem:[%s8980_s0 + $0x8] sm:$0xff] }
0x13ae   :  { %6115 = vmatmul.mubr.msk.f32.gmra.mrb[84].mxu1 %vm303_vm3, %v2778_v46  ;;  %v2768_v61 = vmul.f32 %v5293_v48, %v2757_v60 }
0x13af   :  { %6117 = vmatprep.mubr.msk.f32.mxu1 %vm7105_vm2, %v7106_v47 }
0x13b0   :  { %v2779_v3 = vadd.f32 %v5294_v5, %v2768_v61 }
0x13b2   :  { %6118 = vmatmul.mubr.msk.f32.gmra.mrb[86].mxu1 %vm303_vm3, %v2779_v3 }
0x13b3   :  { %6120 = vmatprep.mubr.msk.f32.mxu1 %vm7105_vm2, %v7106_v47 }
0x13c5   :  { %v2738_v18 = vpop.xlane.xlu1 %2737 }
0x13c6   :  { %v2743_v19 = vmul.f32 0.03125, %v2738_v18 }
0x13c8   :  { %v2748_v7 = vadd.f32 1e-05, %v2743_v19  ;;  %v8323_v19 = vld [vmem:[%s8980_s0 + $0x10] sm:$0xff] }
0x13ca   :  { %6966 = vrsqrt.f32 %v2748_v7 }
0x13d4   :  { %v6967_v52 = vpop.eup %6966 }
0x13d5   :  { %v2758_v6 = vmul.f32 %v6967_v52, %v2718_v30 }
0x13d7   :  { %v2769_v51 = vmul.f32 %v5293_v48, %v2758_v6 }
0x13d9   :  { %v2780_v10 = vadd.f32 %v5294_v5, %v2769_v51 }
0x13db   :  { %6121 = vmatmul.mubr.msk.f32.gmra.mrb[88].mxu1 %vm303_vm3, %v2780_v10 }
0x13dc   :  { %6158 = vmatprep.mubr.msk.f32.mxu1 %vm7105_vm2, %v7106_v47 }
0x1479   :  { %v8209_v13 = vpop.f32.mrb[80].mxu1 }
0x147a   :  { %v6110_v34 = vpop.f32.mrb[81].mxu1 }
0x147b   :  { %v8330_v34 = vld [vmem:[%s8980_s0 + $0x18] sm:$0xff] }
0x147d   :  { %v8211_v57 = vpop.f32.mrb[82].mxu1 }
0x147e   :  { %v6113_v24 = vpop.f32.mrb[83].mxu1  ;;  %v8215_v45 = vpack.i.bf16 %v8211_v57, %v8209_v13 }
0x1480   :  { %6749 = vrot.lane.b32.xlu0 %v8215_v45, %s7107_s8 }
0x1481   :  { %v8219_v1 = vpop.f32.mrb[84].mxu1 }
0x1482   :  { %v6116_v26 = vpop.f32.mrb[85].mxu1 }
0x1484   :  { %6759 = vrot.lane.b32.xlu0 %v8215_v45, %s7108_s4 }
0x1485   :  { %v8223_v23 = vpop.f32.mrb[86].mxu1 }
0x1486   :  { %v6119_v55 = vpop.f32.mrb[87].mxu1  ;;  %v8227_v27 = vpack.i.bf16 %v8223_v23, %v8219_v1 }
0x1488   :  { %6754 = vrot.lane.b32.xlu1 %v8227_v27, %s7107_s8 }
0x14ae   :  { %v8231_v41 = vpop.f32.mrb[88].mxu1 }
0x14af   :  { %3225 = vrot.lane.b32.xlu0 %v8231_v41, %s7108_s4  ;;  %2909 = vrot.lane.b32.xlu1 %v8231_v41, %s7107_s8  ;;  %v6122_v0 = vpop.f32.mrb[89].mxu1  ;;  %s8985_s8 = smov 40  }
0x14b3   :  { %3209 = vrot.lane.b32.xlu0 %v8211_v57, %s7109_s29  ;;  %6764 = vrot.lane.b32.xlu1 %v8227_v27, %s7108_s4 }
0x14b7   :  { %3213 = vrot.lane.b32.xlu0 %v8223_v23, %s7109_s29  ;;  %3207 = vrot.lane.b32.xlu1 %v8209_v13, %s7109_s29 }
0x14bb   :  { %3211 = vrot.lane.b32.xlu1 %v8219_v1, %s7109_s29 }
0x14bf   :  { %3215 = vrot.lane.b32.xlu1 %v8231_v41, %s7109_s29 }
0x14f2   :  { %v6750_v8 = vpop.permute.xlu0 %6749 }
0x14f3   :  { %v6752_v63 = vunpack.i.h.bf16 %v6750_v8  ;;  %v6751_v31 = vunpack.i.l.bf16 %v6750_v8 }
0x14f5   :  { %v6568_v28 = vpack.c.bf16 %v6752_v63, %v6751_v31  ;;  %v8337_v63 = vld [vmem:[%s8980_s0 + $0x20] sm:$0x3]  ;;  %s8981_s0 = smov 112  }
0x14f6   :  { %v6760_v11 = vpop.permute.xlu0 %6759 }
0x14f7   :  { %6570 = vmatpush3.bf16.xpose.msk.msra.mxu0 %vm7515_vm6, %v6568_v28  ;;  %v6762_v37 = vunpack.i.h.bf16 %v6760_v11  ;;  %v6761_v14 = vunpack.i.l.bf16 %v6760_v11 }
0x14f8   :  { %6571 = vmatprep.subr.bf16.mxu0 %v7104_v38 }
0x14f9   :  { %v6582_v16 = vpack.c.bf16 %v6762_v37, %v6761_v14 }
0x14fa   :  { %v6755_v30 = vpop.permute.xlu1 %6754 }
0x14fb   :  { %v6757_v33 = vunpack.i.h.bf16 %v6755_v30  ;;  %v6756_v29 = vunpack.i.l.bf16 %v6755_v30 }
0x14fd   :  { %v6572_v62 = vpack.c.bf16 %v6757_v33, %v6756_v29 }
0x14ff   :  { %6574 = vmatpush3.bf16.xpose.msk.msra.mxu0 %vm7515_vm6, %v6572_v62 }
0x1500   :  { %6131 = vmatprep.subr.mxu0 %v7106_v47 }
0x1521   :  { %v2910_v4 = vpop.permute.xlu1 %2909  ;;  %v3226_v40 = vpop.permute.xlu0 %3225 }
0x1522   :  { %6132 = vmatpush3.xpose.msk.msra.mxu0 %vm635_vm5, %v2910_v4 }
0x1523   :  { %6581 = vmatprep.subr.bf16.mxu0 %v7104_v38 }
0x1525   :  { %6134 = vmatmul.mubr.msk.f32.vlgmr.msra.gmra.mrb[80].mxu0 %vm635_vm5, %v8209_v13  ;;  %v6765_v15 = vpop.permute.xlu1 %6764  ;;  %v3210_v48 = vpop.permute.xlu0 %3209 }
0x1526   :  { %6584 = vmatpush3.bf16.xpose.msk.msra.mxu0 %vm7515_vm6, %v6582_v16  ;;  %6136 = vmatprep.mubr.msk.f32.mxu0 %vm7105_vm2, %v7106_v47  ;;  %v6767_v25 = vunpack.i.h.bf16 %v6765_v15  ;;  %v6766_v2 = vunpack.i.l.bf16 %v6765_v15 }
0x1527   :  { %6585 = vmatprep.subr.bf16.mxu0 %v7104_v38 }
0x1528   :  { %v6586_v12 = vpack.c.bf16 %v6767_v25, %v6766_v2 }
0x1529   :  { %6137 = vmatmul.mubr.msk.f32.gmra.mrb[82].mxu0 %vm635_vm5, %v8211_v57  ;;  %v3208_v42 = vpop.permute.xlu1 %3207  ;;  %v3214_v50 = vpop.permute.xlu0 %3213 }
0x152a   :  { %6139 = vmatprep.mubr.msk.f32.mxu0 %vm7105_vm2, %v7106_v47 }
0x152d   :  { %6140 = vmatmul.mubr.msk.f32.gmra.mrb[84].mxu0 %vm635_vm5, %v8219_v1  ;;  %v3212_v49 = vpop.permute.xlu1 %3211 }
0x152e   :  { %6588 = vmatpush3.bf16.xpose.msk.msra.mxu0 %vm7515_vm6, %v6586_v12  ;;  %6142 = vmatprep.mubr.msk.f32.mxu0 %vm7105_vm2, %v7106_v47 }
0x152f   :  { %6181 = vmatprep.subr.mxu0 %v7106_v47 }
0x1531   :  { %6143 = vmatmul.mubr.msk.f32.gmra.mrb[86].mxu0 %vm635_vm5, %v8223_v23  ;;  %v3216_v5 = vpop.permute.xlu1 %3215 }
0x1532   :  { %6145 = vmatprep.mubr.msk.f32.mxu0 %vm7105_vm2, %v7106_v47 }
0x1535   :  { %6146 = vmatmul.mubr.msk.f32.gmra.mrb[88].mxu0 %vm635_vm5, %v8231_v41 }
0x1536   :  { %6182 = vmatpush3.xpose.msk.msra.mxu0 %vm635_vm5, %v3226_v40  ;;  %6183 = vmatprep.mubr.msk.f32.mxu0 %vm7105_vm2, %v7106_v47 }
0x1537   :  { %6223 = vmatprep.subr.mxu0 %v7106_v47 }
0x1539   :  { %6184 = vmatmul.mubr.msk.f32.vlgmr.msra.gmra.mrb[90].mxu0 %vm635_vm5, %v3208_v42 }
0x153a   :  { %6186 = vmatprep.mubr.msk.f32.mxu0 %vm7105_vm2, %v7106_v47 }
0x153d   :  { %6187 = vmatmul.mubr.msk.f32.gmra.mrb[92].mxu0 %vm635_vm5, %v3210_v48 }
0x153e   :  { %6189 = vmatprep.mubr.msk.f32.mxu0 %vm7105_vm2, %v7106_v47 }
0x1541   :  { %6190 = vmatmul.mubr.msk.f32.gmra.mrb[94].mxu0 %vm635_vm5, %v3212_v49 }
0x1542   :  { %6192 = vmatprep.mubr.msk.f32.mxu0 %vm7105_vm2, %v7106_v47 }
0x1545   :  { %6193 = vmatmul.mubr.msk.f32.gmra.mrb[96].mxu0 %vm635_vm5, %v3214_v50 }
0x1546   :  { %6195 = vmatprep.mubr.msk.f32.mxu0 %vm7105_vm2, %v7106_v47 }
0x1549   :  { %6196 = vmatmul.mubr.msk.f32.gmra.mrb[98].mxu0 %vm635_vm5, %v3216_v5 }
0x154a   :  { %6225 = vmatprep.mubr.msk.f32.mxu0 %vm7105_vm2, %v7106_v47 }
0x15f8   :  { %v2997_v36 = vpop.f32.mrb[80].mxu0 }
0x15f9   :  { %v3021_v59 = vmul.f32 0.35355338, %v2997_v36  ;;  %v6135_v53 = vpop.f32.mrb[81].mxu0 }
0x15fb   :  { %v8306_v17 = vadd.f32 %v8303_v20, %v3021_v59 }
0x15fc   :  { %v3002_v54 = vpop.f32.mrb[82].mxu0 }
0x15fd   :  { %v3022_v56 = vmul.f32 0.35355338, %v3002_v54  ;;  %v6138_v22 = vpop.f32.mrb[83].mxu0  ;;  %v3031_v9 = vsel %vm756_vm7, %v8306_v17, -inf }
0x15fe   :  { %3032 = vmax.xlane.f32.xlu0 %v3031_v9 }
0x15ff   :  { %v8316_v46 = vadd.f32 %v8313_v44, %v3022_v56 }
0x1600   :  { %v3007_v60 = vpop.f32.mrb[84].mxu0 }
0x1601   :  { %v3023_v61 = vmul.f32 0.35355338, %v3007_v60  ;;  %v6141_v3 = vpop.f32.mrb[85].mxu0  ;;  %v3034_v18 = vsel %vm756_vm7, %v8316_v46, -inf }
0x1602   :  { %3035 = vmax.xlane.f32.xlu1 %v3034_v18 }
0x1603   :  { %v3028_v7 = vadd.f32 %v8323_v19, %v3023_v61 }
0x1604   :  { %v3012_v52 = vpop.f32.mrb[86].mxu0 }
0x1605   :  { %v3024_v6 = vmul.f32 0.35355338, %v3012_v52  ;;  %v6144_v51 = vpop.f32.mrb[87].mxu0  ;;  %v3037_v10 = vsel %vm756_vm7, %v3028_v7, -inf }
0x1606   :  { %3038 = vmax.xlane.f32.xlu0 %v3037_v10 }
0x1607   :  { %v3029_v24 = vadd.f32 %v8330_v34, %v3024_v6 }
0x1608   :  { %v3017_v26 = vpop.f32.mrb[88].mxu0 }
0x1609   :  { %v3025_v55 = vmul.f32 0.35355338, %v3017_v26  ;;  %v6147_v0 = vpop.f32.mrb[89].mxu0  ;;  %v3040_v8 = vsel %vm756_vm7, %v3029_v24, -inf }
0x160a   :  { %3041 = vmax.xlane.f32.xlu0 %v3040_v8 }
0x160b   :  { %v3030_v31 = vadd.f32 %v8337_v63, %v3025_v55 }
0x160c   :  { %v3313_v28 = vpop.f32.mrb[90].mxu0 }
0x160d   :  { %v3337_v30 = vmul.f32 0.35355338, %v3313_v28  ;;  %v6185_v33 = vpop.f32.mrb[91].mxu0  ;;  %v3043_v29 = vsel %vm769_vm8, %v3030_v31, -inf }
0x160e   :  { %3044 = vmax.xlane.f32.xlu1 %v3043_v29 }
0x160f   :  { %v3342_v62 = vadd.f32 %v8303_v20, %v3337_v30 }
0x1610   :  { %v3318_v11 = vpop.f32.mrb[92].mxu0 }
0x1611   :  { %v3338_v37 = vmul.f32 0.35355338, %v3318_v11  ;;  %v6188_v14 = vpop.f32.mrb[93].mxu0  ;;  %v3347_v4 = vsel %vm756_vm7, %v3342_v62, -inf }
0x1612   :  { %3348 = vmax.xlane.f32.xlu0 %v3347_v4 }
0x1613   :  { %v3343_v16 = vadd.f32 %v8313_v44, %v3338_v37 }
0x1614   :  { %v3323_v15 = vpop.f32.mrb[94].mxu0 }
0x1615   :  { %v3339_v25 = vmul.f32 0.35355338, %v3323_v15  ;;  %v6191_v2 = vpop.f32.mrb[95].mxu0  ;;  %v3350_v12 = vsel %vm756_vm7, %v3343_v16, -inf }
0x1616   :  { %3351 = vmax.xlane.f32.xlu1 %v3350_v12 }
0x1617   :  { %v3344_v40 = vadd.f32 %v8323_v19, %v3339_v25 }
0x1618   :  { %v3328_v42 = vpop.f32.mrb[96].mxu0 }
0x1619   :  { %v3340_v48 = vmul.f32 0.35355338, %v3328_v42  ;;  %v6194_v49 = vpop.f32.mrb[97].mxu0  ;;  %v3353_v50 = vsel %vm756_vm7, %v3344_v40, -inf }
0x161a   :  { %3354 = vmax.xlane.f32.xlu0 %v3353_v50 }
0x161b   :  { %v8348_v5 = vadd.f32 %v8330_v34, %v3340_v48 }
0x161c   :  { %v3333_v36 = vpop.f32.mrb[98].mxu0 }
0x161d   :  { %v6197_v59 = vpop.f32.mrb[99].mxu0  ;;  %v3356_v53 = vsel %vm756_vm7, %v8348_v5, -inf  ;;  %v3341_v54 = vmul.f32 0.35355338, %v3333_v36 }
0x161e   :  { %3357 = vmax.xlane.f32.xlu1 %v3356_v53 }
0x161f   :  { %v8357_v56 = vadd.f32 %v8337_v63, %v3341_v54 }
0x1621   :  { %v3359_v22 = vsel %vm769_vm8, %v8357_v56, -inf }
0x162f   :  { %6774 = vrot.lane.b32.xlu1 %v8227_v27, %s7110_s7 }
0x1630   :  { %6769 = vrot.lane.b32.xlu0 %v8215_v45, %s7110_s7 }
0x164f   :  { %3360 = vmax.xlane.f32.xlu0 %v3359_v22 }
0x1665   :  { %3094 = vrot.lane.b32.xlu0 %v8231_v41, %s7110_s7 }
0x168b   :  { %v3033_v9 = vpop.xlane.xlu0 %3032 }
0x168c   :  { %v3046_v60 = vsub.f32 %v8306_v17, %v3033_v9 }
0x168e   :  { %v3051_v61 = vmul.f32 1.442695, %v3046_v60 }
0x168f   :  { %v3036_v3 = vpop.xlane.xlu1 %3035 }
0x1690   :  { %6968 = vpow2.f32 %v3051_v61  ;;  %v3047_v18 = vsub.f32 %v8316_v46, %v3036_v3 }
0x1692   :  { %v3053_v52 = vmul.f32 1.442695, %v3047_v18 }
0x1693   :  { %v3039_v6 = vpop.xlane.xlu0 %3038 }
0x1694   :  { %6970 = vpow2.f32 %v3053_v52  ;;  %v3048_v51 = vsub.f32 %v3028_v7, %v3039_v6 }
0x1696   :  { %v3055_v10 = vmul.f32 1.442695, %v3048_v51 }
0x1697   :  { %v3042_v26 = vpop.xlane.xlu0 %3041 }
0x1698   :  { %6972 = vpow2.f32 %v3055_v10  ;;  %v3049_v55 = vsub.f32 %v3029_v24, %v3042_v26 }
0x169a   :  { %v8365_v0 = vpop.eup %6968  ;;  %v3057_v8 = vmul.f32 1.442695, %v3049_v55 }
0x169b   :  { %v3045_v28 = vpop.xlane.xlu1 %3044  ;;  %v3061_v17 = vsel %vm756_vm7, %v8365_v0, 0.0 }
0x169c   :  { %6974 = vpow2.f32 %v3057_v8  ;;  %v3050_v30 = vsub.f32 %v3030_v31, %v3045_v28  ;;  %3062 = vadd.xlane.f32.xlu1 %v3061_v17 }
0x169e   :  { %v8369_v33 = vpop.eup %6970  ;;  %v3059_v46 = vmul.f32 1.442695, %v3050_v30 }
0x169f   :  { %v3349_v29 = vpop.xlane.xlu0 %3348  ;;  %v3064_v7 = vsel %vm756_vm7, %v8369_v33, 0.0 }
0x16a0   :  { %6976 = vpow2.f32 %v3059_v46  ;;  %v3362_v11 = vsub.f32 %v3342_v62, %v3349_v29  ;;  %3065 = vadd.xlane.f32.xlu0 %v3064_v7 }
0x16a2   :  { %v8373_v24 = vpop.eup %6972  ;;  %v3367_v37 = vmul.f32 1.442695, %v3362_v11 }
0x16a3   :  { %v3352_v14 = vpop.xlane.xlu1 %3351  ;;  %v3067_v4 = vsel %vm756_vm7, %v8373_v24, 0.0 }
0x16a4   :  { %6978 = vpow2.f32 %v3367_v37  ;;  %v3363_v31 = vsub.f32 %v3343_v16, %v3352_v14  ;;  %3068 = vadd.xlane.f32.xlu1 %v3067_v4 }
0x16a6   :  { %v8377_v15 = vpop.eup %6974  ;;  %v3369_v25 = vmul.f32 1.442695, %v3363_v31 }
0x16a7   :  { %v3355_v2 = vpop.xlane.xlu0 %3354  ;;  %v3070_v12 = vsel %vm756_vm7, %v8377_v15, 0.0 }
0x16a8   :  { %6980 = vpow2.f32 %v3369_v25  ;;  %v3364_v62 = vsub.f32 %v3344_v40, %v3355_v2  ;;  %3071 = vadd.xlane.f32.xlu0 %v3070_v12 }
0x16aa   :  { %v8381_v42 = vpop.eup %6976  ;;  %v3371_v48 = vmul.f32 1.442695, %v3364_v62 }
0x16ab   :  { %v6770_v49 = vpop.permute.xlu0 %6769  ;;  %v3358_v50 = vpop.xlane.xlu1 %3357  ;;  %v3073_v36 = vsel %vm769_vm8, %v8381_v42, 0.0 }
0x16ac   :  { %6982 = vpow2.f32 %v3371_v48  ;;  %v6772_v16 = vunpack.i.h.bf16 %v6770_v49  ;;  %v6771_v59 = vunpack.i.l.bf16 %v6770_v49  ;;  %v3365_v53 = vsub.f32 %v8348_v5, %v3358_v50  ;;  %3074 = vadd.xlane.f32.xlu1 %v3073_v36 }
0x16ae   :  { %v8386_v54 = vpop.eup %6978  ;;  %v6576_v22 = vpack.c.bf16 %v6772_v16, %v6771_v59  ;;  %v3373_v9 = vmul.f32 1.442695, %v3365_v53 }
0x16af   :  { %v6775_v40 = vpop.permute.xlu1 %6774  ;;  %v3377_v60 = vsel %vm756_vm7, %v8386_v54, 0.0 }
0x16b0   :  { %6984 = vpow2.f32 %v3373_v9  ;;  %v6777_v61 = vunpack.i.h.bf16 %v6775_v40  ;;  %v6776_v3 = vunpack.i.l.bf16 %v6775_v40  ;;  %6577 = vmatpush3.bf16.msra.mxu1 %v6576_v22  ;;  %3378 = vadd.xlane.f32.xlu1 %v3377_v60 }
0x16b1   :  { %6578 = vmatprep.subr.bf16.mxu1 %v7104_v38 }
0x16b2   :  { %v8391_v18 = vpop.eup %6980  ;;  %v6579_v52 = vpack.c.bf16 %v6777_v61, %v6776_v3 }
0x16b3   :  { %v3380_v5 = vsel %vm756_vm7, %v8391_v18, 0.0 }
0x16b4   :  { %6580 = vmatpush3.bf16.msra.mxu1 %v6579_v52  ;;  %3381 = vadd.xlane.f32.xlu0 %v3380_v5  ;;  %v5304_v5 = vld [vmem:[%s8930_s14 + $0x20] sm:$0xff] }
0x16b5   :  { %6156 = vmatprep.subr.mxu1 %v7106_v47 }
0x16b6   :  { %v8396_v6 = vpop.eup %6982 }
0x16b7   :  { %v3383_v51 = vsel %vm756_vm7, %v8396_v6, 0.0 }
0x16b8   :  { %3384 = vadd.xlane.f32.xlu1 %v3383_v51 }
0x16ba   :  { %v8400_v10 = vpop.eup %6984 }
0x16bb   :  { %v3386_v26 = vsel %vm756_vm7, %v8400_v10, 0.0 }
0x16bc   :  { %3387 = vadd.xlane.f32.xlu1 %v3386_v26 }
0x16ca   :  { %6784 = vrot.lane.b32.xlu0 %v8227_v27, %s7111_s27 }
0x16ce   :  { %3410 = vrot.lane.b32.xlu0 %v8231_v41, %s7111_s27 }
0x16d2   :  { %6789 = vrot.lane.b32.xlu0 %v8215_v45, %s7112_s28 }
0x16d6   :  { %3751 = vrot.lane.b32.xlu0 %v8231_v41, %s7112_s28 }
0x16da   :  { %3735 = vrot.lane.b32.xlu0 %v8211_v57, %s8981_s0 }
0x16dc   :  { %v3361_v55 = vpop.xlane.xlu0 %3360 }
0x16dd   :  { %v3366_v8 = vsub.f32 %v8357_v56, %v3361_v55 }
0x16de   :  { %3739 = vrot.lane.b32.xlu0 %v8223_v23, %s8981_s0 }
0x16df   :  { %v3375_v28 = vmul.f32 1.442695, %v3366_v8 }
0x16e0   :  { %v3095_v17 = vpop.permute.xlu0 %3094 }
0x16e1   :  { %6986 = vpow2.f32 %v3375_v28  ;;  %6157 = vmatpush3.msk.msra.mxu1 %vm842_vm9, %v3095_v17 }
0x16e2   :  { %6589 = vmatprep.subr.bf16.mxu1 %v7104_v38 }
0x16eb   :  { %v8419_v30 = vpop.eup %6986 }
0x16ec   :  { %v3389_v46 = vsel %vm769_vm8, %v8419_v30, 0.0 }
0x16ed   :  { %3390 = vadd.xlane.f32.xlu1 %v3389_v46 }
0x16fe   :  { %6779 = vrot.lane.b32.xlu1 %v8215_v45, %s7111_s27 }
0x1702   :  { %6794 = vrot.lane.b32.xlu1 %v8227_v27, %s7112_s28 }
0x1706   :  { %3733 = vrot.lane.b32.xlu1 %v8209_v13, %s8981_s0 }
0x170a   :  { %3737 = vrot.lane.b32.xlu1 %v8219_v1, %s8981_s0 }
0x170e   :  { %3741 = vrot.lane.b32.xlu1 %v8231_v41, %s8981_s0 }
0x1729   :  { %v3063_v56 = vpop.xlane.xlu1 %3062 }
0x172a   :  { %6988 = vrcp.f32 %v3063_v56 }
0x172d   :  { %v3066_v29 = vpop.xlane.xlu0 %3065 }
0x172e   :  { %6990 = vrcp.f32 %v3066_v29 }
0x1731   :  { %v3069_v7 = vpop.xlane.xlu1 %3068 }
0x1732   :  { %6992 = vrcp.f32 %v3069_v7 }
0x1734   :  { %v6989_v11 = vpop.eup %6988 }
0x1735   :  { %v3081_v37 = vmul.f32 %v6989_v11, %v8365_v0  ;;  %v3072_v14 = vpop.xlane.xlu0 %3071 }
0x1736   :  { %6994 = vrcp.f32 %v3072_v14 }
0x1737   :  { %6159 = vmatmul.mubr.msk.f32.vlgmr.msra.gmra.mrb[90].mxu1 %vm756_vm7, %v3081_v37 }
0x1738   :  { %v6991_v4 = vpop.eup %6990  ;;  %6161 = vmatprep.mubr.msk.f32.mxu1 %vm7105_vm2, %v7106_v47 }
0x1739   :  { %v3075_v31 = vpop.xlane.xlu1 %3074  ;;  %v3082_v25 = vmul.f32 %v6991_v4, %v8369_v33 }
0x173a   :  { %6996 = vrcp.f32 %v3075_v31 }
0x173b   :  { %6162 = vmatmul.mubr.msk.f32.gmra.mrb[92].mxu1 %vm756_vm7, %v3082_v25 }
0x173c   :  { %v6993_v2 = vpop.eup %6992  ;;  %6164 = vmatprep.mubr.msk.f32.mxu1 %vm7105_vm2, %v7106_v47 }
0x173d   :  { %v3083_v0 = vmul.f32 %v6993_v2, %v8373_v24  ;;  %v3379_v24 = vpop.xlane.xlu1 %3378 }
0x173e   :  { %6998 = vrcp.f32 %v3379_v24 }
0x173f   :  { %6165 = vmatmul.mubr.msk.f32.gmra.mrb[94].mxu1 %vm756_vm7, %v3083_v0 }
0x1740   :  { %v6995_v12 = vpop.eup %6994  ;;  %6167 = vmatprep.mubr.msk.f32.mxu1 %vm7105_vm2, %v7106_v47 }
0x1741   :  { %v3084_v62 = vmul.f32 %v6995_v12, %v8377_v15  ;;  %v3382_v36 = vpop.xlane.xlu0 %3381 }
0x1742   :  { %7000 = vrcp.f32 %v3382_v36 }
0x1743   :  { %6168 = vmatmul.mubr.msk.f32.gmra.mrb[96].mxu1 %vm756_vm7, %v3084_v62 }
0x1744   :  { %v6997_v33 = vpop.eup %6996  ;;  %6170 = vmatprep.mubr.msk.f32.mxu1 %vm7105_vm2, %v7106_v47 }
0x1745   :  { %v3085_v48 = vmul.f32 %v6997_v33, %v8381_v42  ;;  %v3385_v49 = vpop.xlane.xlu1 %3384  ;;  %v6785_v15 = vpop.permute.xlu0 %6784 }
0x1746   :  { %v6787_v9 = vunpack.i.h.bf16 %v6785_v15  ;;  %v6786_v40 = vunpack.i.l.bf16 %v6785_v15  ;;  %7002 = vrcp.f32 %v3385_v49 }
0x1747   :  { %6171 = vmatmul.mubr.msk.f32.gmra.mrb[98].mxu1 %vm756_vm7, %v3085_v48 }
0x1748   :  { %6208 = vmatprep.mubr.msk.f32.mxu1 %vm7105_vm2, %v7106_v47  ;;  %v6593_v42 = vpack.c.bf16 %v6787_v9, %v6786_v40  ;;  %v6999_v61 = vpop.eup %6998 }
0x1749   :  { %v3388_v50 = vpop.xlane.xlu1 %3387  ;;  %v3397_v3 = vmul.f32 %v6999_v61, %v8386_v54  ;;  %v3411_v52 = vpop.permute.xlu0 %3410 }
0x174a   :  { %7004 = vrcp.f32 %v3388_v50 }
0x174c   :  { %v7001_v51 = vpop.eup %7000 }
0x174d   :  { %v3398_v26 = vmul.f32 %v7001_v51, %v8391_v18  ;;  %v6790_v31 = vpop.permute.xlu0 %6789 }
0x174e   :  { %v6792_v25 = vunpack.i.h.bf16 %v6790_v31  ;;  %v6791_v2 = vunpack.i.l.bf16 %v6790_v31 }
0x1750   :  { %v7003_v54 = vpop.eup %7002  ;;  %v6596_v0 = vpack.c.bf16 %v6792_v25, %v6791_v2 }
0x1751   :  { %v3399_v55 = vmul.f32 %v7003_v54, %v8396_v6  ;;  %v5305_v6 = vld [vmem:[%s8930_s14 + $0x28] sm:$0xff]  ;;  %v3752_v9 = vpop.permute.xlu0 %3751 }
0x1752   :  { %6224 = vmatpush3.msra.mxu0 %v5305_v6 }
0x1753   :  { %6595 = vmatprep.subr.bf16.mxu0 %v7104_v38 }
0x1754   :  { %v7005_v8 = vpop.eup %7004 }
0x1755   :  { %v3400_v28 = vmul.f32 %v7005_v8, %v8400_v10 }
0x177a   :  { %v3391_v16 = vpop.xlane.xlu1 %3390 }
0x177b   :  { %7006 = vrcp.f32 %v3391_v16 }
0x177e   :  { %v6780_v59 = vpop.permute.xlu1 %6779 }
0x177f   :  { %v6782_v53 = vunpack.i.h.bf16 %v6780_v59  ;;  %v6781_v22 = vunpack.i.l.bf16 %v6780_v59 }
0x1781   :  { %v6590_v60 = vpack.c.bf16 %v6782_v53, %v6781_v22 }
0x1782   :  { %v6795_v62 = vpop.permute.xlu1 %6794 }
0x1783   :  { %6591 = vmatpush3.bf16.msra.mxu1 %v6590_v60  ;;  %v6797_v48 = vunpack.i.h.bf16 %v6795_v62  ;;  %v6796_v24 = vunpack.i.l.bf16 %v6795_v62 }
0x1784   :  { %6592 = vmatprep.subr.bf16.mxu1 %v7104_v38 }
0x1785   :  { %v7007_v17 = vpop.eup %7006  ;;  %v6600_v36 = vpack.c.bf16 %v6797_v48, %v6796_v24 }
0x1786   :  { %v3401_v18 = vmul.f32 %v7007_v17, %v8419_v30  ;;  %v3734_v60 = vpop.permute.xlu1 %3733 }
0x1787   :  { %6594 = vmatpush3.bf16.msra.mxu1 %v6593_v42  ;;  %v3736_v42 = vpop.permute.xlu0 %3735 }
0x1788   :  { %6206 = vmatprep.subr.mxu1 %v7106_v47 }
0x178a   :  { %v3738_v61 = vpop.permute.xlu1 %3737 }
0x178b   :  { %6207 = vmatpush3.msk.msra.mxu1 %vm842_vm9, %v3411_v52 }
0x178c   :  { %6209 = vmatmul.mubr.msk.f32.vlgmr.msra.gmra.mrb[100].mxu1 %vm756_vm7, %v3397_v3  ;;  %6240 = vmatprep.subr.mxu1 %v7106_v47  ;;  %v3740_v3 = vpop.permute.xlu0 %3739 }
0x178d   :  { %6211 = vmatprep.mubr.msk.f32.mxu1 %vm7105_vm2, %v7106_v47  ;;  %6241 = vmatpush3.msra.mxu1 %v5304_v5 }
0x178e   :  { %6603 = vmatprep.subr.bf16.mxu1 %v7104_v38  ;;  %v3742_v52 = vpop.permute.xlu1 %3741 }
0x1790   :  { %6212 = vmatmul.mubr.msk.f32.gmra.mrb[102].mxu1 %vm756_vm7, %v3398_v26 }
0x1791   :  { %6214 = vmatprep.mubr.msk.f32.mxu1 %vm7105_vm2, %v7106_v47 }
0x1794   :  { %6215 = vmatmul.mubr.msk.f32.gmra.mrb[104].mxu1 %vm756_vm7, %v3399_v55 }
0x1795   :  { %6217 = vmatprep.mubr.msk.f32.mxu1 %vm7105_vm2, %v7106_v47 }
0x1798   :  { %6218 = vmatmul.mubr.msk.f32.gmra.mrb[106].mxu1 %vm756_vm7, %v3400_v28 }
0x1799   :  { %6220 = vmatprep.mubr.msk.f32.mxu1 %vm7105_vm2, %v7106_v47 }
0x179c   :  { %6221 = vmatmul.mubr.msk.f32.gmra.mrb[108].mxu1 %vm756_vm7, %v3401_v18 }
0x179d   :  { %6242 = vmatprep.mubr.msk.f32.mxu1 %vm7105_vm2, %v7106_v47 }
0x180a   :  { %v3183_v10 = vpop.f32.mrb[90].mxu1 }
0x180b   :  { %v6160_v46 = vpop.f32.mrb[91].mxu1  ;;  %6243 = vmatmul.mubr.msk.f32.vlgmr.msra.gmra.mrb[110].mxu1 %vm635_vm5, %v3183_v10 }
0x180c   :  { %6245 = vmatprep.mubr.msk.f32.mxu1 %vm7105_vm2, %v7106_v47 }
0x180e   :  { %v3188_v30 = vpop.f32.mrb[92].mxu1 }
0x180f   :  { %v6163_v56 = vpop.f32.mrb[93].mxu1  ;;  %6246 = vmatmul.mubr.msk.f32.gmra.mrb[112].mxu1 %vm635_vm5, %v3188_v30 }
0x1810   :  { %6248 = vmatprep.mubr.msk.f32.mxu1 %vm7105_vm2, %v7106_v47 }
0x1812   :  { %v3193_v29 = vpop.f32.mrb[94].mxu1 }
0x1813   :  { %v6166_v7 = vpop.f32.mrb[95].mxu1  ;;  %6249 = vmatmul.mubr.msk.f32.gmra.mrb[114].mxu1 %vm635_vm5, %v3193_v29 }
0x1814   :  { %6251 = vmatprep.mubr.msk.f32.mxu1 %vm7105_vm2, %v7106_v47 }
0x1816   :  { %v3198_v11 = vpop.f32.mrb[96].mxu1 }
0x1817   :  { %v6169_v37 = vpop.f32.mrb[97].mxu1  ;;  %6252 = vmatmul.mubr.msk.f32.gmra.mrb[116].mxu1 %vm635_vm5, %v3198_v11 }
0x1818   :  { %6254 = vmatprep.mubr.msk.f32.mxu1 %vm7105_vm2, %v7106_v47 }
0x181a   :  { %v3203_v14 = vpop.f32.mrb[98].mxu1 }
0x181b   :  { %v6172_v4 = vpop.f32.mrb[99].mxu1  ;;  %6255 = vmatmul.mubr.msk.f32.gmra.mrb[118].mxu1 %vm635_vm5, %v3203_v14 }
0x181c   :  { %6292 = vmatprep.mubr.msk.f32.mxu1 %vm7105_vm2, %v7106_v47 }
0x185f   :  { %v3499_v12 = vpop.f32.mrb[100].mxu1 }
0x1860   :  { %v6210_v33 = vpop.f32.mrb[101].mxu1  ;;  %6226 = vmatmul.mubr.msk.f32.vlgmr.msra.gmra.mrb[100].mxu0 %vm635_vm5, %v3499_v12 }
0x1861   :  { %6598 = vmatpush3.bf16.xpose.msk.msra.mxu0 %vm7515_vm6, %v6596_v0  ;;  %6228 = vmatprep.mubr.msk.f32.mxu0 %vm7105_vm2, %v7106_v47 }
0x1862   :  { %6599 = vmatprep.subr.bf16.mxu0 %v7104_v38 }
0x1863   :  { %v3504_v49 = vpop.f32.mrb[102].mxu1 }
0x1864   :  { %v6213_v50 = vpop.f32.mrb[103].mxu1  ;;  %6229 = vmatmul.mubr.msk.f32.gmra.mrb[102].mxu0 %vm635_vm5, %v3504_v49 }
0x1865   :  { %6231 = vmatprep.mubr.msk.f32.mxu0 %vm7105_vm2, %v7106_v47 }
0x1867   :  { %v3509_v16 = vpop.f32.mrb[104].mxu1 }
0x1868   :  { %v6216_v15 = vpop.f32.mrb[105].mxu1  ;;  %6232 = vmatmul.mubr.msk.f32.gmra.mrb[104].mxu0 %vm635_vm5, %v3509_v16 }
0x1869   :  { %6602 = vmatpush3.bf16.xpose.msk.msra.mxu0 %vm7515_vm6, %v6600_v36  ;;  %6234 = vmatprep.mubr.msk.f32.mxu0 %vm7105_vm2, %v7106_v47 }
0x186a   :  { %6265 = vmatprep.subr.mxu0 %v7106_v47 }
0x186b   :  { %v3514_v59 = vpop.f32.mrb[106].mxu1 }
0x186c   :  { %v6219_v53 = vpop.f32.mrb[107].mxu1  ;;  %6235 = vmatmul.mubr.msk.f32.gmra.mrb[106].mxu0 %vm635_vm5, %v3514_v59 }
0x186d   :  { %6237 = vmatprep.mubr.msk.f32.mxu0 %vm7105_vm2, %v7106_v47 }
0x186f   :  { %v3519_v22 = vpop.f32.mrb[108].mxu1 }
0x1870   :  { %v6222_v40 = vpop.f32.mrb[109].mxu1  ;;  %6238 = vmatmul.mubr.msk.f32.gmra.mrb[108].mxu0 %vm635_vm5, %v3519_v22 }
0x1871   :  { %6266 = vmatpush3.xpose.msk.msra.mxu0 %vm635_vm5, %v3752_v9  ;;  %6267 = vmatprep.mubr.msk.f32.mxu0 %vm7105_vm2, %v7106_v47 }
0x1872   :  { %6307 = vmatprep.subr.mxu0 %v7106_v47 }
0x1874   :  { %6268 = vmatmul.mubr.msk.f32.vlgmr.msra.gmra.mrb[110].mxu0 %vm635_vm5, %v3734_v60 }
0x1875   :  { %6270 = vmatprep.mubr.msk.f32.mxu0 %vm7105_vm2, %v7106_v47 }
0x1878   :  { %6271 = vmatmul.mubr.msk.f32.gmra.mrb[112].mxu0 %vm635_vm5, %v3736_v42 }
0x1879   :  { %6273 = vmatprep.mubr.msk.f32.mxu0 %vm7105_vm2, %v7106_v47 }
0x187c   :  { %6274 = vmatmul.mubr.msk.f32.gmra.mrb[114].mxu0 %vm635_vm5, %v3738_v61 }
0x187d   :  { %6276 = vmatprep.mubr.msk.f32.mxu0 %vm7105_vm2, %v7106_v47 }
0x1880   :  { %6277 = vmatmul.mubr.msk.f32.gmra.mrb[116].mxu0 %vm635_vm5, %v3740_v3 }
0x1881   :  { %6279 = vmatprep.mubr.msk.f32.mxu0 %vm7105_vm2, %v7106_v47 }
0x1884   :  { %6280 = vmatmul.mubr.msk.f32.gmra.mrb[118].mxu0 %vm635_vm5, %v3742_v52 }
0x1885   :  { %6309 = vmatprep.mubr.msk.f32.mxu0 %vm7105_vm2, %v7106_v47 }
0x18de   :  { %v3709_v5 = vpop.f32.mrb[110].mxu1 }
0x18df   :  { %v6244_v51 = vpop.f32.mrb[111].mxu1 }
0x18e2   :  { %v3714_v26 = vpop.f32.mrb[112].mxu1 }
0x18e3   :  { %v6247_v54 = vpop.f32.mrb[113].mxu1 }
0x18e6   :  { %v3719_v55 = vpop.f32.mrb[114].mxu1 }
0x18e7   :  { %v6250_v8 = vpop.f32.mrb[115].mxu1 }
0x18ea   :  { %v3724_v28 = vpop.f32.mrb[116].mxu1 }
0x18eb   :  { %v6253_v17 = vpop.f32.mrb[117].mxu1 }
0x18ee   :  { %v3729_v18 = vpop.f32.mrb[118].mxu1 }
0x18ef   :  { %v6256_v6 = vpop.f32.mrb[119].mxu1 }
0x1933   :  { %v3604_v10 = vpop.f32.mrb[100].mxu0 }
0x1934   :  { %v8538_v46 = vadd.f32 %v3709_v5, %v3604_v10  ;;  %v6227_v30 = vpop.f32.mrb[101].mxu0 }
0x1937   :  { %v3609_v56 = vpop.f32.mrb[102].mxu0 }
0x1938   :  { %v8540_v29 = vadd.f32 %v3714_v26, %v3609_v56  ;;  %v6230_v7 = vpop.f32.mrb[103].mxu0 }
0x193b   :  { %v3614_v11 = vpop.f32.mrb[104].mxu0 }
0x193c   :  { %v8542_v37 = vadd.f32 %v3719_v55, %v3614_v11  ;;  %v6233_v14 = vpop.f32.mrb[105].mxu0 }
0x193f   :  { %v3619_v4 = vpop.f32.mrb[106].mxu0 }
0x1940   :  { %v8544_v31 = vadd.f32 %v3724_v28, %v3619_v4  ;;  %v6236_v25 = vpop.f32.mrb[107].mxu0 }
0x1943   :  { %v3624_v2 = vpop.f32.mrb[108].mxu0 }
0x1944   :  { %v8546_v0 = vadd.f32 %v3729_v18, %v3624_v2  ;;  %v6239_v12 = vpop.f32.mrb[109].mxu0 }
0x1947   :  { %v3839_v62 = vpop.f32.mrb[110].mxu0 }
0x1948   :  { %v3863_v33 = vmul.f32 0.35355338, %v3839_v62  ;;  %v6269_v48 = vpop.f32.mrb[111].mxu0 }
0x194a   :  { %v3868_v24 = vadd.f32 %v8303_v20, %v3863_v33 }
0x194b   :  { %v3844_v49 = vpop.f32.mrb[112].mxu0 }
0x194c   :  { %v3864_v50 = vmul.f32 0.35355338, %v3844_v49  ;;  %v6272_v36 = vpop.f32.mrb[113].mxu0  ;;  %v3873_v16 = vsel %vm756_vm7, %v3868_v24, -inf }
0x194d   :  { %3874 = vmax.xlane.f32.xlu0 %v3873_v16 }
0x194e   :  { %v3869_v15 = vadd.f32 %v8313_v44, %v3864_v50 }
0x194f   :  { %v3849_v59 = vpop.f32.mrb[114].mxu0 }
0x1950   :  { %v3865_v53 = vmul.f32 0.35355338, %v3849_v59  ;;  %v6275_v22 = vpop.f32.mrb[115].mxu0  ;;  %v3876_v9 = vsel %vm756_vm7, %v3869_v15, -inf }
0x1951   :  { %3877 = vmax.xlane.f32.xlu1 %v3876_v9 }
0x1952   :  { %v3870_v40 = vadd.f32 %v8323_v19, %v3865_v53 }
0x1953   :  { %v3854_v60 = vpop.f32.mrb[116].mxu0 }
0x1954   :  { %v3866_v42 = vmul.f32 0.35355338, %v3854_v60  ;;  %v6278_v61 = vpop.f32.mrb[117].mxu0  ;;  %v3879_v3 = vsel %vm756_vm7, %v3870_v40, -inf }
0x1955   :  { %3880 = vmax.xlane.f32.xlu0 %v3879_v3 }
0x1956   :  { %v3871_v52 = vadd.f32 %v8330_v34, %v3866_v42 }
0x1957   :  { %v3859_v5 = vpop.f32.mrb[118].mxu0 }
0x1958   :  { %v3867_v51 = vmul.f32 0.35355338, %v3859_v5  ;;  %v6281_v26 = vpop.f32.mrb[119].mxu0  ;;  %v3882_v54 = vsel %vm756_vm7, %v3871_v52, -inf }
0x1959   :  { %3883 = vmax.xlane.f32.xlu0 %v3882_v54 }
0x195a   :  { %v3872_v55 = vadd.f32 %v8337_v63, %v3867_v51 }
0x195c   :  { %v3885_v8 = vsel %vm769_vm8, %v3872_v55, -inf }
0x195d   :  { %3886 = vmax.xlane.f32.xlu1 %v3885_v8 }
0x19da   :  { %v3875_v28 = vpop.xlane.xlu0 %3874 }
0x19db   :  { %v3888_v17 = vsub.f32 %v3868_v24, %v3875_v28 }
0x19dd   :  { %v3893_v18 = vmul.f32 1.442695, %v3888_v17 }
0x19de   :  { %v3878_v6 = vpop.xlane.xlu1 %3877 }
0x19df   :  { %7008 = vpow2.f32 %v3893_v18  ;;  %v3889_v10 = vsub.f32 %v3869_v15, %v3878_v6 }
0x19e1   :  { %v3895_v30 = vmul.f32 1.442695, %v3889_v10 }
0x19e2   :  { %v3881_v4 = vpop.xlane.xlu0 %3880 }
0x19e3   :  { %7010 = vpow2.f32 %v3895_v30  ;;  %v3890_v25 = vsub.f32 %v3870_v40, %v3881_v4 }
0x19e5   :  { %v3897_v33 = vmul.f32 1.442695, %v3890_v25 }
0x19e6   :  { %v3884_v2 = vpop.xlane.xlu0 %3883 }
0x19e7   :  { %v3891_v62 = vsub.f32 %v3871_v52, %v3884_v2  ;;  %7012 = vpow2.f32 %v3897_v33 }
0x19e9   :  { %v7009_v56 = vpop.eup %7008  ;;  %v3899_v24 = vmul.f32 1.442695, %v3891_v62 }
0x19ea   :  { %v3903_v7 = vsel %vm756_vm7, %v7009_v56, 0.0  ;;  %v3887_v12 = vpop.xlane.xlu1 %3886 }
0x19eb   :  { %3904 = vadd.xlane.f32.xlu0 %v3903_v7  ;;  %v3892_v48 = vsub.f32 %v3872_v55, %v3887_v12  ;;  %7014 = vpow2.f32 %v3899_v24 }
0x19ed   :  { %v8559_v11 = vpop.eup %7010  ;;  %v3901_v49 = vmul.f32 1.442695, %v3892_v48 }
0x19ee   :  { %v3906_v14 = vsel %vm756_vm7, %v8559_v11, 0.0 }
0x19ef   :  { %3907 = vadd.xlane.f32.xlu1 %v3906_v14  ;;  %7016 = vpow2.f32 %v3901_v49 }
0x19f1   :  { %v7013_v50 = vpop.eup %7012 }
0x19f2   :  { %v3909_v16 = vsel %vm756_vm7, %v7013_v50, 0.0 }
0x19f5   :  { %v8567_v36 = vpop.eup %7014 }
0x19f6   :  { %v3912_v59 = vsel %vm756_vm7, %v8567_v36, 0.0 }
0x19f9   :  { %v8570_v15 = vpop.eup %7016 }
0x19fa   :  { %v3915_v53 = vsel %vm769_vm8, %v8570_v15, 0.0 }
0x1a00   :  { %6799 = vrot.lane.b32.xlu1 %v8215_v45, %s8982_s9 }
0x1a01   :  { %6804 = vrot.lane.b32.xlu0 %v8227_v27, %s8982_s9 }
0x1a20   :  { %3910 = vadd.xlane.f32.xlu0 %v3909_v16 }
0x1a24   :  { %3913 = vadd.xlane.f32.xlu0 %v3912_v59  ;;  %3916 = vadd.xlane.f32.xlu1 %v3915_v53 }
0x1a35   :  { %4165 = vrot.lane.b32.xlu1 %v8223_v23, %s8983_s6 }
0x1a3a   :  { %3936 = vrot.lane.b32.xlu0 %v8231_v41, %s8982_s9 }
0x1a3e   :  { %6809 = vrot.lane.b32.xlu0 %v8215_v45, %s8984_s1 }
0x1a42   :  { %6814 = vrot.lane.b32.xlu0 %v8227_v27, %s8984_s1 }
0x1a46   :  { %4177 = vrot.lane.b32.xlu0 %v8231_v41, %s8984_s1 }
0x1a4a   :  { %4159 = vrot.lane.b32.xlu0 %v8209_v13, %s8983_s6 }
0x1a4e   :  { %4161 = vrot.lane.b32.xlu0 %v8211_v57, %s8983_s6 }
0x1a52   :  { %4163 = vrot.lane.b32.xlu0 %v8219_v1, %s8983_s6 }
0x1a56   :  { %4167 = vrot.lane.b32.xlu0 %v8231_v41, %s8983_s6 }
0x1a78   :  { %v3905_v23 = vpop.xlane.xlu0 %3904 }
0x1a79   :  { %7018 = vrcp.f32 %v3905_v23 }
0x1a7c   :  { %v3908_v22 = vpop.xlane.xlu1 %3907  ;;  %v6805_v9 = vpop.permute.xlu0 %6804 }
0x1a7d   :  { %v6807_v61 = vunpack.i.h.bf16 %v6805_v9  ;;  %v6806_v3 = vunpack.i.l.bf16 %v6805_v9  ;;  %7020 = vrcp.f32 %v3908_v22 }
0x1a7f   :  { %v6607_v13 = vpack.c.bf16 %v6807_v61, %v6806_v3 }
0x1a80   :  { %v6800_v40 = vpop.permute.xlu1 %6799 }
0x1a81   :  { %v6802_v60 = vunpack.i.h.bf16 %v6800_v40  ;;  %v6801_v42 = vunpack.i.l.bf16 %v6800_v40 }
0x1a83   :  { %v6604_v52 = vpack.c.bf16 %v6802_v60, %v6801_v42  ;;  %v7019_v5 = vpop.eup %7018 }
0x1a84   :  { %v3923_v51 = vmul.f32 %v7019_v5, %v7009_v56 }
0x1a85   :  { %6605 = vmatpush3.bf16.msra.mxu1 %v6604_v52 }
0x1a86   :  { %6606 = vmatprep.subr.bf16.mxu1 %v7104_v38 }
0x1a87   :  { %v7021_v55 = vpop.eup %7020 }
0x1a88   :  { %v3924_v28 = vmul.f32 %v7021_v55, %v8559_v11 }
0x1a89   :  { %6608 = vmatpush3.bf16.msra.mxu1 %v6607_v13 }
0x1a8a   :  { %6290 = vmatprep.subr.mxu1 %v7106_v47 }
0x1aad   :  { %v3911_v57 = vpop.xlane.xlu0 %3910 }
0x1aae   :  { %7022 = vrcp.f32 %v3911_v57 }
0x1ab1   :  { %v3914_v1 = vpop.xlane.xlu0 %3913  ;;  %v3917_v26 = vpop.xlane.xlu1 %3916 }
0x1ab2   :  { %7024 = vrcp.f32 %v3914_v1 }
0x1ab3   :  { %7026 = vrcp.f32 %v3917_v26 }
0x1ab5   :  { %v3937_v54 = vpop.permute.xlu0 %3936  ;;  %v4166_v24 = vpop.permute.xlu1 %4165 }
0x1ab6   :  { %6291 = vmatpush3.msk.msra.mxu1 %vm842_vm9, %v3937_v54 }
0x1ab7   :  { %6293 = vmatmul.mubr.msk.f32.vlgmr.msra.gmra.mrb[120].mxu1 %vm756_vm7, %v3923_v51  ;;  %6609 = vmatprep.subr.bf16.mxu1 %v7104_v38 }
0x1ab8   :  { %6295 = vmatprep.mubr.msk.f32.mxu1 %vm7105_vm2, %v7106_v47  ;;  %v7023_v17 = vpop.eup %7022 }
0x1ab9   :  { %v6810_v8 = vpop.permute.xlu0 %6809  ;;  %v3925_v56 = vmul.f32 %v7023_v17, %v7013_v50  ;;  %v5306_v50 = vld [vmem:[%s8930_s14 + $0x30] sm:$0xff] }
0x1aba   :  { %v6812_v18 = vunpack.i.h.bf16 %v6810_v8  ;;  %v6811_v6 = vunpack.i.l.bf16 %v6810_v8  ;;  %6308 = vmatpush3.msra.mxu0 %v5306_v50 }
0x1abb   :  { %6296 = vmatmul.mubr.msk.f32.gmra.mrb[122].mxu1 %vm756_vm7, %v3924_v28  ;;  %6617 = vmatprep.subr.bf16.mxu0 %v7104_v38 }
0x1abc   :  { %v6610_v10 = vpack.c.bf16 %v6812_v18, %v6811_v6  ;;  %6298 = vmatprep.mubr.msk.f32.mxu1 %vm7105_vm2, %v7106_v47  ;;  %v7025_v7 = vpop.eup %7024 }
0x1abd   :  { %v6815_v30 = vpop.permute.xlu0 %6814  ;;  %v3926_v4 = vmul.f32 %v7025_v7, %v8567_v36  ;;  %v7027_v25 = vpop.eup %7026 }
0x1abe   :  { %6612 = vmatpush3.bf16.xpose.msk.msra.mxu1 %vm7515_vm6, %v6610_v10  ;;  %v6817_v11 = vunpack.i.h.bf16 %v6815_v30  ;;  %v6816_v14 = vunpack.i.l.bf16 %v6815_v30  ;;  %v3927_v12 = vmul.f32 %v7027_v25, %v8570_v15 }
0x1abf   :  { %6299 = vmatmul.mubr.msk.f32.gmra.mrb[124].mxu1 %vm756_vm7, %v3925_v56  ;;  %6613 = vmatprep.subr.bf16.mxu1 %v7104_v38 }
0x1ac0   :  { %6301 = vmatprep.mubr.msk.f32.mxu1 %vm7105_vm2, %v7106_v47  ;;  %v6614_v2 = vpack.c.bf16 %v6817_v11, %v6816_v14 }
0x1ac1   :  { %v4178_v62 = vpop.permute.xlu0 %4177 }
0x1ac3   :  { %6302 = vmatmul.mubr.msk.f32.gmra.mrb[126].mxu1 %vm756_vm7, %v3926_v4 }
0x1ac4   :  { %6304 = vmatprep.mubr.msk.f32.mxu1 %vm7105_vm2, %v7106_v47 }
0x1ac5   :  { %v4160_v33 = vpop.permute.xlu0 %4159 }
0x1ac6   :  { %6616 = vmatpush3.bf16.xpose.msk.msra.mxu1 %vm7515_vm6, %v6614_v2 }
0x1ac7   :  { %6305 = vmatmul.mubr.msk.f32.gmra.mrb[128].mxu1 %vm756_vm7, %v3927_v12  ;;  %6332 = vmatprep.subr.mxu1 %v7106_v47 }
0x1ac8   :  { %6334 = vmatprep.mubr.msk.f32.mxu1 %vm7105_vm2, %v7106_v47 }
0x1ac9   :  { %v4162_v48 = vpop.permute.xlu0 %4161 }
0x1acd   :  { %v4164_v32 = vpop.permute.xlu0 %4163 }
0x1ace   :  { %6333 = vmatpush3.xpose.msk.msra.mxu1 %vm635_vm5, %v4178_v62 }
0x1acf   :  { %6374 = vmatprep.subr.mxu1 %v7106_v47 }
0x1ad1   :  { %6335 = vmatmul.mubr.msk.f32.vlgmr.msra.gmra.mrb[130].mxu1 %vm635_vm5, %v4160_v33  ;;  %v4168_v49 = vpop.permute.xlu0 %4167 }
0x1ad2   :  { %6337 = vmatprep.mubr.msk.f32.mxu1 %vm7105_vm2, %v7106_v47 }
0x1ad5   :  { %6338 = vmatmul.mubr.msk.f32.gmra.mrb[132].mxu1 %vm635_vm5, %v4162_v48 }
0x1ad6   :  { %6340 = vmatprep.mubr.msk.f32.mxu1 %vm7105_vm2, %v7106_v47 }
0x1ad9   :  { %6341 = vmatmul.mubr.msk.f32.gmra.mrb[134].mxu1 %vm635_vm5, %v4164_v32 }
0x1ada   :  { %6343 = vmatprep.mubr.msk.f32.mxu1 %vm7105_vm2, %v7106_v47 }
0x1add   :  { %6344 = vmatmul.mubr.msk.f32.gmra.mrb[136].mxu1 %vm635_vm5, %v4166_v24 }
0x1ade   :  { %6346 = vmatprep.mubr.msk.f32.mxu1 %vm7105_vm2, %v7106_v47 }
0x1ae1   :  { %6347 = vmatmul.mubr.msk.f32.gmra.mrb[138].mxu1 %vm635_vm5, %v4168_v49 }
0x1ae2   :  { %6376 = vmatprep.mubr.msk.f32.mxu1 %vm7105_vm2, %v7106_v47 }
0x1b8a   :  { %v4025_v36 = vpop.f32.mrb[120].mxu1 }
0x1b8b   :  { %v6294_v16 = vpop.f32.mrb[121].mxu1  ;;  %6310 = vmatmul.mubr.msk.f32.vlgmr.msra.gmra.mrb[120].mxu0 %vm635_vm5, %v4025_v36 }
0x1b8c   :  { %6312 = vmatprep.mubr.msk.f32.mxu0 %vm7105_vm2, %v7106_v47 }
0x1b8e   :  { %v4030_v15 = vpop.f32.mrb[122].mxu1 }
0x1b8f   :  { %v6297_v59 = vpop.f32.mrb[123].mxu1  ;;  %6313 = vmatmul.mubr.msk.f32.gmra.mrb[122].mxu0 %vm635_vm5, %v4030_v15 }
0x1b90   :  { %6315 = vmatprep.mubr.msk.f32.mxu0 %vm7105_vm2, %v7106_v47 }
0x1b92   :  { %v4035_v53 = vpop.f32.mrb[124].mxu1 }
0x1b93   :  { %v6300_v23 = vpop.f32.mrb[125].mxu1  ;;  %6316 = vmatmul.mubr.msk.f32.gmra.mrb[124].mxu0 %vm635_vm5, %v4035_v53 }
0x1b94   :  { %6318 = vmatprep.mubr.msk.f32.mxu0 %vm7105_vm2, %v7106_v47 }
0x1b96   :  { %v4040_v22 = vpop.f32.mrb[126].mxu1 }
0x1b97   :  { %v6303_v9 = vpop.f32.mrb[127].mxu1  ;;  %6319 = vmatmul.mubr.msk.f32.gmra.mrb[126].mxu0 %vm635_vm5, %v4040_v22 }
0x1b98   :  { %6321 = vmatprep.mubr.msk.f32.mxu0 %vm7105_vm2, %v7106_v47 }
0x1b9a   :  { %v4045_v40 = vpop.f32.mrb[128].mxu1 }
0x1b9b   :  { %v6306_v60 = vpop.f32.mrb[129].mxu1  ;;  %6322 = vmatmul.mubr.msk.f32.gmra.mrb[128].mxu0 %vm635_vm5, %v4045_v40 }
0x1b9c   :  { %6359 = vmatprep.mubr.msk.f32.mxu0 %vm7105_vm2, %v7106_v47 }
0x1ba4   :  { %v4265_v42 = vpop.f32.mrb[130].mxu1 }
0x1ba5   :  { %v4289_v61 = vmul.f32 0.35355338, %v4265_v42  ;;  %v6336_v3 = vpop.f32.mrb[131].mxu1 }
0x1ba7   :  { %v4294_v52 = vadd.f32 %v8303_v20, %v4289_v61 }
0x1ba8   :  { %v4270_v13 = vpop.f32.mrb[132].mxu1 }
0x1ba9   :  { %v4290_v57 = vmul.f32 0.35355338, %v4270_v13  ;;  %v6339_v1 = vpop.f32.mrb[133].mxu1  ;;  %v4299_v5 = vsel %vm756_vm7, %v4294_v52, -inf }
0x1baa   :  { %4300 = vmax.xlane.f32.xlu0 %v4299_v5 }
0x1bab   :  { %v4295_v51 = vadd.f32 %v8313_v44, %v4290_v57 }
0x1bac   :  { %v4275_v26 = vpop.f32.mrb[134].mxu1 }
0x1bad   :  { %v4291_v54 = vmul.f32 0.35355338, %v4275_v26  ;;  %v6342_v55 = vpop.f32.mrb[135].mxu1  ;;  %v4302_v8 = vsel %vm756_vm7, %v4295_v51, -inf }
0x1bae   :  { %4303 = vmax.xlane.f32.xlu1 %v4302_v8 }
0x1baf   :  { %v4296_v28 = vadd.f32 %v8323_v19, %v4291_v54 }
0x1bb0   :  { %v4280_v17 = vpop.f32.mrb[136].mxu1 }
0x1bb1   :  { %v4292_v18 = vmul.f32 0.35355338, %v4280_v17  ;;  %v6345_v6 = vpop.f32.mrb[137].mxu1  ;;  %v4305_v20 = vsel %vm756_vm7, %v4296_v28, -inf }
0x1bb2   :  { %4306 = vmax.xlane.f32.xlu0 %v4305_v20 }
0x1bb3   :  { %v4297_v10 = vadd.f32 %v8330_v34, %v4292_v18 }
0x1bb4   :  { %v4285_v30 = vpop.f32.mrb[138].mxu1 }
0x1bb5   :  { %v4293_v56 = vmul.f32 0.35355338, %v4285_v30  ;;  %v6348_v7 = vpop.f32.mrb[139].mxu1  ;;  %v4308_v44 = vsel %vm756_vm7, %v4297_v10, -inf }
0x1bb6   :  { %4309 = vmax.xlane.f32.xlu0 %v4308_v44 }
0x1bb7   :  { %v4298_v11 = vadd.f32 %v8337_v63, %v4293_v56 }
0x1bb9   :  { %v4311_v14 = vsel %vm769_vm8, %v4298_v11, -inf }
0x1bba   :  { %4312 = vmax.xlane.f32.xlu0 %v4311_v14 }
0x1bd0   :  { %6819 = vrot.lane.b32.xlu0 %v8215_v45, %s8985_s8 }
0x1c37   :  { %v4301_v19 = vpop.xlane.xlu0 %4300 }
0x1c38   :  { %v4314_v4 = vsub.f32 %v4294_v52, %v4301_v19 }
0x1c3a   :  { %v4319_v25 = vmul.f32 1.442695, %v4314_v4 }
0x1c3b   :  { %v4304_v2 = vpop.xlane.xlu1 %4303 }
0x1c3c   :  { %7028 = vpow2.f32 %v4319_v25  ;;  %v4315_v34 = vsub.f32 %v4295_v51, %v4304_v2 }
0x1c3e   :  { %v4321_v12 = vmul.f32 1.442695, %v4315_v34 }
0x1c3f   :  { %v4307_v62 = vpop.xlane.xlu0 %4306 }
0x1c40   :  { %7030 = vpow2.f32 %v4321_v12  ;;  %v4316_v33 = vsub.f32 %v4296_v28, %v4307_v62 }
0x1c42   :  { %v4323_v48 = vmul.f32 1.442695, %v4316_v33 }
0x1c43   :  { %v4310_v32 = vpop.xlane.xlu0 %4309 }
0x1c44   :  { %7032 = vpow2.f32 %v4323_v48  ;;  %v4317_v63 = vsub.f32 %v4297_v10, %v4310_v32 }
0x1c46   :  { %v8670_v24 = vpop.eup %7028  ;;  %v4325_v49 = vmul.f32 1.442695, %v4317_v63 }
0x1c47   :  { %v4313_v50 = vpop.xlane.xlu0 %4312  ;;  %v4329_v45 = vsel %vm756_vm7, %v8670_v24, 0.0 }
0x1c48   :  { %7034 = vpow2.f32 %v4325_v49  ;;  %v4318_v36 = vsub.f32 %v4298_v11, %v4313_v50  ;;  %4330 = vadd.xlane.f32.xlu0 %v4329_v45 }
0x1c4a   :  { %v8674_v16 = vpop.eup %7030  ;;  %v4327_v15 = vmul.f32 1.442695, %v4318_v36 }
0x1c4b   :  { %v6820_v59 = vpop.permute.xlu0 %6819  ;;  %v4332_v53 = vsel %vm756_vm7, %v8674_v16, 0.0 }
0x1c4c   :  { %7036 = vpow2.f32 %v4327_v15  ;;  %v6822_v23 = vunpack.i.h.bf16 %v6820_v59  ;;  %v6821_v22 = vunpack.i.l.bf16 %v6820_v59  ;;  %4333 = vadd.xlane.f32.xlu1 %v4332_v53 }
0x1c4e   :  { %v7033_v9 = vpop.eup %7032  ;;  %v6618_v40 = vpack.c.bf16 %v6822_v23, %v6821_v22  ;;  %v5393_v22 = vld [vmem:[%s8931_s15 + $0x1] ss:$0 sm:$0xff]  ;;  %s5167_s15 = sshll.u32 %s7118_s3, 4  ;;  %s5168_s15 = int_to_ptr.vmem [resolvable:$true] %s5167_s15 }
0x1c4f   :  { %v4335_v60 = vsel %vm756_vm7, %v7033_v9, 0.0  ;;  %p7085_p1 = scmp.lt.s32.totalorder %s5168_s15, %s5168_s15 }
0x1c50   :  { %4336 = vadd.xlane.f32.xlu0 %v4335_v60  ;;  %6619 = vmatpush3.bf16.msra.mxu0 %v6618_v40 }
0x1c51   :  { %6620 = vmatprep.subr.bf16.mxu0 %v7104_v38 }
0x1c52   :  { %v7035_v42 = vpop.eup %7034 }
0x1c53   :  { %v4338_v61 = vsel %vm756_vm7, %v7035_v42, 0.0 }
0x1c54   :  { %4339 = vadd.xlane.f32.xlu1 %v4338_v61 }
0x1c56   :  { %v7037_v3 = vpop.eup %7036 }
0x1c57   :  { %v4341_v52 = vsel %vm769_vm8, %v7037_v3, 0.0 }
0x1c58   :  { %4342 = vadd.xlane.f32.xlu1 %v4341_v52 }
0x1c5e   :  { %v4130_v13 = vpop.f32.mrb[120].mxu0 }
0x1c5f   :  { %v8683_v57 = vadd.f32 %v4130_v13, %v8538_v46  ;;  %v6311_v1 = vpop.f32.mrb[121].mxu0 }
0x1c62   :  { %v4135_v5 = vpop.f32.mrb[122].mxu0 }
0x1c63   :  { %v8686_v51 = vadd.f32 %v4135_v5, %v8540_v29  ;;  %v6314_v26 = vpop.f32.mrb[123].mxu0 }
0x1c66   :  { %v4140_v54 = vpop.f32.mrb[124].mxu0  ;;  %4362 = vrot.lane.b32.xlu0 %v8231_v41, %s8985_s8  ;;  %v5307_v41 = vld [vmem:[%s8930_s14 + $0x38] sm:$0xff] }
0x1c67   :  { %v8691_v55 = vadd.f32 %v4140_v54, %v8542_v37  ;;  %v6317_v8 = vpop.f32.mrb[125].mxu0  ;;  %6375 = vmatpush3.msra.mxu1 %v5307_v41 }
0x1c68   :  { %6629 = vmatprep.subr.bf16.mxu1 %v7104_v38 }
0x1c69   :  { %6824 = vrot.lane.b32.xlu1 %v8227_v27, %s8985_s8 }
0x1c6a   :  { %v4145_v28 = vpop.f32.mrb[126].mxu0 }
0x1c6b   :  { %v8696_v46 = vadd.f32 %v4145_v28, %v8544_v31  ;;  %v6320_v17 = vpop.f32.mrb[127].mxu0 }
0x1c6e   :  { %v4150_v18 = vpop.f32.mrb[128].mxu0 }
0x1c6f   :  { %v8699_v29 = vadd.f32 %v4150_v18, %v8546_v0  ;;  %v6323_v6 = vpop.f32.mrb[129].mxu0 }
0x1cd5   :  { %v4331_v20 = vpop.xlane.xlu0 %4330 }
0x1cd6   :  { %7038 = vrcp.f32 %v4331_v20 }
0x1cd9   :  { %v4334_v37 = vpop.xlane.xlu1 %4333 }
0x1cda   :  { %7040 = vrcp.f32 %v4334_v37 }
0x1cdd   :  { %v4337_v31 = vpop.xlane.xlu0 %4336 }
0x1cde   :  { %7042 = vrcp.f32 %v4337_v31 }
0x1ce0   :  { %v7039_v44 = vpop.eup %7038 }
0x1ce1   :  { %v4340_v27 = vpop.xlane.xlu1 %4339  ;;  %v4349_v11 = vmul.f32 %v7039_v44, %v8670_v24  ;;  %v4363_v14 = vpop.permute.xlu0 %4362 }
0x1ce2   :  { %7044 = vrcp.f32 %v4340_v27 }
0x1ce4   :  { %v7041_v19 = vpop.eup %7040 }
0x1ce5   :  { %v4343_v10 = vpop.xlane.xlu1 %4342  ;;  %v4350_v4 = vmul.f32 %v7041_v19, %v8674_v16 }
0x1ce6   :  { %7046 = vrcp.f32 %v4343_v10 }
0x1ce8   :  { %v7043_v25 = vpop.eup %7042 }
0x1ce9   :  { %v6825_v30 = vpop.permute.xlu1 %6824  ;;  %v4351_v2 = vmul.f32 %v7043_v25, %v7033_v9 }
0x1cea   :  { %v6827_v56 = vunpack.i.h.bf16 %v6825_v30  ;;  %v6826_v7 = vunpack.i.l.bf16 %v6825_v30 }
0x1cec   :  { %v6621_v0 = vpack.c.bf16 %v6827_v56, %v6826_v7  ;;  %v7045_v34 = vpop.eup %7044 }
0x1ced   :  { %v4352_v12 = vmul.f32 %v7045_v34, %v7035_v42 }
0x1cee   :  { %6622 = vmatpush3.bf16.msra.mxu0 %v6621_v0 }
0x1cef   :  { %6357 = vmatprep.subr.mxu0 %v7106_v47 }
0x1cf0   :  { %v7047_v62 = vpop.eup %7046 }
0x1cf1   :  { %v4353_v33 = vmul.f32 %v7047_v62, %v7037_v3 }
0x1cf2   :  { %6358 = vmatpush3.msk.msra.mxu0 %vm842_vm9, %v4363_v14 }
0x1cf3   :  { %6360 = vmatmul.mubr.msk.f32.vlgmr.msra.gmra.mrb[130].mxu0 %vm756_vm7, %v4349_v11  ;;  %6623 = vmatprep.subr.bf16.mxu0 %v7104_v38 }
0x1cf4   :  { %6362 = vmatprep.mubr.msk.f32.mxu0 %vm7105_vm2, %v7106_v47 }
0x1cf7   :  { %6363 = vmatmul.mubr.msk.f32.gmra.mrb[132].mxu0 %vm756_vm7, %v4350_v4 }
0x1cf8   :  { %6365 = vmatprep.mubr.msk.f32.mxu0 %vm7105_vm2, %v7106_v47 }
0x1cfb   :  { %6366 = vmatmul.mubr.msk.f32.gmra.mrb[134].mxu0 %vm756_vm7, %v4351_v2 }
0x1cfc   :  { %6368 = vmatprep.mubr.msk.f32.mxu0 %vm7105_vm2, %v7106_v47 }
0x1cff   :  { %6369 = vmatmul.mubr.msk.f32.gmra.mrb[136].mxu0 %vm756_vm7, %v4352_v12 }
0x1d00   :  { %6371 = vmatprep.mubr.msk.f32.mxu0 %vm7105_vm2, %v7106_v47 }
0x1d03   :  { %6372 = vmatmul.mubr.msk.f32.gmra.mrb[138].mxu0 %vm756_vm7, %v4353_v33 }
0x1d04   :  { %6399 = vmatprep.mubr.msk.f32.mxu0 %vm7105_vm2, %v7106_v47 }
0x1dc6   :  { %v4451_v48 = vpop.f32.mrb[130].mxu0 }
0x1dc7   :  { %v6361_v32 = vpop.f32.mrb[131].mxu0  ;;  %6377 = vmatmul.mubr.msk.f32.vlgmr.msra.gmra.mrb[140].mxu1 %vm635_vm5, %v4451_v48 }
0x1dc8   :  { %6379 = vmatprep.mubr.msk.f32.mxu1 %vm7105_vm2, %v7106_v47 }
0x1dca   :  { %v4456_v63 = vpop.f32.mrb[132].mxu0 }
0x1dcb   :  { %v6364_v24 = vpop.f32.mrb[133].mxu0  ;;  %6380 = vmatmul.mubr.msk.f32.gmra.mrb[142].mxu1 %vm635_vm5, %v4456_v63 }
0x1dcc   :  { %6382 = vmatprep.mubr.msk.f32.mxu1 %vm7105_vm2, %v7106_v47 }
0x1dce   :  { %v4461_v49 = vpop.f32.mrb[134].mxu0 }
0x1dcf   :  { %v6367_v50 = vpop.f32.mrb[135].mxu0  ;;  %6383 = vmatmul.mubr.msk.f32.gmra.mrb[144].mxu1 %vm635_vm5, %v4461_v49  ;;  %v5398_v49 = vld [vmem:[%s8934_s18 + $0x20] sm:$0xff] }
0x1dd0   :  { %6385 = vmatprep.mubr.msk.f32.mxu1 %vm7105_vm2, %v7106_v47  ;;  %v5399_v50 = vld [vmem:[%s8934_s18 + $0x28] sm:$0xff] }
0x1dd2   :  { %v4466_v45 = vpop.f32.mrb[136].mxu0 }
0x1dd3   :  { %v6370_v36 = vpop.f32.mrb[137].mxu0  ;;  %6386 = vmatmul.mubr.msk.f32.gmra.mrb[146].mxu1 %vm635_vm5, %v4466_v45  ;;  %v6624_v45 = vpack.c.bf16 %v5399_v50, %v5398_v49 }
0x1dd4   :  { %6388 = vmatprep.mubr.msk.f32.mxu1 %vm7105_vm2, %v7106_v47  ;;  %v5400_v36 = vld [vmem:[%s8934_s18 + $0x30] sm:$0xff] }
0x1dd5   :  { %6625 = vmatpush3.bf16.msra.mxu0 %v6624_v45 }
0x1dd6   :  { %v4471_v16 = vpop.f32.mrb[138].mxu0  ;;  %6626 = vmatprep.subr.bf16.mxu0 %v7104_v38 }
0x1dd7   :  { %v6373_v15 = vpop.f32.mrb[139].mxu0  ;;  %6389 = vmatmul.mubr.msk.f32.gmra.mrb[148].mxu1 %vm635_vm5, %v4471_v16  ;;  %v5401_v16 = vld [vmem:[%s8934_s18 + $0x38] sm:$0xff]  ;;  %s8986_s18 = sld [smem:[#allocation9_spill]] }
0x1dd8   :  { %6430 = vmatprep.mubr.msk.f32.mxu1 %vm7105_vm2, %v7106_v47  ;;  %v6627_v15 = vpack.c.bf16 %v5401_v16, %v5400_v36 }
0x1dda   :  { %6628 = vmatpush3.bf16.msra.mxu0 %v6627_v15 }
0x1ddb   :  { %6641 = vmatprep.subr.bf16.mxu0 %v7104_v38 }
0x1e9a   :  { %v4556_v59 = vpop.f32.mrb[140].mxu1 }
0x1e9b   :  { %v4580_v53 = vadd.f32 %v4556_v59, %v8683_v57  ;;  %v6378_v23 = vpop.f32.mrb[141].mxu1 }
0x1e9d   :  { %v4585_v9 = vadd.f32 %v4580_v53, %v8140_v35 }
0x1e9e   :  { %v4561_v40 = vpop.f32.mrb[142].mxu1 }
0x1e9f   :  { %v8745_v60 = vadd.f32 %v5393_v22, %v4585_v9  ;;  %v4581_v42 = vadd.f32 %v4561_v40, %v8686_v51  ;;  %v6381_v61 = vpop.f32.mrb[143].mxu1 }
0x1ea1   :  { %v4586_v3 = vadd.f32 %v4581_v42, %v8145_v43  ;;  %v4607_v52 = vsel %vm303_vm3, %v8745_v60, 0.0 }
0x1ea2   :  { %4608 = vadd.xlane.f32.xlu1 %v4607_v52  ;;  %v4566_v13 = vpop.f32.mrb[144].mxu1 }
0x1ea3   :  { %v8751_v57 = vadd.f32 %v5393_v22, %v4586_v3  ;;  %v4582_v1 = vadd.f32 %v4566_v13, %v8691_v55  ;;  %v6384_v5 = vpop.f32.mrb[145].mxu1 }
0x1ea4   :  { %v5396_v5 = vld [vmem:[%s8932_s16 + $0x1] ss:$0 sm:$0xff] }
0x1ea5   :  { %v4587_v35 = vadd.f32 %v4582_v1, %v8150_v39  ;;  %v4610_v26 = vsel %vm303_vm3, %v8751_v57, 0.0 }
0x1ea6   :  { %4611 = vadd.xlane.f32.xlu0 %v4610_v26  ;;  %v4571_v51 = vpop.f32.mrb[146].mxu1 }
0x1ea7   :  { %v8757_v54 = vadd.f32 %v5393_v22, %v4587_v35  ;;  %v4583_v43 = vadd.f32 %v4571_v51, %v8696_v46  ;;  %v6387_v8 = vpop.f32.mrb[147].mxu1 }
0x1ea9   :  { %v4588_v28 = vadd.f32 %v4583_v43, %v8155_v21  ;;  %v4613_v17 = vsel %vm303_vm3, %v8757_v54, 0.0  ;;  %v5397_v43 = vld [vmem:[%s8933_s17 + $0x1] ss:$0 sm:$0xff] }
0x1eaa   :  { %4614 = vadd.xlane.f32.xlu0 %v4613_v17  ;;  %v4576_v55 = vpop.f32.mrb[148].mxu1 }
0x1eab   :  { %v8763_v18 = vadd.f32 %v5393_v22, %v4588_v28  ;;  %v4584_v39 = vadd.f32 %v4576_v55, %v8699_v29  ;;  %v6390_v6 = vpop.f32.mrb[149].mxu1 }
0x1ead   :  { %v4589_v41 = vadd.f32 %v4584_v39, %v8160_v58  ;;  %v4616_v37 = vsel %vm303_vm3, %v8763_v18, 0.0 }
0x1eae   :  { %4617 = vadd.xlane.f32.xlu1 %v4616_v37 }
0x1eaf   :  { %v8769_v46 = vadd.f32 %v5393_v22, %v4589_v41 }
0x1eb1   :  { %v4619_v21 = vsel %vm316_vm4, %v8769_v46, 0.0 }
0x1eb2   :  { %4620 = vadd.xlane.f32.xlu0 %v4619_v21 }
0x1f2f   :  { %v4609_v20 = vpop.xlane.xlu1 %4608 }
0x1f30   :  { %v4622_v27 = vmul.f32 0.03125, %v4609_v20 }
0x1f32   :  { %v4627_v10 = vsub.f32 %v8745_v60, %v4622_v27 }
0x1f33   :  { %v4612_v31 = vpop.xlane.xlu0 %4611 }
0x1f34   :  { %v4623_v30 = vmul.f32 0.03125, %v4612_v31  ;;  %v4632_v29 = vmul.f32 %v4627_v10, %v4627_v10 }
0x1f36   :  { %v4628_v56 = vsub.f32 %v8751_v57, %v4623_v30  ;;  %v4637_v58 = vsel %vm303_vm3, %v4632_v29, 0.0 }
0x1f37   :  { %v4615_v7 = vpop.xlane.xlu0 %4614  ;;  %4638 = vadd.xlane.f32.xlu1 %v4637_v58 }
0x1f38   :  { %v4624_v0 = vmul.f32 0.03125, %v4615_v7  ;;  %v4633_v44 = vmul.f32 %v4628_v56, %v4628_v56 }
0x1f3a   :  { %v4629_v11 = vsub.f32 %v8757_v54, %v4624_v0  ;;  %v4640_v14 = vsel %vm303_vm3, %v4633_v44, 0.0 }
0x1f3b   :  { %v4618_v19 = vpop.xlane.xlu1 %4617  ;;  %4641 = vadd.xlane.f32.xlu0 %v4640_v14  ;;  %v5410_v14 = vld [vmem:[%s8936_s20 + $0x48] sm:$0xff] }
0x1f3c   :  { %v4625_v4 = vmul.f32 0.03125, %v4618_v19  ;;  %v4634_v25 = vmul.f32 %v4629_v11, %v4629_v11 }
0x1f3e   :  { %v4630_v2 = vsub.f32 %v8763_v18, %v4625_v4  ;;  %v4643_v34 = vsel %vm303_vm3, %v4634_v25, 0.0  ;;  %v5411_v4 = vld [vmem:[%s8936_s20 + $0x50] sm:$0xff]  ;;  %v5412_v25 = vld [vmem:[%s8936_s20 + $0x58] sm:$0xff] }
0x1f3f   :  { %4644 = vadd.xlane.f32.xlu1 %v4643_v34  ;;  %v4621_v12 = vpop.xlane.xlu0 %4620  ;;  %v5413_v34 = vld [vmem:[%s8936_s20 + $0x60] sm:$0xff] }
0x1f40   :  { %v4626_v62 = vmul.f32 0.03125, %v4621_v12  ;;  %v4635_v33 = vmul.f32 %v4630_v2, %v4630_v2  ;;  %v5414_v12 = vld [vmem:[%s8936_s20 + $0x68] sm:$0xff] }
0x1f42   :  { %v4631_v48 = vsub.f32 %v8769_v46, %v4626_v62  ;;  %v4646_v32 = vsel %vm303_vm3, %v4635_v33, 0.0  ;;  %v6636_v62 = vpack.c.bf16 %v5414_v12, %v5413_v34  ;;  %v5415_v33 = vld [vmem:[%s8936_s20 + $0x70] sm:$0xff] }
0x1f43   :  { %4647 = vadd.xlane.f32.xlu0 %v4646_v32 }
0x1f44   :  { %v4636_v63 = vmul.f32 %v4631_v48, %v4631_v48 }
0x1f46   :  { %v4649_v24 = vsel %vm316_vm4, %v4636_v63, 0.0  ;;  %v5403_v63 = vld [vmem:[%s8935_s19 + $0x1] ss:$0 sm:$0xff] }
0x1f47   :  { %4650 = vadd.xlane.f32.xlu1 %v4649_v24 }
0x1fc4   :  { %v4639_v59 = vpop.xlane.xlu1 %4638 }
0x1fc5   :  { %v4652_v53 = vmul.f32 0.03125, %v4639_v59 }
0x1fc7   :  { %v4657_v23 = vadd.f32 1e-05, %v4652_v53 }
0x1fc8   :  { %v4642_v22 = vpop.xlane.xlu0 %4641 }
0x1fc9   :  { %7048 = vrsqrt.f32 %v4657_v23  ;;  %v4653_v9 = vmul.f32 0.03125, %v4642_v22 }
0x1fcb   :  { %v4658_v40 = vadd.f32 1e-05, %v4653_v9 }
0x1fcc   :  { %v4645_v42 = vpop.xlane.xlu1 %4644 }
0x1fcd   :  { %7050 = vrsqrt.f32 %v4658_v40  ;;  %v4654_v61 = vmul.f32 0.03125, %v4645_v42 }
0x1fcf   :  { %v4659_v3 = vadd.f32 1e-05, %v4654_v61 }
0x1fd0   :  { %v4648_v52 = vpop.xlane.xlu0 %4647 }
0x1fd1   :  { %7052 = vrsqrt.f32 %v4659_v3  ;;  %v4655_v13 = vmul.f32 0.03125, %v4648_v52 }
0x1fd3   :  { %v7049_v1 = vpop.eup %7048  ;;  %v4660_v35 = vadd.f32 1e-05, %v4655_v13 }
0x1fd4   :  { %v4667_v26 = vmul.f32 %v7049_v1, %v4627_v10  ;;  %v4651_v51 = vpop.xlane.xlu1 %4650 }
0x1fd5   :  { %7054 = vrsqrt.f32 %v4660_v35  ;;  %v4656_v8 = vmul.f32 0.03125, %v4651_v51 }
0x1fd6   :  { %v4678_v28 = vmul.f32 %v5396_v5, %v4667_v26 }
0x1fd7   :  { %v7051_v17 = vpop.eup %7050  ;;  %v4661_v55 = vadd.f32 1e-05, %v4656_v8 }
0x1fd8   :  { %v4689_v39 = vadd.f32 %v5397_v43, %v4678_v28  ;;  %v4668_v6 = vmul.f32 %v7051_v17, %v4628_v56 }
0x1fd9   :  { %7056 = vrsqrt.f32 %v4661_v55 }
0x1fda   :  { %6400 = vmatmul.mubr.msk.f32.vlgmr.msra.gmra.mrb[140].mxu0 %vm303_vm3, %v4689_v39  ;;  %v4679_v41 = vmul.f32 %v5396_v5, %v4668_v6 }
0x1fdb   :  { %v7053_v37 = vpop.eup %7052  ;;  %6402 = vmatprep.mubr.msk.f32.mxu0 %vm7105_vm2, %v7106_v47 }
0x1fdc   :  { %v4690_v21 = vadd.f32 %v5397_v43, %v4679_v41  ;;  %v4669_v20 = vmul.f32 %v7053_v37, %v4629_v11  ;;  %v5409_v11 = vld [vmem:[%s8936_s20 + $0x40] sm:$0xff] }
0x1fdd   :  { %v6630_v19 = vpack.c.bf16 %v5410_v14, %v5409_v11 }
0x1fde   :  { %6403 = vmatmul.mubr.msk.f32.gmra.mrb[142].mxu0 %vm303_vm3, %v4690_v21  ;;  %v4680_v27 = vmul.f32 %v5396_v5, %v4669_v20 }
0x1fdf   :  { %v7055_v10 = vpop.eup %7054  ;;  %6405 = vmatprep.mubr.msk.f32.mxu0 %vm7105_vm2, %v7106_v47  ;;  %6631 = vmatpush3.bf16.msra.mxu1 %v6630_v19 }
0x1fe0   :  { %v4691_v31 = vadd.f32 %v5397_v43, %v4680_v27  ;;  %v4670_v30 = vmul.f32 %v7055_v10, %v4630_v2  ;;  %6632 = vmatprep.subr.bf16.mxu1 %v7104_v38  ;;  %v6633_v2 = vpack.c.bf16 %v5412_v25, %v5411_v4 }
0x1fe2   :  { %6406 = vmatmul.mubr.msk.f32.gmra.mrb[144].mxu0 %vm303_vm3, %v4691_v31  ;;  %v4681_v29 = vmul.f32 %v5396_v5, %v4670_v30 }
0x1fe3   :  { %v7057_v56 = vpop.eup %7056  ;;  %6408 = vmatprep.mubr.msk.f32.mxu0 %vm7105_vm2, %v7106_v47  ;;  %6634 = vmatpush3.bf16.msra.mxu1 %v6633_v2 }
0x1fe4   :  { %v4692_v58 = vadd.f32 %v5397_v43, %v4681_v29  ;;  %v4671_v7 = vmul.f32 %v7057_v56, %v4631_v48  ;;  %6635 = vmatprep.subr.bf16.mxu1 %v7104_v38  ;;  %v5416_v48 = vld [vmem:[%s8936_s20 + $0x78] sm:$0xff] }
0x1fe5   :  { %v6639_v32 = vpack.c.bf16 %v5416_v48, %v5415_v33 }
0x1fe6   :  { %6409 = vmatmul.mubr.msk.f32.gmra.mrb[146].mxu0 %vm303_vm3, %v4692_v58  ;;  %v4682_v0 = vmul.f32 %v5396_v5, %v4671_v7 }
0x1fe7   :  { %6411 = vmatprep.mubr.msk.f32.mxu0 %vm7105_vm2, %v7106_v47  ;;  %6637 = vmatpush3.bf16.msra.mxu1 %v6636_v62 }
0x1fe8   :  { %v4693_v44 = vadd.f32 %v5397_v43, %v4682_v0  ;;  %6638 = vmatprep.subr.bf16.mxu1 %v7104_v38 }
0x1fea   :  { %6412 = vmatmul.mubr.msk.f32.gmra.mrb[148].mxu0 %vm303_vm3, %v4693_v44  ;;  %v5423_v44 = vld [vmem:[%s8937_s21 + $0x1] ss:$0 sm:$0xff] }
0x1feb   :  { %6455 = vmatprep.mubr.msk.f32.mxu0 %vm7105_vm2, %v7106_v47  ;;  %6640 = vmatpush3.bf16.msra.mxu1 %v6639_v32 }
0x20ad   :  { %v4788_v24 = vpop.f32.mrb[140].mxu0 }
0x20ae   :  { %v4789_v49 = vadd.f32 %v5403_v63, %v4788_v24  ;;  %v6401_v50 = vpop.f32.mrb[141].mxu0 }
0x20b0   :  { %v4817_v45 = vmul.f32 0.70710677, %v4789_v49  ;;  %v4812_v13 = vmul.f32 0.5, %v4789_v49 }
0x20b1   :  { %v4793_v36 = vpop.f32.mrb[142].mxu0 }
0x20b2   :  { %7058 = verf.f32 %v4817_v45  ;;  %v4794_v16 = vadd.f32 %v5403_v63, %v4793_v36  ;;  %v6404_v15 = vpop.f32.mrb[143].mxu0 }
0x20b4   :  { %v4818_v59 = vmul.f32 0.70710677, %v4794_v16  ;;  %v4813_v28 = vmul.f32 0.5, %v4794_v16 }
0x20b5   :  { %v4798_v53 = vpop.f32.mrb[144].mxu0 }
0x20b6   :  { %7060 = verf.f32 %v4818_v59  ;;  %v4799_v23 = vadd.f32 %v5403_v63, %v4798_v53  ;;  %v6407_v22 = vpop.f32.mrb[145].mxu0 }
0x20b7   :  { %v5075_v22 = vld [vmem:[%s8940_s24] sm:$0xff] }
0x20b8   :  { %v4819_v9 = vmul.f32 0.70710677, %v4799_v23  ;;  %v4814_v6 = vmul.f32 0.5, %v4799_v23 }
0x20b9   :  { %v4803_v40 = vpop.f32.mrb[146].mxu0 }
0x20ba   :  { %7062 = verf.f32 %v4819_v9  ;;  %v4804_v42 = vadd.f32 %v5403_v63, %v4803_v40  ;;  %v6410_v61 = vpop.f32.mrb[147].mxu0  ;;  %v5077_v40 = vld [vmem:[%s8940_s24 + $0x10] sm:$0xff] }
0x20bc   :  { %v7059_v3 = vpop.eup %7058  ;;  %v4820_v52 = vmul.f32 0.70710677, %v4804_v42  ;;  %v4815_v20 = vmul.f32 0.5, %v4804_v42  ;;  %v5078_v42 = vld [vmem:[%s8940_s24 + $0x18] sm:$0xff] }
0x20bd   :  { %v4827_v1 = vadd.f32 1.0, %v7059_v3  ;;  %v4808_v5 = vpop.f32.mrb[148].mxu0  ;;  %v6651_v61 = vpack.c.bf16 %v5078_v42, %v5077_v40 }
0x20be   :  { %7064 = verf.f32 %v4820_v52  ;;  %v4809_v35 = vadd.f32 %v5403_v63, %v4808_v5  ;;  %v6413_v26 = vpop.f32.mrb[149].mxu0  ;;  %v5426_v5 = vld [vmem:[%s8938_s22] ss:$0 sm:$0xff]  ;;  %s7080_s22 = scalar_lea.vmem %s5168_s15, 32 }
0x20bf   :  { %v4832_v51 = vmul.f32 %v4827_v1, %v4812_v13  ;;  %p7081_p0 = scmp.ne.s32.totalorder %s5168_s15, %s7080_s22  ;;  %p7086_p2 = scmp.lt.s32.totalorder %s7080_s22, %s7080_s22 }
0x20c0   :  { %v7061_v43 = vpop.eup %7060  ;;  %v4821_v8 = vmul.f32 0.70710677, %v4809_v35  ;;  %v4816_v30 = vmul.f32 0.5, %v4809_v35  ;;  %v5427_v35 = vld [vmem:[%s8939_s23] ss:$0 sm:$0xff] }
0x20c1   :  { %v4828_v17 = vadd.f32 1.0, %v7061_v43  ;;  %6431 = vmatmul.mubr.msk.f32.vlgmr.msra.gmra.mrb[150].mxu1 %vm91_vm0, %v4832_v51  ;;  %v5428_v43 = vld [vmem:[%s8941_s25] ss:$0 sm:$0xff]  ;;  %p7087_p3 = por %p7086_p2, %p7085_p1 }
0x20c2   :  { %7066 = verf.f32 %v4821_v8  ;;  %6433 = vmatprep.mubr.msk.f32.mxu1 %vm7105_vm2, %v7106_v47 }
0x20c3   :  { %v4833_v55 = vmul.f32 %v4828_v17, %v4813_v28  ;;  %p7088_p4 = pnand %p7087_p3, %p7081_p0 }
0x20c4   :  { %v7063_v39 = vpop.eup %7062 }
0x20c5   :  { %v4829_v41 = vadd.f32 1.0, %v7063_v39  ;;  %6434 = vmatmul.mubr.msk.f32.gmra.mrb[152].mxu1 %vm91_vm0, %v4833_v55 }
0x20c6   :  { %6436 = vmatprep.mubr.msk.f32.mxu1 %vm7105_vm2, %v7106_v47 }
0x20c7   :  { %v4834_v37 = vmul.f32 %v4829_v41, %v4814_v6 }
0x20c8   :  { %v7065_v21 = vpop.eup %7064 }
0x20c9   :  { %v4830_v27 = vadd.f32 1.0, %v7065_v21  ;;  %6437 = vmatmul.mubr.msk.f32.gmra.mrb[154].mxu1 %vm91_vm0, %v4834_v37 }
0x20ca   :  { %6439 = vmatprep.mubr.msk.f32.mxu1 %vm7105_vm2, %v7106_v47 }
0x20cb   :  { %v4835_v10 = vmul.f32 %v4830_v27, %v4815_v20 }
0x20cc   :  { %v7067_v31 = vpop.eup %7066 }
0x20cd   :  { %v4831_v29 = vadd.f32 1.0, %v7067_v31  ;;  %6440 = vmatmul.mubr.msk.f32.gmra.mrb[156].mxu1 %vm91_vm0, %v4835_v10 }
0x20ce   :  { %6442 = vmatprep.mubr.msk.f32.mxu1 %vm7105_vm2, %v7106_v47 }
0x20cf   :  { %v4836_v56 = vmul.f32 %v4831_v29, %v4816_v30 }
0x20d1   :  { %6443 = vmatmul.mubr.msk.f32.gmra.mrb[158].mxu1 %vm91_vm0, %v4836_v56 }
0x2194   :  { %v4927_v58 = vpop.f32.mrb[150].mxu1 }
0x2195   :  { %v6432_v7 = vpop.f32.mrb[151].mxu1  ;;  %v4951_v0 = vadd.f32 %v4927_v58, %v8745_v60 }
0x2197   :  { %v4964_v4 = vadd.f32 %v5423_v44, %v4951_v0 }
0x2198   :  { %v4932_v11 = vpop.f32.mrb[152].mxu1 }
0x2199   :  { %v4952_v14 = vadd.f32 %v4932_v11, %v8751_v57  ;;  %v6435_v19 = vpop.f32.mrb[153].mxu1 }
0x219b   :  { %v4965_v25 = vadd.f32 %v5423_v44, %v4952_v14 }
0x219c   :  { %v4937_v2 = vpop.f32.mrb[154].mxu1 }
0x219d   :  { %v6642_v34 = vpack.c.bf16 %v4965_v25, %v4964_v4  ;;  %v6438_v12 = vpop.f32.mrb[155].mxu1  ;;  %v4953_v62 = vadd.f32 %v4937_v2, %v8757_v54  ;;  %v4969_v54 = vld [vmem:[%s8986_s18] sm:$0x3] }
0x219f   :  { %6643 = vmatpush3.bf16.msra.mxu0 %v6642_v34  ;;  %v4966_v32 = vadd.f32 %v5423_v44, %v4953_v62 }
0x21a0   :  { %v4942_v33 = vpop.f32.mrb[156].mxu1  ;;  %6644 = vmatprep.subr.bf16.mxu0 %v7104_v38 }
0x21a1   :  { %v4954_v60 = vadd.f32 %v4942_v33, %v8763_v18  ;;  %v6441_v48 = vpop.f32.mrb[157].mxu1 }
0x21a3   :  { %v4967_v63 = vadd.f32 %v5423_v44, %v4954_v60 }
0x21a4   :  { %v4947_v24 = vpop.f32.mrb[158].mxu1 }
0x21a5   :  { %v6645_v49 = vpack.c.bf16 %v4967_v63, %v4966_v32  ;;  %v4955_v57 = vadd.f32 %v4947_v24, %v8769_v46  ;;  %v6444_v50 = vpop.f32.mrb[159].mxu1 }
0x21a7   :  { %6646 = vmatpush3.bf16.msra.mxu0 %v6645_v49  ;;  %v4968_v45 = vadd.f32 %v5423_v44, %v4955_v57 }
0x21a8   :  { %6453 = vmatprep.subr.mxu0 %v7106_v47 }
0x21ab   :  { %6454 = vmatpush3.msk.msra.mxu0 %vm842_vm9, %v4968_v45 }
0x21ac   :  { %6456 = vmatmul.mubr.msk.f32.vlgmr.msra.gmra.mrb[150].mxu0 %vm756_vm7, %v4969_v54  ;;  %6647 = vmatprep.subr.bf16.mxu0 %v7104_v38 }
0x21ad   :  { %6466 = vmatprep.mubr.msk.f32.mxu0 %vm7105_vm2, %v7106_v47  ;;  %v5076_v47 = vld [vmem:[%s8940_s24 + $0x8] sm:$0xff] }
0x21ae   :  { %v6648_v9 = vpack.c.bf16 %v5076_v47, %v5075_v22 }
0x21b0   :  { %6649 = vmatpush3.bf16.msra.mxu0 %v6648_v9 }
0x21b1   :  { %6650 = vmatprep.subr.bf16.mxu0 %v7104_v38 }
0x21b4   :  { %6652 = vmatpush3.bf16.msra.mxu0 %v6651_v61 }
0x227f   :  { %v5042_v18 = vpop.f32.mrb[150].mxu0 }
0x2280   :  { %v5048_v46 = vsel %vm316_vm4, %v5042_v18, 0.0  ;;  %v6457_v36 = vpop.f32.mrb[151].mxu0 }
0x2281   :  { %5049 = vadd.xlane.f32.xlu0 %v5048_v46 }
0x230e   :  { %v5050_v16 = vpop.xlane.xlu0 %5049 }
0x230f   :  { %v5051_v15 = vmul.f32 0.03125, %v5050_v16 }
0x2311   :  { %v5052_v59 = vsub.f32 %v5042_v18, %v5051_v15 }
0x2313   :  { %v5053_v53 = vmul.f32 %v5052_v59, %v5052_v59 }
0x2315   :  { %v5054_v23 = vsel %vm316_vm4, %v5053_v53, 0.0 }
0x2316   :  { %5055 = vadd.xlane.f32.xlu1 %v5054_v23 }
0x23a3   :  { %v5056_v3 = vpop.xlane.xlu1 %5055 }
0x23a4   :  { %v5057_v52 = vmul.f32 0.03125, %v5056_v3 }
0x23a6   :  { %v5058_v13 = vadd.f32 1e-05, %v5057_v52 }
0x23a8   :  { %7068 = vrsqrt.f32 %v5058_v13 }
0x23b2   :  { %v7069_v1 = vpop.eup %7068 }
0x23b3   :  { %v5060_v38 = vmul.f32 %v7069_v1, %v5052_v59 }
0x23b5   :  { %v5067_v26 = vmul.f32 %v5426_v5, %v5060_v38 }
0x23b7   :  { %v5074_v51 = vadd.f32 %v5427_v35, %v5067_v26 }
0x23b9   :  { %6467 = vmatmul.mubr.msk.f32.vlgmr.msra.gmra.mrb[152].mxu0 %vm303_vm3, %v5074_v51 }
0x248c   :  { %v5155_v8 = vpop.f32.mrb[152].mxu0 }
0x248d   :  { %v5156_v28 = vadd.f32 %v5428_v43, %v5155_v8  ;;  %v6468_v17 = vpop.f32.mrb[153].mxu0 }
0x248f   :  { %5160 = vst.msk [vmem:[#allocation2] sm:$0x3] %vm5159_vm10, %v5156_v28 }
0x2490   :  { %7091 = shalt.err (!%p7088_p4)
}
0x2491   :  { %s7092_s2 = scalar_lea.hbm %s8942_s26, 32 }
0x2492   :  { %p7093_p5 = scmp.ne.s32.totalorder %s8942_s26, %s7092_s2  ;;  %p7096_p6 = scmp.lt.u32.totalorder %s7092_s2, %s8942_s26 }
0x2494   :  { %p7098_p7 = pnand %p7096_p6, %p7093_p5 }
0x2496   :  { %7101 = shalt.err (!%p7098_p7)
}
0x2497   :  { %5170 = dma.vmem_to_hbm [thread:$0]  %s5168_s15, 32, %s8942_s26, [#allocation3]  }
0x2498   :  { %7102 = dma.done.wait [#allocation3], 32  }
0x2499   :  { %7103 = vsyncadd [#allocation3], 4294967264 }
0x249a   :  { %5174 = vsyncpa [#allocation3], 1 }

</bundles_post_ra>
